<compile_context>
chip_gen: v6e
topology: v6e:2x2x1
jax: 0.10.0
libtpu: 0.0.40
codegen_flags: <defaults>
</compile_context>

<pallas_src>
import functools

import jax
import jax.numpy as jnp
from jax.experimental import pallas as pl
from jax.experimental.pallas import tpu as pltpu

HI = jax.lax.Precision.HIGHEST  # XLA-side glue matmuls stay full f32 precision


def _round_up(x, m):
    return ((x + m - 1) // m) * m


# ----------------------------- serial recurrence kernel ----------------------

def _gru_recurrent_kernel(gi0_ref, hinit_ref, wh0_ref, wi1_ref, wh1_ref, bias_ref,
                          h1_seq_ref, hfin_ref, h_scr,
                          *, chunk, hp, seq_len, mask_tail, unroll):
    """Only the truly sequential part: per-step h @ W_hh / h0 @ W_ih1 for both layers.

    grid = (batch_blocks ["parallel"], time_chunks ["arbitrary"]).
    gi0_ref   : (Tc, Bb, 3Hp) precomputed layer-0 input projections (gates lane-aligned;
                b_ih0 and the r/z half of b_hh0 already folded in)
    hinit_ref : (2, Bb, Hp) initial hidden state for this batch block
    w*_ref    : (Hp, 3Hp) fused per-projection weight (bf16 MXU inputs)
    bias_ref  : (3, 1, 3Hp) = [[0,0,b0_hn], [0,0,b1_hn], [b1_ir+b1_hr, b1_iz+b1_hz, b1_in]]
    h_scr     : (2, Bb, Hp) VMEM scratch carrying (h0, h1) across time chunks
    """
    tc = pl.program_id(1)
    bb = h_scr.shape[1]

    @pl.when(tc == 0)
    def _():
        h_scr[...] = hinit_ref[...]

    # Loop invariants hoisted out of the (unrolled) time loop: fused weights and the
    # three bias rows broadcast once to (Bb, 3Hp) (JAX does not CSE broadcast_in_dim).
    wh0 = wh0_ref[...]
    wi1 = wi1_ref[...]
    wh1 = wh1_ref[...]
    cdt = wh0.dtype
    bh0 = jnp.broadcast_to(bias_ref[0], (bb, 3 * hp))
    bh1 = jnp.broadcast_to(bias_ref[1], (bb, 3 * hp))
    bi1 = jnp.broadcast_to(bias_ref[2], (bb, 3 * hp))

    def step(t, carry):
        h0, h1 = carry

        # Layer-1 recurrent projection depends only on the previous h1 -> issue first
        # so its MXU work overlaps the layer-0 VPU/EUP gate math.
        gh1 = jnp.dot(h1.astype(cdt), wh1, preferred_element_type=jnp.float32) + bh1
        gh0 = jnp.dot(h0.astype(cdt), wh0, preferred_element_type=jnp.float32) + bh0

        gi0 = gi0_ref[t]
        r0 = jax.nn.sigmoid(gi0[:, :hp] + gh0[:, :hp])
        z0 = jax.nn.sigmoid(gi0[:, hp:2 * hp] + gh0[:, hp:2 * hp])
        n0 = jnp.tanh(gi0[:, 2 * hp:] + r0 * gh0[:, 2 * hp:])
        h0n = (1.0 - z0) * n0 + z0 * h0

        # TODO(synk): inter-layer dropout omitted (inference semantics / dropout=0)

        gi1 = jnp.dot(h0n.astype(cdt), wi1, preferred_element_type=jnp.float32) + bi1
        r1 = jax.nn.sigmoid(gi1[:, :hp] + gh1[:, :hp])
        z1 = jax.nn.sigmoid(gi1[:, hp:2 * hp] + gh1[:, hp:2 * hp])
        n1 = jnp.tanh(gi1[:, 2 * hp:] + r1 * gh1[:, 2 * hp:])
        h1n = (1.0 - z1) * n1 + z1 * h1

        if mask_tail:  # trace-time flag; only emitted when T % chunk != 0
            valid = (tc * chunk + t) < seq_len
            h0n = jnp.where(valid, h0n, h0)
            h1n = jnp.where(valid, h1n, h1)

        h1_seq_ref[t] = h1n
        return (h0n, h1n)

    h0f, h1f = jax.lax.fori_loop(0, chunk, step, (h_scr[0], h_scr[1]), unroll=unroll)
    h_scr[0] = h0f
    h_scr[1] = h1f

    @pl.when(tc == pl.num_programs(1) - 1)
    def _():
        hfin_ref[...] = h_scr[...]


# ----------------------------- batched dense (vocab) kernel ------------------

def _dense_kernel(h_ref, w_ref, b_ref, o_ref):
    o_ref[...] = (jnp.dot(h_ref[...], w_ref[...],
                          preferred_element_type=jnp.float32) + b_ref[...])


def _dense_projection(h_flat, wd_p, bd_p, *, tm_max=256, tn_max=512):
    """logits = h_flat @ wd_p + bd_p.  Vocab axis OUTER / rows INNER so each (Hp,tn)
    W tile is held constant across the inner loop (the tiny h tiles get re-streamed,
    not the dominant vocab matrix)."""
    R, Hp = h_flat.shape
    Vp = wd_p.shape[1]

    tm = max(8, (min(tm_max, _round_up(R, 8)) // 8) * 8)
    Rp = _round_up(R, tm)
    tn = max(128, (min(tn_max, Vp) // 128) * 128)
    while Vp % tn:
        tn -= 128

    h_mm = h_flat.astype(wd_p.dtype)
    if Rp != R:
        h_mm = jnp.zeros((Rp, Hp), wd_p.dtype).at[:R].set(h_mm)

    out = pl.pallas_call(
        _dense_kernel,
        out_shape=jax.ShapeDtypeStruct((Rp, Vp), jnp.float32),
        grid_spec=pltpu.PrefetchScalarGridSpec(
            num_scalar_prefetch=0,
            grid=(Vp // tn, Rp // tm),                      # vocab OUTER, rows INNER
            in_specs=[
                pl.BlockSpec((tm, Hp), lambda v, r: (r, 0)),
                pl.BlockSpec((Hp, tn), lambda v, r: (0, v)),  # constant over inner loop
                pl.BlockSpec((1, tn), lambda v, r: (0, v)),
            ],
            out_specs=pl.BlockSpec((tm, tn), lambda v, r: (r, v)),
        ),
        compiler_params=pltpu.CompilerParams(
            dimension_semantics=("parallel", "parallel")),
    )(h_mm, wd_p, bd_p)
    return out if Rp == R else out[:R]


# ----------------------------- one-time parameter preprocessing --------------

def prepare_decoder_params(params, *, num_hiddens, embed_size,
                           rnn_dtype=jnp.bfloat16, dense_dtype=jnp.bfloat16,
                           tn_max=512):
    """Called ONCE (not per forward): gate-aligned lane padding of the GRU weights and
    biases to Hp=round_up(H,128), bias folding, bf16 casts, and the lane-padded bf16
    copy of the vocab matrix (rows padded to Hp so h1_seq needs no lane slice)."""
    H, E = num_hiddens, embed_size
    Hp = _round_up(H, 128)
    V = params["wd"].shape[1]
    Vp0 = _round_up(V, 128)
    tn = max(128, (min(tn_max, Vp0) // 128) * 128)
    Vp = _round_up(V, tn)

    def pad_cols(w):          # (K, 3H) -> (K, 3Hp): gate g at lane offset g*Hp
        w = w.astype(jnp.float32)
        out = jnp.zeros((w.shape[0], 3 * Hp), jnp.float32)
        for g in range(3):
            out = out.at[:, g * Hp:g * Hp + H].set(w[:, g * H:(g + 1) * H])
        return out

    def pad_rows_cols(w):     # (H, 3H) -> (Hp, 3Hp)
        return jnp.zeros((Hp, 3 * Hp), jnp.float32).at[:H].set(pad_cols(w))

    zH = jnp.zeros((1, H), jnp.float32)
    wih0 = params["wih0"].astype(jnp.float32)
    bih0 = params["bih0"].astype(jnp.float32)
    bhh0 = params["bhh0"].astype(jnp.float32)
    bih1 = params["bih1"].astype(jnp.float32)
    bhh1 = params["bhh1"].astype(jnp.float32)

    return {
        "embedding": params["embedding"].astype(jnp.float32),
        # layer-0 input weights split into token / context halves (hoisted projection)
        "w_x": pad_cols(wih0[:E]),                                       # (E, 3Hp)
        "w_c": pad_cols(wih0[E:]),                                       # (H, 3Hp)
        # b_ih0 plus the r/z half of b_hh0, folded into the hoisted projection
        "gi0_bias": pad_cols(bih0 + jnp.concatenate([bhh0[:, :2 * H], zH], 1)),
        # fused per-projection recurrent weights as bf16 MXU inputs
        "wh0": pad_rows_cols(params["whh0"]).astype(rnn_dtype),          # (Hp, 3Hp)
        "wi1": pad_rows_cols(params["wih1"]).astype(rnn_dtype),
        "wh1": pad_rows_cols(params["whh1"]).astype(rnn_dtype),
        # in-kernel biases: [0,0,b0_hn], [0,0,b1_hn], [b1_ir+b1_hr, b1_iz+b1_hz, b1_in]
        "bias": jnp.stack([
            pad_cols(jnp.concatenate([zH, zH, bhh0[:, 2 * H:]], 1)),
            pad_cols(jnp.concatenate([zH, zH, bhh1[:, 2 * H:]], 1)),
            pad_cols(jnp.concatenate([bih1[:, :2 * H] + bhh1[:, :2 * H],
                                      bih1[:, 2 * H:]], 1)),
        ], axis=0),                                                      # (3, 1, 3Hp)
        # vocab head: lane-padded bf16 weight / f32 bias, built once
        "wd": jnp.zeros((Hp, Vp), dense_dtype).at[:H, :V].set(
            params["wd"].astype(dense_dtype)),
        "bd": jnp.zeros((1, Vp), jnp.float32).at[:, :V].set(
            params["bd"].astype(jnp.float32)),
    }


# ----------------------------- forward wrapper --------------------------------

def seq2seq_decoder_forward(tokens, state, prep, *, num_hiddens, embed_size, vocab_size,
                            t_chunk=32, batch_block=128, tm_max=256, tn_max=512):
    """tokens: (B,T) int32, state: (L=2,B,H) f32 -> ((B,T,V) logits, (L,B,H) state)."""
    H, E, V = num_hiddens, embed_size, vocab_size
    B, T = tokens.shape
    L = state.shape[0]
    assert L == 2, "kernel is specialized for the 2-layer GRU of the reference module"
    Hp = prep["wh0"].shape[0]

    # ---- block geometry ----
    Tc = min(t_chunk, T)
    Tp = _round_up(T, Tc)
    Bp = _round_up(B, 8)
    Bb = min(_round_up(batch_block, 8), Bp)
    if Bb == Bp and Bp >= 16:            # >= 2 batch blocks when possible (v7x: 2 TCs)
        Bb = _round_up((Bp + 1) // 2, 8)
    Bp = _round_up(Bp, Bb)
    nb, nt = Bp // Bb, Tp // Tc
    unroll = Tc if Tc <= 8 else 4        # cap unroll (vreg live ranges / compile time)

    # ---- XLA glue: embedding gather + hoisted, batched layer-0 input projection with
    #      the constant encoder context folded in (no (T,B,E+H) concat is materialized).
    # TODO(synk): embedding gather stays in XLA; a Pallas gather adds nothing here.
    emb = prep["embedding"][tokens]                                   # (B, T, E)
    emb_t = jnp.transpose(emb, (1, 0, 2)).reshape(T * B, E)
    ctx = state[-1].astype(jnp.float32)                               # (B, H), fixed over t
    gi0 = (jnp.dot(emb_t, prep["w_x"], precision=HI).reshape(T, B, 3 * Hp)
           + jnp.dot(ctx, prep["w_c"], precision=HI)[None]
           + prep["gi0_bias"][None])
    if (Tp, Bp) != (T, B):
        gi0 = jnp.zeros((Tp, Bp, 3 * Hp), jnp.float32).at[:T, :B].set(gi0)
    hinit = jnp.zeros((L, Bp, Hp), jnp.float32).at[:, :B, :H].set(
        state.astype(jnp.float32))

    # ---- serial recurrence: (batch parallel) x (time chunks arbitrary) grid ----
    w_bytes = jnp.dtype(prep["wh0"].dtype).itemsize
    vmem_est = (2 * Tc * Bb * 3 * Hp * 4            # gi0 blocks (double-buffered)
                + 2 * Tc * Bb * Hp * 4              # h1_seq blocks
                + 2 * 2 * L * Bb * Hp * 4           # hinit + hfin blocks
                + 2 * 3 * Hp * 3 * Hp * w_bytes     # fused weights
                + L * Bb * Hp * 4 + (1 << 16))      # scratch + biases / slack
    vmem_limit = int(min(64 << 20, max(vmem_est + (4 << 20), 32 << 20)))

    kernel = functools.partial(_gru_recurrent_kernel, chunk=Tc, hp=Hp, seq_len=T,
                               mask_tail=(Tp != T), unroll=unroll)
    h1_seq, hfin = pl.pallas_call(
        kernel,
        out_shape=(jax.ShapeDtypeStruct((Tp, Bp, Hp), jnp.float32),
                   jax.ShapeDtypeStruct((L, Bp, Hp), jnp.float32)),
        grid_spec=pltpu.PrefetchScalarGridSpec(
            num_scalar_prefetch=0,
            grid=(nb, nt),
            in_specs=[
                pl.BlockSpec((Tc, Bb, 3 * Hp), lambda b, t: (t, b, 0)),
                pl.BlockSpec((L, Bb, Hp), lambda b, t: (0, b, 0)),
                pl.BlockSpec((Hp, 3 * Hp), lambda b, t: (0, 0)),
                pl.BlockSpec((Hp, 3 * Hp), lambda b, t: (0, 0)),
                pl.BlockSpec((Hp, 3 * Hp), lambda b, t: (0, 0)),
                pl.BlockSpec((3, 1, 3 * Hp), lambda b, t: (0, 0, 0)),
            ],
            out_specs=[
                pl.BlockSpec((Tc, Bb, Hp), lambda b, t: (t, b, 0)),
                pl.BlockSpec((L, Bb, Hp), lambda b, t: (0, b, 0)),
            ],
            scratch_shapes=[pltpu.VMEM((L, Bb, Hp), jnp.float32)]),
        compiler_params=pltpu.CompilerParams(
            dimension_semantics=("parallel", "arbitrary"),
            vmem_limit_bytes=vmem_limit),
    )(gi0, hinit, prep["wh0"], prep["wi1"], prep["wh1"], prep["bias"])

    # ---- vocab head: transpose the SMALL h1_seq to (B,T,Hp) now (so no (B,T,V)
    #      logits transpose later), then the lane-dense projection.
    h1 = h1_seq if (Tp, Bp) == (T, B) else h1_seq[:T, :B]
    h_bt = jnp.transpose(h1, (1, 0, 2)).reshape(B * T, Hp)   # padded lanes are exact 0
    logits = _dense_projection(h_bt, prep["wd"], prep["bd"],
                               tm_max=tm_max, tn_max=tn_max)
    if logits.shape[1] != V:
        logits = logits[:, :V]
    out = logits.reshape(B, T, V)
    return out, hfin[:, :B, :H]


# ----------------------------- pure-JAX reference ------------------------------

def _gru_cell_ref(x, h, w_ih, w_hh, b_ih, b_hh, H):
    gi = jnp.dot(x, w_ih, precision=HI) + b_ih
    gh = jnp.dot(h, w_hh, precision=HI) + b_hh
    r = jax.nn.sigmoid(gi[:, :H] + gh[:, :H])
    z = jax.nn.sigmoid(gi[:, H:2 * H] + gh[:, H:2 * H])
    n = jnp.tanh(gi[:, 2 * H:] + r * gh[:, 2 * H:])
    return (1.0 - z) * n + z * h


def _decoder_reference(tokens, state, params, *, num_hiddens):
    H = num_hiddens
    emb = params["embedding"][tokens]
    X = jnp.transpose(emb, (1, 0, 2))
    ctx = jnp.broadcast_to(state[-1], (X.shape[0],) + state[-1].shape)
    x_cat = jnp.concatenate([X, ctx], axis=2).astype(jnp.float32)

    def step(h, x):
        h0 = _gru_cell_ref(x, h[0], params["wih0"], params["whh0"],
                           params["bih0"], params["bhh0"], H)
        h1 = _gru_cell_ref(h0, h[1], params["wih1"], params["whh1"],
                           params["bih1"], params["bhh1"], H)
        logits = jnp.dot(h1, params["wd"], precision=HI) + params["bd"]
        return jnp.stack([h0, h1]), logits

    hfin, outs = jax.lax.scan(step, state, x_cat)
    return jnp.transpose(outs, (1, 0, 2)), hfin


# ----------------------------- main --------------------------------------------

if __name__ == "__main__":
    vocab_size, embed_size, num_hiddens, num_layers = 32, 8, 16, 2
    batch, seq_len = 4, 8

    key = jax.random.PRNGKey(0)
    keys = jax.random.split(key, 16)
    bound = 1.0 / jnp.sqrt(num_hiddens)

    def u(k, shape, b=bound):
        return jax.random.uniform(k, shape, jnp.float32, -b, b)

    F0 = embed_size + num_hiddens     # layer-0 GRU input size (embed ++ context)
    params = {
        "embedding": jax.random.normal(keys[0], (vocab_size, embed_size), jnp.float32),
        # layer 0 (input size = embed + hidden), stored transposed for x @ W
        "wih0": u(keys[1], (F0, 3 * num_hiddens)),
        "whh0": u(keys[2], (num_hiddens, 3 * num_hiddens)),
        "bih0": u(keys[3], (1, 3 * num_hiddens)),
        "bhh0": u(keys[4], (1, 3 * num_hiddens)),
        # layer 1 (input size = hidden)
        "wih1": u(keys[5], (num_hiddens, 3 * num_hiddens)),
        "whh1": u(keys[6], (num_hiddens, 3 * num_hiddens)),
        "bih1": u(keys[7], (1, 3 * num_hiddens)),
        "bhh1": u(keys[8], (1, 3 * num_hiddens)),
        # dense: Linear(num_hiddens, vocab_size), stored transposed
        "wd": u(keys[9], (num_hiddens, vocab_size)),
        "bd": u(keys[10], (1, vocab_size)),
    }

    tokens = jax.random.randint(keys[11], (batch, seq_len), 0, vocab_size, jnp.int32)
    # decoder.init_state(encoder(X)) -> encoder final hidden state (num_layers, batch, H)
    init_state = jax.random.normal(keys[12], (num_layers, batch, num_hiddens), jnp.float32)

    # one-time parameter preprocessing (padding / bias folding / bf16 casts)
    prep = prepare_decoder_params(params, num_hiddens=num_hiddens, embed_size=embed_size)

    fwd = jax.jit(functools.partial(seq2seq_decoder_forward,
                                    num_hiddens=num_hiddens, embed_size=embed_size,
                                    vocab_size=vocab_size))
    out, hfin = jax.block_until_ready(fwd(tokens, init_state, prep))

    ref_out, ref_hfin = _decoder_reference(tokens, init_state, params,
                                           num_hiddens=num_hiddens)
    assert out.shape == (batch, seq_len, vocab_size)
    assert hfin.shape == (num_layers, batch, num_hiddens)
    # recurrent + vocab matmuls use bf16 MXU inputs (f32 accumulate) -> looser tolerance
    assert jnp.allclose(hfin, ref_hfin, atol=2e-2, rtol=2e-2), \
        float(jnp.max(jnp.abs(hfin - ref_hfin)))
    assert jnp.allclose(out, ref_out, atol=8e-2, rtol=8e-2), \
        float(jnp.max(jnp.abs(out - ref_out)))

    print("KERNEL_OK")
</pallas_src>

<mosaic_0001>
module attributes {stable_mosaic.version = 11 : i64} {
  func.func @_dense_kernel(%arg0: i32, %arg1: i32, %arg2: memref<32x128xbf16, #tpu.memory_space<vmem>>, %arg3: memref<128x128xbf16, #tpu.memory_space<vmem>>, %arg4: memref<1x128xf32, #tpu.memory_space<vmem>>, %arg5: memref<32x128xf32, #tpu.memory_space<vmem>>) attributes {dimension_semantics = [#tpu.dimension_semantics<parallel>, #tpu.dimension_semantics<parallel>], iteration_bounds = array<i64: 1, 1>, scalar_prefetch = 0 : i64, scratch_operands = 0 : i64, tpu.core_type = #tpu.core_type<tc>, window_params = [{transform_indices = @transform_0, window_bounds = array<i64: 32, 128>}, {transform_indices = @transform_1, window_bounds = array<i64: 128, 128>}, {transform_indices = @transform_2, window_bounds = array<i64: 1, 128>}, {transform_indices = @transform_3, window_bounds = array<i64: 32, 128>}]} {
    %c0 = arith.constant 0 : index
    %c0_0 = arith.constant 0 : index
    %0 = vector.load %arg2[%c0, %c0_0] : memref<32x128xbf16, #tpu.memory_space<vmem>>, vector<32x128xbf16>
    %c0_1 = arith.constant 0 : index
    %c0_2 = arith.constant 0 : index
    %1 = vector.load %arg3[%c0_1, %c0_2] : memref<128x128xbf16, #tpu.memory_space<vmem>>, vector<128x128xbf16>
    %cst = arith.constant dense<0.000000e+00> : vector<32x128xf32>
    %2 = tpu.matmul %0, %1, %cst {dimension_numbers = #tpu.dot_dimension_numbers<[1], [0], [0], [1], [0, 0, 1, 1], [], []>} : vector<32x128xbf16>, vector<128x128xbf16>, vector<32x128xf32> -> vector<32x128xf32>
    %c0_3 = arith.constant 0 : index
    %c0_4 = arith.constant 0 : index
    %3 = vector.load %arg4[%c0_3, %c0_4] : memref<1x128xf32, #tpu.memory_space<vmem>>, vector<1x128xf32>
    %4 = vector.broadcast %3 : vector<1x128xf32> to vector<32x128xf32>
    %5 = arith.addf %2, %4 : vector<32x128xf32>
    %c0_5 = arith.constant 0 : index
    %c0_6 = arith.constant 0 : index
    %6 = vector.load %arg5[%c0_5, %c0_6] : memref<32x128xf32, #tpu.memory_space<vmem>>, vector<32x128xf32>
    tpu.vector_store %arg5[%c0_5, %c0_6], %5 {strides = array<i32>} : memref<32x128xf32, #tpu.memory_space<vmem>>, vector<32x128xf32>,
    return
  }
  func.func @transform_0(%arg0: i32, %arg1: i32) -> (i32, i32) {
    %c0_i32 = arith.constant 0 : i32
    %c0_i32_0 = arith.constant 0 : i32
    return %arg1, %c0_i32 : i32, i32
  }
  func.func @transform_1(%arg0: i32, %arg1: i32) -> (i32, i32) {
    %c0_i32 = arith.constant 0 : i32
    %c0_i32_0 = arith.constant 0 : i32
    return %c0_i32, %arg0 : i32, i32
  }
  func.func @transform_2(%arg0: i32, %arg1: i32) -> (i32, i32) {
    %c0_i32 = arith.constant 0 : i32
    %c0_i32_0 = arith.constant 0 : i32
    return %c0_i32, %arg0 : i32, i32
  }
  func.func @transform_3(%arg0: i32, %arg1: i32) -> (i32, i32) {
    %c0_i32 = arith.constant 0 : i32
    return %arg1, %arg0 : i32, i32
  }
}

module attributes {stable_mosaic.version = 11 : i64} {
  func.func @_gru_recurrent_kernel(%arg0: i32, %arg1: i32, %arg2: memref<8x8x384xf32, #tpu.memory_space<vmem>>, %arg3: memref<2x8x128xf32, #tpu.memory_space<vmem>>, %arg4: memref<128x384xbf16, #tpu.memory_space<vmem>>, %arg5: memref<128x384xbf16, #tpu.memory_space<vmem>>, %arg6: memref<128x384xbf16, #tpu.memory_space<vmem>>, %arg7: memref<3x1x384xf32, #tpu.memory_space<vmem>>, %arg8: memref<8x8x128xf32, #tpu.memory_space<vmem>>, %arg9: memref<2x8x128xf32, #tpu.memory_space<vmem>>, %arg10: memref<2x8x128xf32, #tpu.memory_space<vmem>>) attributes {dimension_semantics = [#tpu.dimension_semantics<parallel>, #tpu.dimension_semantics<arbitrary>], iteration_bounds = array<i64: 1, 1>, scalar_prefetch = 0 : i64, scratch_operands = 1 : i64, tpu.core_type = #tpu.core_type<tc>, window_params = [{transform_indices = @transform_0, window_bounds = array<i64: 8, 8, 384>}, {transform_indices = @transform_1, window_bounds = array<i64: 2, 8, 128>}, {pipeline_mode = #tpu.pipeline_mode<synchronous>, transform_indices = @transform_2, window_bounds = array<i64: 128, 384>}, {pipeline_mode = #tpu.pipeline_mode<synchronous>, transform_indices = @transform_3, window_bounds = array<i64: 128, 384>}, {pipeline_mode = #tpu.pipeline_mode<synchronous>, transform_indices = @transform_4, window_bounds = array<i64: 128, 384>}, {pipeline_mode = #tpu.pipeline_mode<synchronous>, transform_indices = @transform_5, window_bounds = array<i64: 3, 1, 384>}, {transform_indices = @transform_6, window_bounds = array<i64: 8, 8, 128>}, {transform_indices = @transform_7, window_bounds = array<i64: 2, 8, 128>}]} {
    %c0_i32 = arith.constant 0 : i32
    %0 = arith.cmpi eq, %arg1, %c0_i32 : i32
    %1 = arith.extui %0 : i1 to i32
    %c0_i32_0 = arith.constant 0 : i32
    %2 = arith.cmpi ne, %1, %c0_i32_0 : i32
    scf.if %2 {
      %c0_131 = arith.constant 0 : index
      %c0_132 = arith.constant 0 : index
      %c0_133 = arith.constant 0 : index
      %575 = vector.load %arg3[%c0_131, %c0_132, %c0_133] : memref<2x8x128xf32, #tpu.memory_space<vmem>>, vector<2x8x128xf32>
      %c0_134 = arith.constant 0 : index
      %c0_135 = arith.constant 0 : index
      %c0_136 = arith.constant 0 : index
      %576 = vector.load %arg10[%c0_134, %c0_135, %c0_136] : memref<2x8x128xf32, #tpu.memory_space<vmem>>, vector<2x8x128xf32>
      tpu.vector_store %arg10[%c0_134, %c0_135, %c0_136], %575 {strides = array<i32>} : memref<2x8x128xf32, #tpu.memory_space<vmem>>, vector<2x8x128xf32>,
    } else {
    }
    %c0 = arith.constant 0 : index
    %c0_1 = arith.constant 0 : index
    %3 = vector.load %arg4[%c0, %c0_1] : memref<128x384xbf16, #tpu.memory_space<vmem>>, vector<128x384xbf16>
    %c0_2 = arith.constant 0 : index
    %c0_3 = arith.constant 0 : index
    %4 = vector.load %arg5[%c0_2, %c0_3] : memref<128x384xbf16, #tpu.memory_space<vmem>>, vector<128x384xbf16>
    %c0_4 = arith.constant 0 : index
    %c0_5 = arith.constant 0 : index
    %5 = vector.load %arg6[%c0_4, %c0_5] : memref<128x384xbf16, #tpu.memory_space<vmem>>, vector<128x384xbf16>
    %c0_6 = arith.constant 0 : index
    %c0_7 = arith.constant 0 : index
    %c0_8 = arith.constant 0 : index
    %6 = vector.load %arg7[%c0_6, %c0_7, %c0_8] : memref<3x1x384xf32, #tpu.memory_space<vmem>>, vector<1x1x384xf32>
    %7 = vector.shape_cast %6 : vector<1x1x384xf32> to vector<1x384xf32>
    %8 = vector.shape_cast %7 : vector<1x384xf32> to vector<1x384xf32>
    %9 = vector.broadcast %8 : vector<1x384xf32> to vector<8x384xf32>
    %c1 = arith.constant 1 : index
    %c0_9 = arith.constant 0 : index
    %c0_10 = arith.constant 0 : index
    %10 = vector.load %arg7[%c1, %c0_9, %c0_10] : memref<3x1x384xf32, #tpu.memory_space<vmem>>, vector<1x1x384xf32>
    %11 = vector.shape_cast %10 : vector<1x1x384xf32> to vector<1x384xf32>
    %12 = vector.shape_cast %11 : vector<1x384xf32> to vector<1x384xf32>
    %13 = vector.broadcast %12 : vector<1x384xf32> to vector<8x384xf32>
    %c2 = arith.constant 2 : index
    %c0_11 = arith.constant 0 : index
    %c0_12 = arith.constant 0 : index
    %14 = vector.load %arg7[%c2, %c0_11, %c0_12] : memref<3x1x384xf32, #tpu.memory_space<vmem>>, vector<1x1x384xf32>
    %15 = vector.shape_cast %14 : vector<1x1x384xf32> to vector<1x384xf32>
    %16 = vector.shape_cast %15 : vector<1x384xf32> to vector<1x384xf32>
    %17 = vector.broadcast %16 : vector<1x384xf32> to vector<8x384xf32>
    %c0_13 = arith.constant 0 : index
    %c0_14 = arith.constant 0 : index
    %c0_15 = arith.constant 0 : index
    %18 = vector.load %arg10[%c0_13, %c0_14, %c0_15] : memref<2x8x128xf32, #tpu.memory_space<vmem>>, vector<1x8x128xf32>
    %19 = vector.shape_cast %18 : vector<1x8x128xf32> to vector<8x128xf32>
    %c1_16 = arith.constant 1 : index
    %c0_17 = arith.constant 0 : index
    %c0_18 = arith.constant 0 : index
    %20 = vector.load %arg10[%c1_16, %c0_17, %c0_18] : memref<2x8x128xf32, #tpu.memory_space<vmem>>, vector<1x8x128xf32>
    %21 = vector.shape_cast %20 : vector<1x8x128xf32> to vector<8x128xf32>
    %c0_i32_19 = arith.constant 0 : i32
    %22 = arith.truncf %21 : vector<8x128xf32> to vector<8x128xbf16>
    %cst = arith.constant dense<0.000000e+00> : vector<8x384xf32>
    %23 = tpu.matmul %22, %5, %cst {dimension_numbers = #tpu.dot_dimension_numbers<[1], [0], [0], [1], [0, 0, 1, 1], [], []>} : vector<8x128xbf16>, vector<128x384xbf16>, vector<8x384xf32> -> vector<8x384xf32>
    %24 = arith.addf %23, %13 : vector<8x384xf32>
    %25 = arith.truncf %19 : vector<8x128xf32> to vector<8x128xbf16>
    %cst_20 = arith.constant dense<0.000000e+00> : vector<8x384xf32>
    %26 = tpu.matmul %25, %3, %cst_20 {dimension_numbers = #tpu.dot_dimension_numbers<[1], [0], [0], [1], [0, 0, 1, 1], [], []>} : vector<8x128xbf16>, vector<128x384xbf16>, vector<8x384xf32> -> vector<8x384xf32>
    %27 = arith.addf %26, %9 : vector<8x384xf32>
    %28 = arith.index_cast %c0_i32_19 : i32 to index
    %c0_21 = arith.constant 0 : index
    %c0_22 = arith.constant 0 : index
    %29 = vector.load %arg2[%28, %c0_21, %c0_22] : memref<8x8x384xf32, #tpu.memory_space<vmem>>, vector<1x8x384xf32>
    %30 = vector.shape_cast %29 : vector<1x8x384xf32> to vector<8x384xf32>
    %31 = vector.extract_strided_slice %30 {offsets = [0, 0], sizes = [8, 128], strides = [1, 1]} : vector<8x384xf32> to vector<8x128xf32>
    %32 = vector.extract_strided_slice %27 {offsets = [0, 0], sizes = [8, 128], strides = [1, 1]} : vector<8x384xf32> to vector<8x128xf32>
    %33 = arith.addf %31, %32 : vector<8x128xf32>
    %34 = arith.negf %33 : vector<8x128xf32>
    %35 = math.exp %34 : vector<8x128xf32>
    %cst_23 = arith.constant 1.000000e+00 : f32
    %36 = vector.broadcast %cst_23 : f32 to vector<8x128xf32>
    %37 = arith.addf %36, %35 : vector<8x128xf32>
    %38 = arith.divf %36, %37 : vector<8x128xf32>
    %39 = vector.extract_strided_slice %30 {offsets = [0, 128], sizes = [8, 128], strides = [1, 1]} : vector<8x384xf32> to vector<8x128xf32>
    %40 = vector.extract_strided_slice %27 {offsets = [0, 128], sizes = [8, 128], strides = [1, 1]} : vector<8x384xf32> to vector<8x128xf32>
    %41 = arith.addf %39, %40 : vector<8x128xf32>
    %42 = arith.negf %41 : vector<8x128xf32>
    %43 = math.exp %42 : vector<8x128xf32>
    %cst_24 = arith.constant 1.000000e+00 : f32
    %44 = vector.broadcast %cst_24 : f32 to vector<8x128xf32>
    %45 = arith.addf %44, %43 : vector<8x128xf32>
    %46 = arith.divf %44, %45 : vector<8x128xf32>
    %47 = vector.extract_strided_slice %30 {offsets = [0, 256], sizes = [8, 128], strides = [1, 1]} : vector<8x384xf32> to vector<8x128xf32>
    %48 = vector.extract_strided_slice %27 {offsets = [0, 256], sizes = [8, 128], strides = [1, 1]} : vector<8x384xf32> to vector<8x128xf32>
    %49 = arith.mulf %38, %48 : vector<8x128xf32>
    %50 = arith.addf %47, %49 : vector<8x128xf32>
    %51 = math.tanh %50 : vector<8x128xf32>
    %cst_25 = arith.constant 1.000000e+00 : f32
    %52 = vector.broadcast %cst_25 : f32 to vector<8x128xf32>
    %53 = arith.subf %52, %46 : vector<8x128xf32>
    %54 = arith.mulf %53, %51 : vector<8x128xf32>
    %55 = arith.mulf %46, %19 : vector<8x128xf32>
    %56 = arith.addf %54, %55 : vector<8x128xf32>
    %57 = arith.truncf %56 : vector<8x128xf32> to vector<8x128xbf16>
    %cst_26 = arith.constant dense<0.000000e+00> : vector<8x384xf32>
    %58 = tpu.matmul %57, %4, %cst_26 {dimension_numbers = #tpu.dot_dimension_numbers<[1], [0], [0], [1], [0, 0, 1, 1], [], []>} : vector<8x128xbf16>, vector<128x384xbf16>, vector<8x384xf32> -> vector<8x384xf32>
    %59 = arith.addf %58, %17 : vector<8x384xf32>
    %60 = vector.extract_strided_slice %59 {offsets = [0, 0], sizes = [8, 128], strides = [1, 1]} : vector<8x384xf32> to vector<8x128xf32>
    %61 = vector.extract_strided_slice %24 {offsets = [0, 0], sizes = [8, 128], strides = [1, 1]} : vector<8x384xf32> to vector<8x128xf32>
    %62 = arith.addf %60, %61 : vector<8x128xf32>
    %63 = arith.negf %62 : vector<8x128xf32>
    %64 = math.exp %63 : vector<8x128xf32>
    %cst_27 = arith.constant 1.000000e+00 : f32
    %65 = vector.broadcast %cst_27 : f32 to vector<8x128xf32>
    %66 = arith.addf %65, %64 : vector<8x128xf32>
    %67 = arith.divf %65, %66 : vector<8x128xf32>
    %68 = vector.extract_strided_slice %59 {offsets = [0, 128], sizes = [8, 128], strides = [1, 1]} : vector<8x384xf32> to vector<8x128xf32>
    %69 = vector.extract_strided_slice %24 {offsets = [0, 128], sizes = [8, 128], strides = [1, 1]} : vector<8x384xf32> to vector<8x128xf32>
    %70 = arith.addf %68, %69 : vector<8x128xf32>
    %71 = arith.negf %70 : vector<8x128xf32>
    %72 = math.exp %71 : vector<8x128xf32>
    %cst_28 = arith.constant 1.000000e+00 : f32
    %73 = vector.broadcast %cst_28 : f32 to vector<8x128xf32>
    %74 = arith.addf %73, %72 : vector<8x128xf32>
    %75 = arith.divf %73, %74 : vector<8x128xf32>
    %76 = vector.extract_strided_slice %59 {offsets = [0, 256], sizes = [8, 128], strides = [1, 1]} : vector<8x384xf32> to vector<8x128xf32>
    %77 = vector.extract_strided_slice %24 {offsets = [0, 256], sizes = [8, 128], strides = [1, 1]} : vector<8x384xf32> to vector<8x128xf32>
    %78 = arith.mulf %67, %77 : vector<8x128xf32>
    %79 = arith.addf %76, %78 : vector<8x128xf32>
    %80 = math.tanh %79 : vector<8x128xf32>
    %cst_29 = arith.constant 1.000000e+00 : f32
    %81 = vector.broadcast %cst_29 : f32 to vector<8x128xf32>
    %82 = arith.subf %81, %75 : vector<8x128xf32>
    %83 = arith.mulf %82, %80 : vector<8x128xf32>
    %84 = arith.mulf %75, %21 : vector<8x128xf32>
    %85 = arith.addf %83, %84 : vector<8x128xf32>
    %86 = arith.index_cast %c0_i32_19 : i32 to index
    %c0_30 = arith.constant 0 : index
    %c0_31 = arith.constant 0 : index
    %87 = vector.load %arg8[%86, %c0_30, %c0_31] : memref<8x8x128xf32, #tpu.memory_space<vmem>>, vector<1x8x128xf32>
    %88 = vector.shape_cast %87 : vector<1x8x128xf32> to vector<8x128xf32>
    %89 = vector.shape_cast %85 : vector<8x128xf32> to vector<1x8x128xf32>
    tpu.vector_store %arg8[%86, %c0_30, %c0_31], %89 {strides = array<i32>} : memref<8x8x128xf32, #tpu.memory_space<vmem>>, vector<1x8x128xf32>,
    %c1_i32 = arith.constant 1 : i32
    %90 = arith.truncf %85 : vector<8x128xf32> to vector<8x128xbf16>
    %cst_32 = arith.constant dense<0.000000e+00> : vector<8x384xf32>
    %91 = tpu.matmul %90, %5, %cst_32 {dimension_numbers = #tpu.dot_dimension_numbers<[1], [0], [0], [1], [0, 0, 1, 1], [], []>} : vector<8x128xbf16>, vector<128x384xbf16>, vector<8x384xf32> -> vector<8x384xf32>
    %92 = arith.addf %91, %13 : vector<8x384xf32>
    %93 = arith.truncf %56 : vector<8x128xf32> to vector<8x128xbf16>
    %cst_33 = arith.constant dense<0.000000e+00> : vector<8x384xf32>
    %94 = tpu.matmul %93, %3, %cst_33 {dimension_numbers = #tpu.dot_dimension_numbers<[1], [0], [0], [1], [0, 0, 1, 1], [], []>} : vector<8x128xbf16>, vector<128x384xbf16>, vector<8x384xf32> -> vector<8x384xf32>
    %95 = arith.addf %94, %9 : vector<8x384xf32>
    %96 = arith.index_cast %c1_i32 : i32 to index
    %c0_34 = arith.constant 0 : index
    %c0_35 = arith.constant 0 : index
    %97 = vector.load %arg2[%96, %c0_34, %c0_35] : memref<8x8x384xf32, #tpu.memory_space<vmem>>, vector<1x8x384xf32>
    %98 = vector.shape_cast %97 : vector<1x8x384xf32> to vector<8x384xf32>
    %99 = vector.extract_strided_slice %98 {offsets = [0, 0], sizes = [8, 128], strides = [1, 1]} : vector<8x384xf32> to vector<8x128xf32>
    %100 = vector.extract_strided_slice %95 {offsets = [0, 0], sizes = [8, 128], strides = [1, 1]} : vector<8x384xf32> to vector<8x128xf32>
    %101 = arith.addf %99, %100 : vector<8x128xf32>
    %102 = arith.negf %101 : vector<8x128xf32>
    %103 = math.exp %102 : vector<8x128xf32>
    %cst_36 = arith.constant 1.000000e+00 : f32
    %104 = vector.broadcast %cst_36 : f32 to vector<8x128xf32>
    %105 = arith.addf %104, %103 : vector<8x128xf32>
    %106 = arith.divf %104, %105 : vector<8x128xf32>
    %107 = vector.extract_strided_slice %98 {offsets = [0, 128], sizes = [8, 128], strides = [1, 1]} : vector<8x384xf32> to vector<8x128xf32>
    %108 = vector.extract_strided_slice %95 {offsets = [0, 128], sizes = [8, 128], strides = [1, 1]} : vector<8x384xf32> to vector<8x128xf32>
    %109 = arith.addf %107, %108 : vector<8x128xf32>
    %110 = arith.negf %109 : vector<8x128xf32>
    %111 = math.exp %110 : vector<8x128xf32>
    %cst_37 = arith.constant 1.000000e+00 : f32
    %112 = vector.broadcast %cst_37 : f32 to vector<8x128xf32>
    %113 = arith.addf %112, %111 : vector<8x128xf32>
    %114 = arith.divf %112, %113 : vector<8x128xf32>
    %115 = vector.extract_strided_slice %98 {offsets = [0, 256], sizes = [8, 128], strides = [1, 1]} : vector<8x384xf32> to vector<8x128xf32>
    %116 = vector.extract_strided_slice %95 {offsets = [0, 256], sizes = [8, 128], strides = [1, 1]} : vector<8x384xf32> to vector<8x128xf32>
    %117 = arith.mulf %106, %116 : vector<8x128xf32>
    %118 = arith.addf %115, %117 : vector<8x128xf32>
    %119 = math.tanh %118 : vector<8x128xf32>
    %cst_38 = arith.constant 1.000000e+00 : f32
    %120 = vector.broadcast %cst_38 : f32 to vector<8x128xf32>
    %121 = arith.subf %120, %114 : vector<8x128xf32>
    %122 = arith.mulf %121, %119 : vector<8x128xf32>
    %123 = arith.mulf %114, %56 : vector<8x128xf32>
    %124 = arith.addf %122, %123 : vector<8x128xf32>
    %125 = arith.truncf %124 : vector<8x128xf32> to vector<8x128xbf16>
    %cst_39 = arith.constant dense<0.000000e+00> : vector<8x384xf32>
    %126 = tpu.matmul %125, %4, %cst_39 {dimension_numbers = #tpu.dot_dimension_numbers<[1], [0], [0], [1], [0, 0, 1, 1], [], []>} : vector<8x128xbf16>, vector<128x384xbf16>, vector<8x384xf32> -> vector<8x384xf32>
    %127 = arith.addf %126, %17 : vector<8x384xf32>
    %128 = vector.extract_strided_slice %127 {offsets = [0, 0], sizes = [8, 128], strides = [1, 1]} : vector<8x384xf32> to vector<8x128xf32>
    %129 = vector.extract_strided_slice %92 {offsets = [0, 0], sizes = [8, 128], strides = [1, 1]} : vector<8x384xf32> to vector<8x128xf32>
    %130 = arith.addf %128, %129 : vector<8x128xf32>
    %131 = arith.negf %130 : vector<8x128xf32>
    %132 = math.exp %131 : vector<8x128xf32>
    %cst_40 = arith.constant 1.000000e+00 : f32
    %133 = vector.broadcast %cst_40 : f32 to vector<8x128xf32>
    %134 = arith.addf %133, %132 : vector<8x128xf32>
    %135 = arith.divf %133, %134 : vector<8x128xf32>
    %136 = vector.extract_strided_slice %127 {offsets = [0, 128], sizes = [8, 128], strides = [1, 1]} : vector<8x384xf32> to vector<8x128xf32>
    %137 = vector.extract_strided_slice %92 {offsets = [0, 128], sizes = [8, 128], strides = [1, 1]} : vector<8x384xf32> to vector<8x128xf32>
    %138 = arith.addf %136, %137 : vector<8x128xf32>
    %139 = arith.negf %138 : vector<8x128xf32>
    %140 = math.exp %139 : vector<8x128xf32>
    %cst_41 = arith.constant 1.000000e+00 : f32
    %141 = vector.broadcast %cst_41 : f32 to vector<8x128xf32>
    %142 = arith.addf %141, %140 : vector<8x128xf32>
    %143 = arith.divf %141, %142 : vector<8x128xf32>
    %144 = vector.extract_strided_slice %127 {offsets = [0, 256], sizes = [8, 128], strides = [1, 1]} : vector<8x384xf32> to vector<8x128xf32>
    %145 = vector.extract_strided_slice %92 {offsets = [0, 256], sizes = [8, 128], strides = [1, 1]} : vector<8x384xf32> to vector<8x128xf32>
    %146 = arith.mulf %135, %145 : vector<8x128xf32>
    %147 = arith.addf %144, %146 : vector<8x128xf32>
    %148 = math.tanh %147 : vector<8x128xf32>
    %cst_42 = arith.constant 1.000000e+00 : f32
    %149 = vector.broadcast %cst_42 : f32 to vector<8x128xf32>
    %150 = arith.subf %149, %143 : vector<8x128xf32>
    %151 = arith.mulf %150, %148 : vector<8x128xf32>
    %152 = arith.mulf %143, %85 : vector<8x128xf32>
    %153 = arith.addf %151, %152 : vector<8x128xf32>
    %154 = arith.index_cast %c1_i32 : i32 to index
    %c0_43 = arith.constant 0 : index
    %c0_44 = arith.constant 0 : index
    %155 = vector.load %arg8[%154, %c0_43, %c0_44] : memref<8x8x128xf32, #tpu.memory_space<vmem>>, vector<1x8x128xf32>
    %156 = vector.shape_cast %155 : vector<1x8x128xf32> to vector<8x128xf32>
    %157 = vector.shape_cast %153 : vector<8x128xf32> to vector<1x8x128xf32>
    tpu.vector_store %arg8[%154, %c0_43, %c0_44], %157 {strides = array<i32>} : memref<8x8x128xf32, #tpu.memory_space<vmem>>, vector<1x8x128xf32>,
    %c2_i32 = arith.constant 2 : i32
    %158 = arith.truncf %153 : vector<8x128xf32> to vector<8x128xbf16>
    %cst_45 = arith.constant dense<0.000000e+00> : vector<8x384xf32>
    %159 = tpu.matmul %158, %5, %cst_45 {dimension_numbers = #tpu.dot_dimension_numbers<[1], [0], [0], [1], [0, 0, 1, 1], [], []>} : vector<8x128xbf16>, vector<128x384xbf16>, vector<8x384xf32> -> vector<8x384xf32>
    %160 = arith.addf %159, %13 : vector<8x384xf32>
    %161 = arith.truncf %124 : vector<8x128xf32> to vector<8x128xbf16>
    %cst_46 = arith.constant dense<0.000000e+00> : vector<8x384xf32>
    %162 = tpu.matmul %161, %3, %cst_46 {dimension_numbers = #tpu.dot_dimension_numbers<[1], [0], [0], [1], [0, 0, 1, 1], [], []>} : vector<8x128xbf16>, vector<128x384xbf16>, vector<8x384xf32> -> vector<8x384xf32>
    %163 = arith.addf %162, %9 : vector<8x384xf32>
    %164 = arith.index_cast %c2_i32 : i32 to index
    %c0_47 = arith.constant 0 : index
    %c0_48 = arith.constant 0 : index
    %165 = vector.load %arg2[%164, %c0_47, %c0_48] : memref<8x8x384xf32, #tpu.memory_space<vmem>>, vector<1x8x384xf32>
    %166 = vector.shape_cast %165 : vector<1x8x384xf32> to vector<8x384xf32>
    %167 = vector.extract_strided_slice %166 {offsets = [0, 0], sizes = [8, 128], strides = [1, 1]} : vector<8x384xf32> to vector<8x128xf32>
    %168 = vector.extract_strided_slice %163 {offsets = [0, 0], sizes = [8, 128], strides = [1, 1]} : vector<8x384xf32> to vector<8x128xf32>
    %169 = arith.addf %167, %168 : vector<8x128xf32>
    %170 = arith.negf %169 : vector<8x128xf32>
    %171 = math.exp %170 : vector<8x128xf32>
    %cst_49 = arith.constant 1.000000e+00 : f32
    %172 = vector.broadcast %cst_49 : f32 to vector<8x128xf32>
    %173 = arith.addf %172, %171 : vector<8x128xf32>
    %174 = arith.divf %172, %173 : vector<8x128xf32>
    %175 = vector.extract_strided_slice %166 {offsets = [0, 128], sizes = [8, 128], strides = [1, 1]} : vector<8x384xf32> to vector<8x128xf32>
    %176 = vector.extract_strided_slice %163 {offsets = [0, 128], sizes = [8, 128], strides = [1, 1]} : vector<8x384xf32> to vector<8x128xf32>
    %177 = arith.addf %175, %176 : vector<8x128xf32>
    %178 = arith.negf %177 : vector<8x128xf32>
    %179 = math.exp %178 : vector<8x128xf32>
    %cst_50 = arith.constant 1.000000e+00 : f32
    %180 = vector.broadcast %cst_50 : f32 to vector<8x128xf32>
    %181 = arith.addf %180, %179 : vector<8x128xf32>
    %182 = arith.divf %180, %181 : vector<8x128xf32>
    %183 = vector.extract_strided_slice %166 {offsets = [0, 256], sizes = [8, 128], strides = [1, 1]} : vector<8x384xf32> to vector<8x128xf32>
    %184 = vector.extract_strided_slice %163 {offsets = [0, 256], sizes = [8, 128], strides = [1, 1]} : vector<8x384xf32> to vector<8x128xf32>
    %185 = arith.mulf %174, %184 : vector<8x128xf32>
    %186 = arith.addf %183, %185 : vector<8x128xf32>
    %187 = math.tanh %186 : vector<8x128xf32>
    %cst_51 = arith.constant 1.000000e+00 : f32
    %188 = vector.broadcast %cst_51 : f32 to vector<8x128xf32>
    %189 = arith.subf %188, %182 : vector<8x128xf32>
    %190 = arith.mulf %189, %187 : vector<8x128xf32>
    %191 = arith.mulf %182, %124 : vector<8x128xf32>
    %192 = arith.addf %190, %191 : vector<8x128xf32>
    %193 = arith.truncf %192 : vector<8x128xf32> to vector<8x128xbf16>
    %cst_52 = arith.constant dense<0.000000e+00> : vector<8x384xf32>
    %194 = tpu.matmul %193, %4, %cst_52 {dimension_numbers = #tpu.dot_dimension_numbers<[1], [0], [0], [1], [0, 0, 1, 1], [], []>} : vector<8x128xbf16>, vector<128x384xbf16>, vector<8x384xf32> -> vector<8x384xf32>
    %195 = arith.addf %194, %17 : vector<8x384xf32>
    %196 = vector.extract_strided_slice %195 {offsets = [0, 0], sizes = [8, 128], strides = [1, 1]} : vector<8x384xf32> to vector<8x128xf32>
    %197 = vector.extract_strided_slice %160 {offsets = [0, 0], sizes = [8, 128], strides = [1, 1]} : vector<8x384xf32> to vector<8x128xf32>
    %198 = arith.addf %196, %197 : vector<8x128xf32>
    %199 = arith.negf %198 : vector<8x128xf32>
    %200 = math.exp %199 : vector<8x128xf32>
    %cst_53 = arith.constant 1.000000e+00 : f32
    %201 = vector.broadcast %cst_53 : f32 to vector<8x128xf32>
    %202 = arith.addf %201, %200 : vector<8x128xf32>
    %203 = arith.divf %201, %202 : vector<8x128xf32>
    %204 = vector.extract_strided_slice %195 {offsets = [0, 128], sizes = [8, 128], strides = [1, 1]} : vector<8x384xf32> to vector<8x128xf32>
    %205 = vector.extract_strided_slice %160 {offsets = [0, 128], sizes = [8, 128], strides = [1, 1]} : vector<8x384xf32> to vector<8x128xf32>
    %206 = arith.addf %204, %205 : vector<8x128xf32>
    %207 = arith.negf %206 : vector<8x128xf32>
    %208 = math.exp %207 : vector<8x128xf32>
    %cst_54 = arith.constant 1.000000e+00 : f32
    %209 = vector.broadcast %cst_54 : f32 to vector<8x128xf32>
    %210 = arith.addf %209, %208 : vector<8x128xf32>
    %211 = arith.divf %209, %210 : vector<8x128xf32>
    %212 = vector.extract_strided_slice %195 {offsets = [0, 256], sizes = [8, 128], strides = [1, 1]} : vector<8x384xf32> to vector<8x128xf32>
    %213 = vector.extract_strided_slice %160 {offsets = [0, 256], sizes = [8, 128], strides = [1, 1]} : vector<8x384xf32> to vector<8x128xf32>
    %214 = arith.mulf %203, %213 : vector<8x128xf32>
    %215 = arith.addf %212, %214 : vector<8x128xf32>
    %216 = math.tanh %215 : vector<8x128xf32>
    %cst_55 = arith.constant 1.000000e+00 : f32
    %217 = vector.broadcast %cst_55 : f32 to vector<8x128xf32>
    %218 = arith.subf %217, %211 : vector<8x128xf32>
    %219 = arith.mulf %218, %216 : vector<8x128xf32>
    %220 = arith.mulf %211, %153 : vector<8x128xf32>
    %221 = arith.addf %219, %220 : vector<8x128xf32>
    %222 = arith.index_cast %c2_i32 : i32 to index
    %c0_56 = arith.constant 0 : index
    %c0_57 = arith.constant 0 : index
    %223 = vector.load %arg8[%222, %c0_56, %c0_57] : memref<8x8x128xf32, #tpu.memory_space<vmem>>, vector<1x8x128xf32>
    %224 = vector.shape_cast %223 : vector<1x8x128xf32> to vector<8x128xf32>
    %225 = vector.shape_cast %221 : vector<8x128xf32> to vector<1x8x128xf32>
    tpu.vector_store %arg8[%222, %c0_56, %c0_57], %225 {strides = array<i32>} : memref<8x8x128xf32, #tpu.memory_space<vmem>>, vector<1x8x128xf32>,
    %c3_i32 = arith.constant 3 : i32
    %226 = arith.truncf %221 : vector<8x128xf32> to vector<8x128xbf16>
    %cst_58 = arith.constant dense<0.000000e+00> : vector<8x384xf32>
    %227 = tpu.matmul %226, %5, %cst_58 {dimension_numbers = #tpu.dot_dimension_numbers<[1], [0], [0], [1], [0, 0, 1, 1], [], []>} : vector<8x128xbf16>, vector<128x384xbf16>, vector<8x384xf32> -> vector<8x384xf32>
    %228 = arith.addf %227, %13 : vector<8x384xf32>
    %229 = arith.truncf %192 : vector<8x128xf32> to vector<8x128xbf16>
    %cst_59 = arith.constant dense<0.000000e+00> : vector<8x384xf32>
    %230 = tpu.matmul %229, %3, %cst_59 {dimension_numbers = #tpu.dot_dimension_numbers<[1], [0], [0], [1], [0, 0, 1, 1], [], []>} : vector<8x128xbf16>, vector<128x384xbf16>, vector<8x384xf32> -> vector<8x384xf32>
    %231 = arith.addf %230, %9 : vector<8x384xf32>
    %232 = arith.index_cast %c3_i32 : i32 to index
    %c0_60 = arith.constant 0 : index
    %c0_61 = arith.constant 0 : index
    %233 = vector.load %arg2[%232, %c0_60, %c0_61] : memref<8x8x384xf32, #tpu.memory_space<vmem>>, vector<1x8x384xf32>
    %234 = vector.shape_cast %233 : vector<1x8x384xf32> to vector<8x384xf32>
    %235 = vector.extract_strided_slice %234 {offsets = [0, 0], sizes = [8, 128], strides = [1, 1]} : vector<8x384xf32> to vector<8x128xf32>
    %236 = vector.extract_strided_slice %231 {offsets = [0, 0], sizes = [8, 128], strides = [1, 1]} : vector<8x384xf32> to vector<8x128xf32>
    %237 = arith.addf %235, %236 : vector<8x128xf32>
    %238 = arith.negf %237 : vector<8x128xf32>
    %239 = math.exp %238 : vector<8x128xf32>
    %cst_62 = arith.constant 1.000000e+00 : f32
    %240 = vector.broadcast %cst_62 : f32 to vector<8x128xf32>
    %241 = arith.addf %240, %239 : vector<8x128xf32>
    %242 = arith.divf %240, %241 : vector<8x128xf32>
    %243 = vector.extract_strided_slice %234 {offsets = [0, 128], sizes = [8, 128], strides = [1, 1]} : vector<8x384xf32> to vector<8x128xf32>
    %244 = vector.extract_strided_slice %231 {offsets = [0, 128], sizes = [8, 128], strides = [1, 1]} : vector<8x384xf32> to vector<8x128xf32>
    %245 = arith.addf %243, %244 : vector<8x128xf32>
    %246 = arith.negf %245 : vector<8x128xf32>
    %247 = math.exp %246 : vector<8x128xf32>
    %cst_63 = arith.constant 1.000000e+00 : f32
    %248 = vector.broadcast %cst_63 : f32 to vector<8x128xf32>
    %249 = arith.addf %248, %247 : vector<8x128xf32>
    %250 = arith.divf %248, %249 : vector<8x128xf32>
    %251 = vector.extract_strided_slice %234 {offsets = [0, 256], sizes = [8, 128], strides = [1, 1]} : vector<8x384xf32> to vector<8x128xf32>
    %252 = vector.extract_strided_slice %231 {offsets = [0, 256], sizes = [8, 128], strides = [1, 1]} : vector<8x384xf32> to vector<8x128xf32>
    %253 = arith.mulf %242, %252 : vector<8x128xf32>
    %254 = arith.addf %251, %253 : vector<8x128xf32>
    %255 = math.tanh %254 : vector<8x128xf32>
    %cst_64 = arith.constant 1.000000e+00 : f32
    %256 = vector.broadcast %cst_64 : f32 to vector<8x128xf32>
    %257 = arith.subf %256, %250 : vector<8x128xf32>
    %258 = arith.mulf %257, %255 : vector<8x128xf32>
    %259 = arith.mulf %250, %192 : vector<8x128xf32>
    %260 = arith.addf %258, %259 : vector<8x128xf32>
    %261 = arith.truncf %260 : vector<8x128xf32> to vector<8x128xbf16>
    %cst_65 = arith.constant dense<0.000000e+00> : vector<8x384xf32>
    %262 = tpu.matmul %261, %4, %cst_65 {dimension_numbers = #tpu.dot_dimension_numbers<[1], [0], [0], [1], [0, 0, 1, 1], [], []>} : vector<8x128xbf16>, vector<128x384xbf16>, vector<8x384xf32> -> vector<8x384xf32>
    %263 = arith.addf %262, %17 : vector<8x384xf32>
    %264 = vector.extract_strided_slice %263 {offsets = [0, 0], sizes = [8, 128], strides = [1, 1]} : vector<8x384xf32> to vector<8x128xf32>
    %265 = vector.extract_strided_slice %228 {offsets = [0, 0], sizes = [8, 128], strides = [1, 1]} : vector<8x384xf32> to vector<8x128xf32>
    %266 = arith.addf %264, %265 : vector<8x128xf32>
    %267 = arith.negf %266 : vector<8x128xf32>
    %268 = math.exp %267 : vector<8x128xf32>
    %cst_66 = arith.constant 1.000000e+00 : f32
    %269 = vector.broadcast %cst_66 : f32 to vector<8x128xf32>
    %270 = arith.addf %269, %268 : vector<8x128xf32>
    %271 = arith.divf %269, %270 : vector<8x128xf32>
    %272 = vector.extract_strided_slice %263 {offsets = [0, 128], sizes = [8, 128], strides = [1, 1]} : vector<8x384xf32> to vector<8x128xf32>
    %273 = vector.extract_strided_slice %228 {offsets = [0, 128], sizes = [8, 128], strides = [1, 1]} : vector<8x384xf32> to vector<8x128xf32>
    %274 = arith.addf %272, %273 : vector<8x128xf32>
    %275 = arith.negf %274 : vector<8x128xf32>
    %276 = math.exp %275 : vector<8x128xf32>
    %cst_67 = arith.constant 1.000000e+00 : f32
    %277 = vector.broadcast %cst_67 : f32 to vector<8x128xf32>
    %278 = arith.addf %277, %276 : vector<8x128xf32>
    %279 = arith.divf %277, %278 : vector<8x128xf32>
    %280 = vector.extract_strided_slice %263 {offsets = [0, 256], sizes = [8, 128], strides = [1, 1]} : vector<8x384xf32> to vector<8x128xf32>
    %281 = vector.extract_strided_slice %228 {offsets = [0, 256], sizes = [8, 128], strides = [1, 1]} : vector<8x384xf32> to vector<8x128xf32>
    %282 = arith.mulf %271, %281 : vector<8x128xf32>
    %283 = arith.addf %280, %282 : vector<8x128xf32>
    %284 = math.tanh %283 : vector<8x128xf32>
    %cst_68 = arith.constant 1.000000e+00 : f32
    %285 = vector.broadcast %cst_68 : f32 to vector<8x128xf32>
    %286 = arith.subf %285, %279 : vector<8x128xf32>
    %287 = arith.mulf %286, %284 : vector<8x128xf32>
    %288 = arith.mulf %279, %221 : vector<8x128xf32>
    %289 = arith.addf %287, %288 : vector<8x128xf32>
    %290 = arith.index_cast %c3_i32 : i32 to index
    %c0_69 = arith.constant 0 : index
    %c0_70 = arith.constant 0 : index
    %291 = vector.load %arg8[%290, %c0_69, %c0_70] : memref<8x8x128xf32, #tpu.memory_space<vmem>>, vector<1x8x128xf32>
    %292 = vector.shape_cast %291 : vector<1x8x128xf32> to vector<8x128xf32>
    %293 = vector.shape_cast %289 : vector<8x128xf32> to vector<1x8x128xf32>
    tpu.vector_store %arg8[%290, %c0_69, %c0_70], %293 {strides = array<i32>} : memref<8x8x128xf32, #tpu.memory_space<vmem>>, vector<1x8x128xf32>,
    %c4_i32 = arith.constant 4 : i32
    %294 = arith.truncf %289 : vector<8x128xf32> to vector<8x128xbf16>
    %cst_71 = arith.constant dense<0.000000e+00> : vector<8x384xf32>
    %295 = tpu.matmul %294, %5, %cst_71 {dimension_numbers = #tpu.dot_dimension_numbers<[1], [0], [0], [1], [0, 0, 1, 1], [], []>} : vector<8x128xbf16>, vector<128x384xbf16>, vector<8x384xf32> -> vector<8x384xf32>
    %296 = arith.addf %295, %13 : vector<8x384xf32>
    %297 = arith.truncf %260 : vector<8x128xf32> to vector<8x128xbf16>
    %cst_72 = arith.constant dense<0.000000e+00> : vector<8x384xf32>
    %298 = tpu.matmul %297, %3, %cst_72 {dimension_numbers = #tpu.dot_dimension_numbers<[1], [0], [0], [1], [0, 0, 1, 1], [], []>} : vector<8x128xbf16>, vector<128x384xbf16>, vector<8x384xf32> -> vector<8x384xf32>
    %299 = arith.addf %298, %9 : vector<8x384xf32>
    %300 = arith.index_cast %c4_i32 : i32 to index
    %c0_73 = arith.constant 0 : index
    %c0_74 = arith.constant 0 : index
    %301 = vector.load %arg2[%300, %c0_73, %c0_74] : memref<8x8x384xf32, #tpu.memory_space<vmem>>, vector<1x8x384xf32>
    %302 = vector.shape_cast %301 : vector<1x8x384xf32> to vector<8x384xf32>
    %303 = vector.extract_strided_slice %302 {offsets = [0, 0], sizes = [8, 128], strides = [1, 1]} : vector<8x384xf32> to vector<8x128xf32>
    %304 = vector.extract_strided_slice %299 {offsets = [0, 0], sizes = [8, 128], strides = [1, 1]} : vector<8x384xf32> to vector<8x128xf32>
    %305 = arith.addf %303, %304 : vector<8x128xf32>
    %306 = arith.negf %305 : vector<8x128xf32>
    %307 = math.exp %306 : vector<8x128xf32>
    %cst_75 = arith.constant 1.000000e+00 : f32
    %308 = vector.broadcast %cst_75 : f32 to vector<8x128xf32>
    %309 = arith.addf %308, %307 : vector<8x128xf32>
    %310 = arith.divf %308, %309 : vector<8x128xf32>
    %311 = vector.extract_strided_slice %302 {offsets = [0, 128], sizes = [8, 128], strides = [1, 1]} : vector<8x384xf32> to vector<8x128xf32>
    %312 = vector.extract_strided_slice %299 {offsets = [0, 128], sizes = [8, 128], strides = [1, 1]} : vector<8x384xf32> to vector<8x128xf32>
    %313 = arith.addf %311, %312 : vector<8x128xf32>
    %314 = arith.negf %313 : vector<8x128xf32>
    %315 = math.exp %314 : vector<8x128xf32>
    %cst_76 = arith.constant 1.000000e+00 : f32
    %316 = vector.broadcast %cst_76 : f32 to vector<8x128xf32>
    %317 = arith.addf %316, %315 : vector<8x128xf32>
    %318 = arith.divf %316, %317 : vector<8x128xf32>
    %319 = vector.extract_strided_slice %302 {offsets = [0, 256], sizes = [8, 128], strides = [1, 1]} : vector<8x384xf32> to vector<8x128xf32>
    %320 = vector.extract_strided_slice %299 {offsets = [0, 256], sizes = [8, 128], strides = [1, 1]} : vector<8x384xf32> to vector<8x128xf32>
    %321 = arith.mulf %310, %320 : vector<8x128xf32>
    %322 = arith.addf %319, %321 : vector<8x128xf32>
    %323 = math.tanh %322 : vector<8x128xf32>
    %cst_77 = arith.constant 1.000000e+00 : f32
    %324 = vector.broadcast %cst_77 : f32 to vector<8x128xf32>
    %325 = arith.subf %324, %318 : vector<8x128xf32>
    %326 = arith.mulf %325, %323 : vector<8x128xf32>
    %327 = arith.mulf %318, %260 : vector<8x128xf32>
    %328 = arith.addf %326, %327 : vector<8x128xf32>
    %329 = arith.truncf %328 : vector<8x128xf32> to vector<8x128xbf16>
    %cst_78 = arith.constant dense<0.000000e+00> : vector<8x384xf32>
    %330 = tpu.matmul %329, %4, %cst_78 {dimension_numbers = #tpu.dot_dimension_numbers<[1], [0], [0], [1], [0, 0, 1, 1], [], []>} : vector<8x128xbf16>, vector<128x384xbf16>, vector<8x384xf32> -> vector<8x384xf32>
    %331 = arith.addf %330, %17 : vector<8x384xf32>
    %332 = vector.extract_strided_slice %331 {offsets = [0, 0], sizes = [8, 128], strides = [1, 1]} : vector<8x384xf32> to vector<8x128xf32>
    %333 = vector.extract_strided_slice %296 {offsets = [0, 0], sizes = [8, 128], strides = [1, 1]} : vector<8x384xf32> to vector<8x128xf32>
    %334 = arith.addf %332, %333 : vector<8x128xf32>
    %335 = arith.negf %334 : vector<8x128xf32>
    %336 = math.exp %335 : vector<8x128xf32>
    %cst_79 = arith.constant 1.000000e+00 : f32
    %337 = vector.broadcast %cst_79 : f32 to vector<8x128xf32>
    %338 = arith.addf %337, %336 : vector<8x128xf32>
    %339 = arith.divf %337, %338 : vector<8x128xf32>
    %340 = vector.extract_strided_slice %331 {offsets = [0, 128], sizes = [8, 128], strides = [1, 1]} : vector<8x384xf32> to vector<8x128xf32>
    %341 = vector.extract_strided_slice %296 {offsets = [0, 128], sizes = [8, 128], strides = [1, 1]} : vector<8x384xf32> to vector<8x128xf32>
    %342 = arith.addf %340, %341 : vector<8x128xf32>
    %343 = arith.negf %342 : vector<8x128xf32>
    %344 = math.exp %343 : vector<8x128xf32>
    %cst_80 = arith.constant 1.000000e+00 : f32
    %345 = vector.broadcast %cst_80 : f32 to vector<8x128xf32>
    %346 = arith.addf %345, %344 : vector<8x128xf32>
    %347 = arith.divf %345, %346 : vector<8x128xf32>
    %348 = vector.extract_strided_slice %331 {offsets = [0, 256], sizes = [8, 128], strides = [1, 1]} : vector<8x384xf32> to vector<8x128xf32>
    %349 = vector.extract_strided_slice %296 {offsets = [0, 256], sizes = [8, 128], strides = [1, 1]} : vector<8x384xf32> to vector<8x128xf32>
    %350 = arith.mulf %339, %349 : vector<8x128xf32>
    %351 = arith.addf %348, %350 : vector<8x128xf32>
    %352 = math.tanh %351 : vector<8x128xf32>
    %cst_81 = arith.constant 1.000000e+00 : f32
    %353 = vector.broadcast %cst_81 : f32 to vector<8x128xf32>
    %354 = arith.subf %353, %347 : vector<8x128xf32>
    %355 = arith.mulf %354, %352 : vector<8x128xf32>
    %356 = arith.mulf %347, %289 : vector<8x128xf32>
    %357 = arith.addf %355, %356 : vector<8x128xf32>
    %358 = arith.index_cast %c4_i32 : i32 to index
    %c0_82 = arith.constant 0 : index
    %c0_83 = arith.constant 0 : index
    %359 = vector.load %arg8[%358, %c0_82, %c0_83] : memref<8x8x128xf32, #tpu.memory_space<vmem>>, vector<1x8x128xf32>
    %360 = vector.shape_cast %359 : vector<1x8x128xf32> to vector<8x128xf32>
    %361 = vector.shape_cast %357 : vector<8x128xf32> to vector<1x8x128xf32>
    tpu.vector_store %arg8[%358, %c0_82, %c0_83], %361 {strides = array<i32>} : memref<8x8x128xf32, #tpu.memory_space<vmem>>, vector<1x8x128xf32>,
    %c5_i32 = arith.constant 5 : i32
    %362 = arith.truncf %357 : vector<8x128xf32> to vector<8x128xbf16>
    %cst_84 = arith.constant dense<0.000000e+00> : vector<8x384xf32>
    %363 = tpu.matmul %362, %5, %cst_84 {dimension_numbers = #tpu.dot_dimension_numbers<[1], [0], [0], [1], [0, 0, 1, 1], [], []>} : vector<8x128xbf16>, vector<128x384xbf16>, vector<8x384xf32> -> vector<8x384xf32>
    %364 = arith.addf %363, %13 : vector<8x384xf32>
    %365 = arith.truncf %328 : vector<8x128xf32> to vector<8x128xbf16>
    %cst_85 = arith.constant dense<0.000000e+00> : vector<8x384xf32>
    %366 = tpu.matmul %365, %3, %cst_85 {dimension_numbers = #tpu.dot_dimension_numbers<[1], [0], [0], [1], [0, 0, 1, 1], [], []>} : vector<8x128xbf16>, vector<128x384xbf16>, vector<8x384xf32> -> vector<8x384xf32>
    %367 = arith.addf %366, %9 : vector<8x384xf32>
    %368 = arith.index_cast %c5_i32 : i32 to index
    %c0_86 = arith.constant 0 : index
    %c0_87 = arith.constant 0 : index
    %369 = vector.load %arg2[%368, %c0_86, %c0_87] : memref<8x8x384xf32, #tpu.memory_space<vmem>>, vector<1x8x384xf32>
    %370 = vector.shape_cast %369 : vector<1x8x384xf32> to vector<8x384xf32>
    %371 = vector.extract_strided_slice %370 {offsets = [0, 0], sizes = [8, 128], strides = [1, 1]} : vector<8x384xf32> to vector<8x128xf32>
    %372 = vector.extract_strided_slice %367 {offsets = [0, 0], sizes = [8, 128], strides = [1, 1]} : vector<8x384xf32> to vector<8x128xf32>
    %373 = arith.addf %371, %372 : vector<8x128xf32>
    %374 = arith.negf %373 : vector<8x128xf32>
    %375 = math.exp %374 : vector<8x128xf32>
    %cst_88 = arith.constant 1.000000e+00 : f32
    %376 = vector.broadcast %cst_88 : f32 to vector<8x128xf32>
    %377 = arith.addf %376, %375 : vector<8x128xf32>
    %378 = arith.divf %376, %377 : vector<8x128xf32>
    %379 = vector.extract_strided_slice %370 {offsets = [0, 128], sizes = [8, 128], strides = [1, 1]} : vector<8x384xf32> to vector<8x128xf32>
    %380 = vector.extract_strided_slice %367 {offsets = [0, 128], sizes = [8, 128], strides = [1, 1]} : vector<8x384xf32> to vector<8x128xf32>
    %381 = arith.addf %379, %380 : vector<8x128xf32>
    %382 = arith.negf %381 : vector<8x128xf32>
    %383 = math.exp %382 : vector<8x128xf32>
    %cst_89 = arith.constant 1.000000e+00 : f32
    %384 = vector.broadcast %cst_89 : f32 to vector<8x128xf32>
    %385 = arith.addf %384, %383 : vector<8x128xf32>
    %386 = arith.divf %384, %385 : vector<8x128xf32>
    %387 = vector.extract_strided_slice %370 {offsets = [0, 256], sizes = [8, 128], strides = [1, 1]} : vector<8x384xf32> to vector<8x128xf32>
    %388 = vector.extract_strided_slice %367 {offsets = [0, 256], sizes = [8, 128], strides = [1, 1]} : vector<8x384xf32> to vector<8x128xf32>
    %389 = arith.mulf %378, %388 : vector<8x128xf32>
    %390 = arith.addf %387, %389 : vector<8x128xf32>
    %391 = math.tanh %390 : vector<8x128xf32>
    %cst_90 = arith.constant 1.000000e+00 : f32
    %392 = vector.broadcast %cst_90 : f32 to vector<8x128xf32>
    %393 = arith.subf %392, %386 : vector<8x128xf32>
    %394 = arith.mulf %393, %391 : vector<8x128xf32>
    %395 = arith.mulf %386, %328 : vector<8x128xf32>
    %396 = arith.addf %394, %395 : vector<8x128xf32>
    %397 = arith.truncf %396 : vector<8x128xf32> to vector<8x128xbf16>
    %cst_91 = arith.constant dense<0.000000e+00> : vector<8x384xf32>
    %398 = tpu.matmul %397, %4, %cst_91 {dimension_numbers = #tpu.dot_dimension_numbers<[1], [0], [0], [1], [0, 0, 1, 1], [], []>} : vector<8x128xbf16>, vector<128x384xbf16>, vector<8x384xf32> -> vector<8x384xf32>
    %399 = arith.addf %398, %17 : vector<8x384xf32>
    %400 = vector.extract_strided_slice %399 {offsets = [0, 0], sizes = [8, 128], strides = [1, 1]} : vector<8x384xf32> to vector<8x128xf32>
    %401 = vector.extract_strided_slice %364 {offsets = [0, 0], sizes = [8, 128], strides = [1, 1]} : vector<8x384xf32> to vector<8x128xf32>
    %402 = arith.addf %400, %401 : vector<8x128xf32>
    %403 = arith.negf %402 : vector<8x128xf32>
    %404 = math.exp %403 : vector<8x128xf32>
    %cst_92 = arith.constant 1.000000e+00 : f32
    %405 = vector.broadcast %cst_92 : f32 to vector<8x128xf32>
    %406 = arith.addf %405, %404 : vector<8x128xf32>
    %407 = arith.divf %405, %406 : vector<8x128xf32>
    %408 = vector.extract_strided_slice %399 {offsets = [0, 128], sizes = [8, 128], strides = [1, 1]} : vector<8x384xf32> to vector<8x128xf32>
    %409 = vector.extract_strided_slice %364 {offsets = [0, 128], sizes = [8, 128], strides = [1, 1]} : vector<8x384xf32> to vector<8x128xf32>
    %410 = arith.addf %408, %409 : vector<8x128xf32>
    %411 = arith.negf %410 : vector<8x128xf32>
    %412 = math.exp %411 : vector<8x128xf32>
    %cst_93 = arith.constant 1.000000e+00 : f32
    %413 = vector.broadcast %cst_93 : f32 to vector<8x128xf32>
    %414 = arith.addf %413, %412 : vector<8x128xf32>
    %415 = arith.divf %413, %414 : vector<8x128xf32>
    %416 = vector.extract_strided_slice %399 {offsets = [0, 256], sizes = [8, 128], strides = [1, 1]} : vector<8x384xf32> to vector<8x128xf32>
    %417 = vector.extract_strided_slice %364 {offsets = [0, 256], sizes = [8, 128], strides = [1, 1]} : vector<8x384xf32> to vector<8x128xf32>
    %418 = arith.mulf %407, %417 : vector<8x128xf32>
    %419 = arith.addf %416, %418 : vector<8x128xf32>
    %420 = math.tanh %419 : vector<8x128xf32>
    %cst_94 = arith.constant 1.000000e+00 : f32
    %421 = vector.broadcast %cst_94 : f32 to vector<8x128xf32>
    %422 = arith.subf %421, %415 : vector<8x128xf32>
    %423 = arith.mulf %422, %420 : vector<8x128xf32>
    %424 = arith.mulf %415, %357 : vector<8x128xf32>
    %425 = arith.addf %423, %424 : vector<8x128xf32>
    %426 = arith.index_cast %c5_i32 : i32 to index
    %c0_95 = arith.constant 0 : index
    %c0_96 = arith.constant 0 : index
    %427 = vector.load %arg8[%426, %c0_95, %c0_96] : memref<8x8x128xf32, #tpu.memory_space<vmem>>, vector<1x8x128xf32>
    %428 = vector.shape_cast %427 : vector<1x8x128xf32> to vector<8x128xf32>
    %429 = vector.shape_cast %425 : vector<8x128xf32> to vector<1x8x128xf32>
    tpu.vector_store %arg8[%426, %c0_95, %c0_96], %429 {strides = array<i32>} : memref<8x8x128xf32, #tpu.memory_space<vmem>>, vector<1x8x128xf32>,
    %c6_i32 = arith.constant 6 : i32
    %430 = arith.truncf %425 : vector<8x128xf32> to vector<8x128xbf16>
    %cst_97 = arith.constant dense<0.000000e+00> : vector<8x384xf32>
    %431 = tpu.matmul %430, %5, %cst_97 {dimension_numbers = #tpu.dot_dimension_numbers<[1], [0], [0], [1], [0, 0, 1, 1], [], []>} : vector<8x128xbf16>, vector<128x384xbf16>, vector<8x384xf32> -> vector<8x384xf32>
    %432 = arith.addf %431, %13 : vector<8x384xf32>
    %433 = arith.truncf %396 : vector<8x128xf32> to vector<8x128xbf16>
    %cst_98 = arith.constant dense<0.000000e+00> : vector<8x384xf32>
    %434 = tpu.matmul %433, %3, %cst_98 {dimension_numbers = #tpu.dot_dimension_numbers<[1], [0], [0], [1], [0, 0, 1, 1], [], []>} : vector<8x128xbf16>, vector<128x384xbf16>, vector<8x384xf32> -> vector<8x384xf32>
    %435 = arith.addf %434, %9 : vector<8x384xf32>
    %436 = arith.index_cast %c6_i32 : i32 to index
    %c0_99 = arith.constant 0 : index
    %c0_100 = arith.constant 0 : index
    %437 = vector.load %arg2[%436, %c0_99, %c0_100] : memref<8x8x384xf32, #tpu.memory_space<vmem>>, vector<1x8x384xf32>
    %438 = vector.shape_cast %437 : vector<1x8x384xf32> to vector<8x384xf32>
    %439 = vector.extract_strided_slice %438 {offsets = [0, 0], sizes = [8, 128], strides = [1, 1]} : vector<8x384xf32> to vector<8x128xf32>
    %440 = vector.extract_strided_slice %435 {offsets = [0, 0], sizes = [8, 128], strides = [1, 1]} : vector<8x384xf32> to vector<8x128xf32>
    %441 = arith.addf %439, %440 : vector<8x128xf32>
    %442 = arith.negf %441 : vector<8x128xf32>
    %443 = math.exp %442 : vector<8x128xf32>
    %cst_101 = arith.constant 1.000000e+00 : f32
    %444 = vector.broadcast %cst_101 : f32 to vector<8x128xf32>
    %445 = arith.addf %444, %443 : vector<8x128xf32>
    %446 = arith.divf %444, %445 : vector<8x128xf32>
    %447 = vector.extract_strided_slice %438 {offsets = [0, 128], sizes = [8, 128], strides = [1, 1]} : vector<8x384xf32> to vector<8x128xf32>
    %448 = vector.extract_strided_slice %435 {offsets = [0, 128], sizes = [8, 128], strides = [1, 1]} : vector<8x384xf32> to vector<8x128xf32>
    %449 = arith.addf %447, %448 : vector<8x128xf32>
    %450 = arith.negf %449 : vector<8x128xf32>
    %451 = math.exp %450 : vector<8x128xf32>
    %cst_102 = arith.constant 1.000000e+00 : f32
    %452 = vector.broadcast %cst_102 : f32 to vector<8x128xf32>
    %453 = arith.addf %452, %451 : vector<8x128xf32>
    %454 = arith.divf %452, %453 : vector<8x128xf32>
    %455 = vector.extract_strided_slice %438 {offsets = [0, 256], sizes = [8, 128], strides = [1, 1]} : vector<8x384xf32> to vector<8x128xf32>
    %456 = vector.extract_strided_slice %435 {offsets = [0, 256], sizes = [8, 128], strides = [1, 1]} : vector<8x384xf32> to vector<8x128xf32>
    %457 = arith.mulf %446, %456 : vector<8x128xf32>
    %458 = arith.addf %455, %457 : vector<8x128xf32>
    %459 = math.tanh %458 : vector<8x128xf32>
    %cst_103 = arith.constant 1.000000e+00 : f32
    %460 = vector.broadcast %cst_103 : f32 to vector<8x128xf32>
    %461 = arith.subf %460, %454 : vector<8x128xf32>
    %462 = arith.mulf %461, %459 : vector<8x128xf32>
    %463 = arith.mulf %454, %396 : vector<8x128xf32>
    %464 = arith.addf %462, %463 : vector<8x128xf32>
    %465 = arith.truncf %464 : vector<8x128xf32> to vector<8x128xbf16>
    %cst_104 = arith.constant dense<0.000000e+00> : vector<8x384xf32>
    %466 = tpu.matmul %465, %4, %cst_104 {dimension_numbers = #tpu.dot_dimension_numbers<[1], [0], [0], [1], [0, 0, 1, 1], [], []>} : vector<8x128xbf16>, vector<128x384xbf16>, vector<8x384xf32> -> vector<8x384xf32>
    %467 = arith.addf %466, %17 : vector<8x384xf32>
    %468 = vector.extract_strided_slice %467 {offsets = [0, 0], sizes = [8, 128], strides = [1, 1]} : vector<8x384xf32> to vector<8x128xf32>
    %469 = vector.extract_strided_slice %432 {offsets = [0, 0], sizes = [8, 128], strides = [1, 1]} : vector<8x384xf32> to vector<8x128xf32>
    %470 = arith.addf %468, %469 : vector<8x128xf32>
    %471 = arith.negf %470 : vector<8x128xf32>
    %472 = math.exp %471 : vector<8x128xf32>
    %cst_105 = arith.constant 1.000000e+00 : f32
    %473 = vector.broadcast %cst_105 : f32 to vector<8x128xf32>
    %474 = arith.addf %473, %472 : vector<8x128xf32>
    %475 = arith.divf %473, %474 : vector<8x128xf32>
    %476 = vector.extract_strided_slice %467 {offsets = [0, 128], sizes = [8, 128], strides = [1, 1]} : vector<8x384xf32> to vector<8x128xf32>
    %477 = vector.extract_strided_slice %432 {offsets = [0, 128], sizes = [8, 128], strides = [1, 1]} : vector<8x384xf32> to vector<8x128xf32>
    %478 = arith.addf %476, %477 : vector<8x128xf32>
    %479 = arith.negf %478 : vector<8x128xf32>
    %480 = math.exp %479 : vector<8x128xf32>
    %cst_106 = arith.constant 1.000000e+00 : f32
    %481 = vector.broadcast %cst_106 : f32 to vector<8x128xf32>
    %482 = arith.addf %481, %480 : vector<8x128xf32>
    %483 = arith.divf %481, %482 : vector<8x128xf32>
    %484 = vector.extract_strided_slice %467 {offsets = [0, 256], sizes = [8, 128], strides = [1, 1]} : vector<8x384xf32> to vector<8x128xf32>
    %485 = vector.extract_strided_slice %432 {offsets = [0, 256], sizes = [8, 128], strides = [1, 1]} : vector<8x384xf32> to vector<8x128xf32>
    %486 = arith.mulf %475, %485 : vector<8x128xf32>
    %487 = arith.addf %484, %486 : vector<8x128xf32>
    %488 = math.tanh %487 : vector<8x128xf32>
    %cst_107 = arith.constant 1.000000e+00 : f32
    %489 = vector.broadcast %cst_107 : f32 to vector<8x128xf32>
    %490 = arith.subf %489, %483 : vector<8x128xf32>
    %491 = arith.mulf %490, %488 : vector<8x128xf32>
    %492 = arith.mulf %483, %425 : vector<8x128xf32>
    %493 = arith.addf %491, %492 : vector<8x128xf32>
    %494 = arith.index_cast %c6_i32 : i32 to index
    %c0_108 = arith.constant 0 : index
    %c0_109 = arith.constant 0 : index
    %495 = vector.load %arg8[%494, %c0_108, %c0_109] : memref<8x8x128xf32, #tpu.memory_space<vmem>>, vector<1x8x128xf32>
    %496 = vector.shape_cast %495 : vector<1x8x128xf32> to vector<8x128xf32>
    %497 = vector.shape_cast %493 : vector<8x128xf32> to vector<1x8x128xf32>
    tpu.vector_store %arg8[%494, %c0_108, %c0_109], %497 {strides = array<i32>} : memref<8x8x128xf32, #tpu.memory_space<vmem>>, vector<1x8x128xf32>,
    %c7_i32 = arith.constant 7 : i32
    %498 = arith.truncf %493 : vector<8x128xf32> to vector<8x128xbf16>
    %cst_110 = arith.constant dense<0.000000e+00> : vector<8x384xf32>
    %499 = tpu.matmul %498, %5, %cst_110 {dimension_numbers = #tpu.dot_dimension_numbers<[1], [0], [0], [1], [0, 0, 1, 1], [], []>} : vector<8x128xbf16>, vector<128x384xbf16>, vector<8x384xf32> -> vector<8x384xf32>
    %500 = arith.addf %499, %13 : vector<8x384xf32>
    %501 = arith.truncf %464 : vector<8x128xf32> to vector<8x128xbf16>
    %cst_111 = arith.constant dense<0.000000e+00> : vector<8x384xf32>
    %502 = tpu.matmul %501, %3, %cst_111 {dimension_numbers = #tpu.dot_dimension_numbers<[1], [0], [0], [1], [0, 0, 1, 1], [], []>} : vector<8x128xbf16>, vector<128x384xbf16>, vector<8x384xf32> -> vector<8x384xf32>
    %503 = arith.addf %502, %9 : vector<8x384xf32>
    %504 = arith.index_cast %c7_i32 : i32 to index
    %c0_112 = arith.constant 0 : index
    %c0_113 = arith.constant 0 : index
    %505 = vector.load %arg2[%504, %c0_112, %c0_113] : memref<8x8x384xf32, #tpu.memory_space<vmem>>, vector<1x8x384xf32>
    %506 = vector.shape_cast %505 : vector<1x8x384xf32> to vector<8x384xf32>
    %507 = vector.extract_strided_slice %506 {offsets = [0, 0], sizes = [8, 128], strides = [1, 1]} : vector<8x384xf32> to vector<8x128xf32>
    %508 = vector.extract_strided_slice %503 {offsets = [0, 0], sizes = [8, 128], strides = [1, 1]} : vector<8x384xf32> to vector<8x128xf32>
    %509 = arith.addf %507, %508 : vector<8x128xf32>
    %510 = arith.negf %509 : vector<8x128xf32>
    %511 = math.exp %510 : vector<8x128xf32>
    %cst_114 = arith.constant 1.000000e+00 : f32
    %512 = vector.broadcast %cst_114 : f32 to vector<8x128xf32>
    %513 = arith.addf %512, %511 : vector<8x128xf32>
    %514 = arith.divf %512, %513 : vector<8x128xf32>
    %515 = vector.extract_strided_slice %506 {offsets = [0, 128], sizes = [8, 128], strides = [1, 1]} : vector<8x384xf32> to vector<8x128xf32>
    %516 = vector.extract_strided_slice %503 {offsets = [0, 128], sizes = [8, 128], strides = [1, 1]} : vector<8x384xf32> to vector<8x128xf32>
    %517 = arith.addf %515, %516 : vector<8x128xf32>
    %518 = arith.negf %517 : vector<8x128xf32>
    %519 = math.exp %518 : vector<8x128xf32>
    %cst_115 = arith.constant 1.000000e+00 : f32
    %520 = vector.broadcast %cst_115 : f32 to vector<8x128xf32>
    %521 = arith.addf %520, %519 : vector<8x128xf32>
    %522 = arith.divf %520, %521 : vector<8x128xf32>
    %523 = vector.extract_strided_slice %506 {offsets = [0, 256], sizes = [8, 128], strides = [1, 1]} : vector<8x384xf32> to vector<8x128xf32>
    %524 = vector.extract_strided_slice %503 {offsets = [0, 256], sizes = [8, 128], strides = [1, 1]} : vector<8x384xf32> to vector<8x128xf32>
    %525 = arith.mulf %514, %524 : vector<8x128xf32>
    %526 = arith.addf %523, %525 : vector<8x128xf32>
    %527 = math.tanh %526 : vector<8x128xf32>
    %cst_116 = arith.constant 1.000000e+00 : f32
    %528 = vector.broadcast %cst_116 : f32 to vector<8x128xf32>
    %529 = arith.subf %528, %522 : vector<8x128xf32>
    %530 = arith.mulf %529, %527 : vector<8x128xf32>
    %531 = arith.mulf %522, %464 : vector<8x128xf32>
    %532 = arith.addf %530, %531 : vector<8x128xf32>
    %533 = arith.truncf %532 : vector<8x128xf32> to vector<8x128xbf16>
    %cst_117 = arith.constant dense<0.000000e+00> : vector<8x384xf32>
    %534 = tpu.matmul %533, %4, %cst_117 {dimension_numbers = #tpu.dot_dimension_numbers<[1], [0], [0], [1], [0, 0, 1, 1], [], []>} : vector<8x128xbf16>, vector<128x384xbf16>, vector<8x384xf32> -> vector<8x384xf32>
    %535 = arith.addf %534, %17 : vector<8x384xf32>
    %536 = vector.extract_strided_slice %535 {offsets = [0, 0], sizes = [8, 128], strides = [1, 1]} : vector<8x384xf32> to vector<8x128xf32>
    %537 = vector.extract_strided_slice %500 {offsets = [0, 0], sizes = [8, 128], strides = [1, 1]} : vector<8x384xf32> to vector<8x128xf32>
    %538 = arith.addf %536, %537 : vector<8x128xf32>
    %539 = arith.negf %538 : vector<8x128xf32>
    %540 = math.exp %539 : vector<8x128xf32>
    %cst_118 = arith.constant 1.000000e+00 : f32
    %541 = vector.broadcast %cst_118 : f32 to vector<8x128xf32>
    %542 = arith.addf %541, %540 : vector<8x128xf32>
    %543 = arith.divf %541, %542 : vector<8x128xf32>
    %544 = vector.extract_strided_slice %535 {offsets = [0, 128], sizes = [8, 128], strides = [1, 1]} : vector<8x384xf32> to vector<8x128xf32>
    %545 = vector.extract_strided_slice %500 {offsets = [0, 128], sizes = [8, 128], strides = [1, 1]} : vector<8x384xf32> to vector<8x128xf32>
    %546 = arith.addf %544, %545 : vector<8x128xf32>
    %547 = arith.negf %546 : vector<8x128xf32>
    %548 = math.exp %547 : vector<8x128xf32>
    %cst_119 = arith.constant 1.000000e+00 : f32
    %549 = vector.broadcast %cst_119 : f32 to vector<8x128xf32>
    %550 = arith.addf %549, %548 : vector<8x128xf32>
    %551 = arith.divf %549, %550 : vector<8x128xf32>
    %552 = vector.extract_strided_slice %535 {offsets = [0, 256], sizes = [8, 128], strides = [1, 1]} : vector<8x384xf32> to vector<8x128xf32>
    %553 = vector.extract_strided_slice %500 {offsets = [0, 256], sizes = [8, 128], strides = [1, 1]} : vector<8x384xf32> to vector<8x128xf32>
    %554 = arith.mulf %543, %553 : vector<8x128xf32>
    %555 = arith.addf %552, %554 : vector<8x128xf32>
    %556 = math.tanh %555 : vector<8x128xf32>
    %cst_120 = arith.constant 1.000000e+00 : f32
    %557 = vector.broadcast %cst_120 : f32 to vector<8x128xf32>
    %558 = arith.subf %557, %551 : vector<8x128xf32>
    %559 = arith.mulf %558, %556 : vector<8x128xf32>
    %560 = arith.mulf %551, %493 : vector<8x128xf32>
    %561 = arith.addf %559, %560 : vector<8x128xf32>
    %562 = arith.index_cast %c7_i32 : i32 to index
    %c0_121 = arith.constant 0 : index
    %c0_122 = arith.constant 0 : index
    %563 = vector.load %arg8[%562, %c0_121, %c0_122] : memref<8x8x128xf32, #tpu.memory_space<vmem>>, vector<1x8x128xf32>
    %564 = vector.shape_cast %563 : vector<1x8x128xf32> to vector<8x128xf32>
    %565 = vector.shape_cast %561 : vector<8x128xf32> to vector<1x8x128xf32>
    tpu.vector_store %arg8[%562, %c0_121, %c0_122], %565 {strides = array<i32>} : memref<8x8x128xf32, #tpu.memory_space<vmem>>, vector<1x8x128xf32>,
    %c8_i32 = arith.constant 8 : i32
    %c0_123 = arith.constant 0 : index
    %c0_124 = arith.constant 0 : index
    %c0_125 = arith.constant 0 : index
    %566 = vector.load %arg10[%c0_123, %c0_124, %c0_125] : memref<2x8x128xf32, #tpu.memory_space<vmem>>, vector<1x8x128xf32>
    %567 = vector.shape_cast %566 : vector<1x8x128xf32> to vector<8x128xf32>
    %568 = vector.shape_cast %532 : vector<8x128xf32> to vector<1x8x128xf32>
    tpu.vector_store %arg10[%c0_123, %c0_124, %c0_125], %568 {strides = array<i32>} : memref<2x8x128xf32, #tpu.memory_space<vmem>>, vector<1x8x128xf32>,
    %c1_126 = arith.constant 1 : index
    %c0_127 = arith.constant 0 : index
    %c0_128 = arith.constant 0 : index
    %569 = vector.load %arg10[%c1_126, %c0_127, %c0_128] : memref<2x8x128xf32, #tpu.memory_space<vmem>>, vector<1x8x128xf32>
    %570 = vector.shape_cast %569 : vector<1x8x128xf32> to vector<8x128xf32>
    %571 = vector.shape_cast %561 : vector<8x128xf32> to vector<1x8x128xf32>
    tpu.vector_store %arg10[%c1_126, %c0_127, %c0_128], %571 {strides = array<i32>} : memref<2x8x128xf32, #tpu.memory_space<vmem>>, vector<1x8x128xf32>,
    %c0_i32_129 = arith.constant 0 : i32
    %572 = arith.cmpi eq, %arg1, %c0_i32_129 : i32
    %573 = arith.extui %572 : i1 to i32
    %c0_i32_130 = arith.constant 0 : i32
    %574 = arith.cmpi ne, %573, %c0_i32_130 : i32
    scf.if %574 {
      %c0_131 = arith.constant 0 : index
      %c0_132 = arith.constant 0 : index
      %c0_133 = arith.constant 0 : index
      %575 = vector.load %arg10[%c0_131, %c0_132, %c0_133] : memref<2x8x128xf32, #tpu.memory_space<vmem>>, vector<2x8x128xf32>
      %c0_134 = arith.constant 0 : index
      %c0_135 = arith.constant 0 : index
      %c0_136 = arith.constant 0 : index
      %576 = vector.load %arg9[%c0_134, %c0_135, %c0_136] : memref<2x8x128xf32, #tpu.memory_space<vmem>>, vector<2x8x128xf32>
      tpu.vector_store %arg9[%c0_134, %c0_135, %c0_136], %575 {strides = array<i32>} : memref<2x8x128xf32, #tpu.memory_space<vmem>>, vector<2x8x128xf32>,
    } else {
    }
    return
  }
  func.func @transform_0(%arg0: i32, %arg1: i32) -> (i32, i32, i32) {
    %c0_i32 = arith.constant 0 : i32
    %c0_i32_0 = arith.constant 0 : i32
    return %arg1, %arg0, %c0_i32 : i32, i32, i32
  }
  func.func @transform_1(%arg0: i32, %arg1: i32) -> (i32, i32, i32) {
    %c0_i32 = arith.constant 0 : i32
    %c0_i32_0 = arith.constant 0 : i32
    %c0_i32_1 = arith.constant 0 : i32
    return %c0_i32, %arg0, %c0_i32_0 : i32, i32, i32
  }
  func.func @transform_2(%arg0: i32, %arg1: i32) -> (i32, i32) {
    %c0_i32 = arith.constant 0 : i32
    %c0_i32_0 = arith.constant 0 : i32
    %c0_i32_1 = arith.constant 0 : i32
    return %c0_i32, %c0_i32_0 : i32, i32
  }
  func.func @transform_3(%arg0: i32, %arg1: i32) -> (i32, i32) {
    %c0_i32 = arith.constant 0 : i32
    %c0_i32_0 = arith.constant 0 : i32
    %c0_i32_1 = arith.constant 0 : i32
    return %c0_i32, %c0_i32_0 : i32, i32
  }
  func.func @transform_4(%arg0: i32, %arg1: i32) -> (i32, i32) {
    %c0_i32 = arith.constant 0 : i32
    %c0_i32_0 = arith.constant 0 : i32
    %c0_i32_1 = arith.constant 0 : i32
    return %c0_i32, %c0_i32_0 : i32, i32
  }
  func.func @transform_5(%arg0: i32, %arg1: i32) -> (i32, i32, i32) {
    %c0_i32 = arith.constant 0 : i32
    %c0_i32_0 = arith.constant 0 : i32
    %c0_i32_1 = arith.constant 0 : i32
    %c0_i32_2 = arith.constant 0 : i32
    return %c0_i32, %c0_i32_0, %c0_i32_1 : i32, i32, i32
  }
  func.func @transform_6(%arg0: i32, %arg1: i32) -> (i32, i32, i32) {
    %c0_i32 = arith.constant 0 : i32
    %c0_i32_0 = arith.constant 0 : i32
    return %arg1, %arg0, %c0_i32 : i32, i32, i32
  }
  func.func @transform_7(%arg0: i32, %arg1: i32) -> (i32, i32, i32) {
    %c0_i32 = arith.constant 0 : i32
    %c0_i32_0 = arith.constant 0 : i32
    %c0_i32_1 = arith.constant 0 : i32
    return %c0_i32, %arg0, %c0_i32_0 : i32, i32, i32
  }
}

</mosaic_0001>

<bundles_post_ra>
// kernel: seq2seq_decoder_forward.3
= control target key start
LH: loop header
LB: loop body
LE: loop exit
PB: predicated region body
PF: predicated region fallthrough
CT: control target
= control target key end

     0   :  { %s275_s1 = inlined_call_operand.vmem [shape: bf16[128,128], index: 1, kind: input, shape index: {}]   ;;  %s276_s0 = inlined_call_operand.vmem [shape: bf16[32,128], index: 0, kind: input, shape index: {}]   ;;  %s277_s2 = inlined_call_operand.vmem [shape: f32[1,128], index: 2, kind: input, shape index: {}]   ;;  %s278_s3 = inlined_call_operand.vmem [shape: f32[32,128], index: 3, kind: output, shape index: {}]  }
   0x1   :  { %v200_v0 = vld [vmem:[%s275_s1 + $0x38] sm:$0xff]   ;;  %v201_v1 = vld [vmem:[%s275_s1 + $0x30] sm:$0xff]   ;;  %v202_v2 = vld [vmem:[%s275_s1 + $0x28] sm:$0xff]  }
   0x2   :  { %180 = vmatprep.subr.bf16.mxu0 %v200_v0  ;;  %v203_v3 = vld [vmem:[%s275_s1 + $0x20] sm:$0xff]   ;;  %v204_v5 = vld [vmem:[%s275_s1 + $0x18] sm:$0xff]   ;;  %v205_v6 = vld [vmem:[%s275_s1 + $0x10] sm:$0xff]  }
   0x3   :  { %181 = vmatpush3.bf16.msra.mxu0 %v200_v0  ;;  %v208_v4 = vld [vmem:[%s276_s0] sm:$0xff]   ;;  %v206_v7 = vld [vmem:[%s275_s1 + $0x8] sm:$0xff]  }
   0x4   :  { %182 = vmatprep.subr.bf16.mxu0 %v201_v1  ;;  %196 = vmatprep.mubr.bf16.mxu0 %v208_v4  ;;  %v207_v8 = vld [vmem:[%s275_s1] sm:$0xff]   ;;  %v209_v9 = vld [vmem:[%s276_s0 + $0x8] sm:$0xff]  }
   0x5   :  { %v159_v10 = vld [vmem:[%s277_s2] ss:$0 sm:$0xff] }
   0x7   :  { %183 = vmatpush3.bf16.msra.mxu0 %v201_v1 }
   0x8   :  { %184 = vmatprep.subr.bf16.mxu0 %v202_v2 }
   0xb   :  { %185 = vmatpush3.bf16.msra.mxu0 %v202_v2 }
   0xc   :  { %186 = vmatprep.subr.bf16.mxu0 %v203_v3 }
   0xf   :  { %187 = vmatpush3.bf16.msra.mxu0 %v203_v3 }
  0x10   :  { %188 = vmatprep.subr.bf16.mxu0 %v204_v5 }
  0x13   :  { %189 = vmatpush3.bf16.msra.mxu0 %v204_v5 }
  0x14   :  { %190 = vmatprep.subr.bf16.mxu0 %v205_v6 }
  0x17   :  { %191 = vmatpush3.bf16.msra.mxu0 %v205_v6 }
  0x18   :  { %192 = vmatprep.subr.bf16.mxu0 %v206_v7 }
  0x1b   :  { %193 = vmatpush3.bf16.msra.mxu0 %v206_v7 }
  0x1c   :  { %194 = vmatprep.subr.bf16.mxu0 %v207_v8 }
  0x1f   :  { %195 = vmatpush3.bf16.msra.mxu0 %v207_v8 }
  0x22   :  { %197 = vmatmul.mubr.bf16.vlgmr.msra.gmra.mxu0 %v209_v9 }
  0xe2   :  { %v198_v11 = vpop.f32.mrf.mxu0 }
  0xe3   :  { %v145_v12 = vadd.f32 %v198_v11, %v159_v10 }
  0xe4   :  { %v136_v13 = vpop.f32.mrf.mxu0 }
  0xe5   :  { %153 = vst [vmem:[%s278_s3 + $0x10] sm:$0xff] %v145_v12  ;;  %v137_v14 = vadd.f32 %v159_v10, %v136_v13 }
  0xe6   :  { %v199_v15 = vpop.f32.mrf.mxu0 }
  0xe7   :  { %151 = vst [vmem:[%s278_s3] sm:$0xff] %v137_v14  ;;  %v148_v16 = vadd.f32 %v199_v15, %v159_v10 }
  0xe8   :  { %v139_v17 = vpop.f32.mrf.mxu0 }
  0xe9   :  { %154 = vst [vmem:[%s278_s3 + $0x18] sm:$0xff] %v148_v16  ;;  %v140_v18 = vadd.f32 %v159_v10, %v139_v17 }
  0xeb   :  { %152 = vst [vmem:[%s278_s3 + $0x8] sm:$0xff] %v140_v18 }

// kernel: seq2seq_decoder_forward.2
= control target key start
LH: loop header
LB: loop body
LE: loop exit
PB: predicated region body
PF: predicated region fallthrough
CT: control target
= control target key end

     0   :  { %v6553_v1 = vmov 0.0   ;;  %v6551_v2 = vmov 0   ;;  %vm4165_vm0 = vmmov 0   ;;  %s6543_s4 = inlined_call_operand.vmem [shape: bf16[128,384], index: 4, kind: input, shape index: {}]   ;;  %s6544_s2 = inlined_call_operand.vmem [shape: bf16[128,384], index: 2, kind: input, shape index: {}]   ;;  %s6545_s1 = inlined_call_operand.vmem [shape: f32[2,8,128], index: 1, kind: input, shape index: {}]   ;;  %s6546_s3 = inlined_call_operand.vmem [shape: bf16[128,384], index: 3, kind: input, shape index: {}]   ;;  %s6547_s5 = inlined_call_operand.vmem [shape: f32[3,1,384], index: 5, kind: input, shape index: {}]   ;;  %s6548_s0 = inlined_call_operand.vmem [shape: f32[8,8,384], index: 0, kind: input, shape index: {}]   ;;  %s6549_s6 = inlined_call_operand.vmem [shape: f32[8,8,128], index: 6, kind: output, shape index: {0}]   ;;  %s6550_s7 = inlined_call_operand.vmem [shape: f32[2,8,128], index: 7, kind: output, shape index: {1}]  }
   0x1   :  { %v4209_v0 = vld [vmem:[%s6543_s4 + $0xac] ss:$12 sps:$4 sm:$0xff]   ;;  %3280 = vmatprep.subr.bf16.mxu1 %v6553_v1  ;;  %347 = vmatprep.mubr.bf16.mxu0 %v6551_v2  ;;  %v4216_v3 = vld [vmem:[%s6543_s4 + $0xa8] ss:$12 sps:$4 sm:$0xff]   ;;  %v4230_v5 = vld [vmem:[%s6543_s4 + $0x90] ss:$12 sps:$4 sm:$0xff]  }
   0x2   :  { %6749 = vst [vmem:[#allocation3_spill] sm:$0xff] %v4209_v0  ;;  %3296 = vmatprep.mubr.msk.bf16.mxu1 %vm4165_vm0, %v6553_v1  ;;  %315 = vmatprep.subr.bf16.mxu0 %v4209_v0  ;;  %v4224_v4 = vld [vmem:[%s6543_s4 + $0x94] ss:$12 sps:$4 sm:$0xff]   ;;  %v4236_v6 = vld [vmem:[%s6543_s4 + $0x7c] ss:$12 sps:$4 sm:$0xff]  }
   0x3   :  { %316 = vmatpush1.bf16.msra.mxu0 %v4216_v3  ;;  %v4242_v7 = vld [vmem:[%s6543_s4 + $0x78] ss:$12 sps:$4 sm:$0xff]   ;;  %v4254_v9 = vld [vmem:[%s6543_s4 + $0x60] ss:$12 sps:$4 sm:$0xff]   ;;  %v4259_v10 = vld [vmem:[%s6543_s4 + $0xb0] ss:$12 sps:$4 sm:$0xff]  }
   0x4   :  { %317 = vmatprep.subr.bf16.mxu0 %v4224_v4  ;;  %v4248_v8 = vld [vmem:[%s6543_s4 + $0x64] ss:$12 sps:$4 sm:$0xff]   ;;  %v4265_v11 = vld [vmem:[%s6543_s4 + $0x4c] ss:$12 sps:$4 sm:$0xff]   ;;  %3281 = vmatpush3.bf16.msra.mxu1 %v4259_v10  ;;  %v4278_v13 = vld [vmem:[%s6543_s4 + $0x48] ss:$12 sps:$4 sm:$0xff]  }
   0x5   :  { %3282 = vmatprep.subr.bf16.mxu1 %v6553_v1  ;;  %v4272_v12 = vld [vmem:[%s6543_s4 + $0x98] ss:$12 sps:$4 sm:$0xff]   ;;  %v4284_v14 = vld [vmem:[%s6543_s4 + $0x34] ss:$12 sps:$4 sm:$0xff]   ;;  %v4297_v16 = vld [vmem:[%s6543_s4 + $0x30] ss:$12 sps:$4 sm:$0xff]  }
   0x6   :  { %v4290_v15 = vld [vmem:[%s6543_s4 + $0x80] ss:$12 sps:$4 sm:$0xff]   ;;  %v4303_v17 = vld [vmem:[%s6543_s4 + $0x1c] ss:$12 sps:$4 sm:$0xff]   ;;  %v4316_v19 = vld [vmem:[%s6543_s4 + $0x18] ss:$12 sps:$4 sm:$0xff]  }
   0x7   :  { %318 = vmatpush1.bf16.msra.mxu0 %v4230_v5  ;;  %v4309_v18 = vld [vmem:[%s6543_s4 + $0x68] ss:$12 sps:$4 sm:$0xff]   ;;  %v4322_v20 = vld [vmem:[%s6543_s4 + $0x4] ss:$12 sps:$4 sm:$0xff]   ;;  %v4333_v22 = vld [vmem:[%s6543_s4] ss:$12 sps:$4 sm:$0xff]  }
   0x8   :  { %319 = vmatprep.subr.bf16.mxu0 %v4236_v6  ;;  %3283 = vmatpush3.bf16.msra.mxu1 %v4272_v12  ;;  %v4328_v21 = vld [vmem:[%s6543_s4 + $0x50] ss:$12 sps:$4 sm:$0xff]   ;;  %v4340_v23 = vld [vmem:[%s6545_s1 + $0x8] sm:$0xff]  ;;  %v4352_v25 = vld [vmem:[%s6543_s4 + $0x38] ss:$12 sps:$4 sm:$0xff]  }
   0x9   :  { %3284 = vmatprep.subr.bf16.mxu1 %v6553_v1  ;;  %v4346_v24 = vld [vmem:[%s6544_s2 + $0xac] ss:$12 sps:$4 sm:$0xff]   ;;  %v186_v26 = vpack.c.bf16 %v4340_v23, %v4340_v23  ;;  %v4361_v27 = vld [vmem:[%s6544_s2 + $0xa8] ss:$12 sps:$4 sm:$0xff]   ;;  %v4380_v30 = vld [vmem:[%s6544_s2 + $0x90] ss:$12 sps:$4 sm:$0xff]  }
   0xa   :  { %v4367_v28 = vld [vmem:[%s6544_s2 + $0x94] ss:$12 sps:$4 sm:$0xff]   ;;  %v4387_v31 = vld [vmem:[%s6544_s2 + $0x7c] ss:$12 sps:$4 sm:$0xff]   ;;  %v4400_v33 = vld [vmem:[%s6544_s2 + $0x78] ss:$12 sps:$4 sm:$0xff]  }
   0xb   :  { %320 = vmatpush1.bf16.msra.mxu0 %v4242_v7  ;;  %v4373_v29 = vld [vmem:[%s6543_s4 + $0x20] ss:$12 sps:$4 sm:$0xff]   ;;  %v4393_v32 = vld [vmem:[%s6543_s4 + $0x8] ss:$12 sps:$4 sm:$0xff]   ;;  %v4406_v34 = vld [vmem:[%s6544_s2 + $0x64] ss:$12 sps:$4 sm:$0xff]  }
   0xc   :  { %321 = vmatprep.subr.bf16.mxu0 %v4248_v8  ;;  %3285 = vmatpush3.bf16.msra.mxu1 %v4290_v15  ;;  %v4412_v35 = vld [vmem:[%s6544_s2 + $0xb0] ss:$12 sps:$4 sm:$0xff]   ;;  %v4419_v36 = vld [vmem:[%s6544_s2 + $0x60] ss:$12 sps:$4 sm:$0xff]   ;;  %v4431_v38 = vld [vmem:[%s6544_s2 + $0x98] ss:$12 sps:$4 sm:$0xff]  }
   0xd   :  { %3286 = vmatprep.subr.bf16.mxu1 %v6553_v1  ;;  %v4425_v37 = vld [vmem:[%s6544_s2 + $0x4c] ss:$12 sps:$4 sm:$0xff]   ;;  %v4440_v39 = vld [vmem:[%s6544_s2 + $0x48] ss:$12 sps:$4 sm:$0xff]   ;;  %v4459_v42 = vld [vmem:[%s6544_s2 + $0x30] ss:$12 sps:$4 sm:$0xff]  }
   0xe   :  { %6750 = vst [vmem:[#allocation4_spill] sm:$0xff] %v4440_v39  ;;  %v4446_v40 = vld [vmem:[%s6544_s2 + $0x34] ss:$12 sps:$4 sm:$0xff]   ;;  %6752 = vst [vmem:[#allocation6_spill] sm:$0xff] %v4459_v42  ;;  %v4465_v43 = vld [vmem:[%s6544_s2 + $0x1c] ss:$12 sps:$4 sm:$0xff]  }
   0xf   :  { %322 = vmatpush1.bf16.msra.mxu0 %v4254_v9  ;;  %6751 = vst [vmem:[#allocation5_spill] sm:$0xff] %v4446_v40  ;;  %v4452_v41 = vld [vmem:[%s6544_s2 + $0x80] ss:$12 sps:$4 sm:$0xff]   ;;  %6753 = vst [vmem:[#allocation7_spill] sm:$0xff] %v4465_v43  ;;  %v4471_v44 = vld [vmem:[%s6544_s2 + $0x68] ss:$12 sps:$4 sm:$0xff]  }
  0x10   :  { %323 = vmatprep.subr.bf16.mxu0 %v4265_v11  ;;  %3287 = vmatpush3.bf16.msra.mxu1 %v4309_v18  ;;  %v4478_v45 = vld [vmem:[%s6544_s2 + $0x18] ss:$12 sps:$4 sm:$0xff]   ;;  %v4490_v47 = vld [vmem:[%s6544_s2 + $0x50] ss:$12 sps:$4 sm:$0xff]   ;;  %v4502_v49 = vld [vmem:[%s6544_s2] ss:$12 sps:$4 sm:$0xff]  }
  0x11   :  { %3288 = vmatprep.subr.bf16.mxu1 %v6553_v1  ;;  %6754 = vst [vmem:[#allocation8_spill] sm:$0xff] %v4478_v45  ;;  %v4484_v46 = vld [vmem:[%s6544_s2 + $0x4] ss:$12 sps:$4 sm:$0xff]   ;;  %6756 = vst [vmem:[#allocation10_spill] sm:$0xff] %v4490_v47  ;;  %v4519_v52 = vld [vmem:[%s6544_s2 + $0x20] ss:$12 sps:$4 sm:$0xff]  }
  0x12   :  { %6755 = vst [vmem:[#allocation9_spill] sm:$0xff] %v4484_v46  ;;  %v4496_v48 = vld [vmem:[%s6545_s1] sm:$0xff]  ;;  %6757 = vst [vmem:[#allocation11_spill] sm:$0xff] %v4502_v49  ;;  %v4527_v53 = vld [vmem:[%s6544_s2 + $0x8] ss:$12 sps:$4 sm:$0xff]  }
  0x13   :  { %324 = vmatpush1.bf16.msra.mxu0 %v4278_v13  ;;  %v4509_v50 = vld [vmem:[%s6544_s2 + $0x38] ss:$12 sps:$4 sm:$0xff]   ;;  %v396_v51 = vpack.c.bf16 %v4496_v48, %v4496_v48  ;;  %6759 = vst [vmem:[#allocation13_spill] sm:$0xff] %v4519_v52  ;;  %6760 = vst [vmem:[#allocation14_spill] sm:$0xff] %v4527_v53  ;;  %v4542_v55 = vld [vmem:[%s6546_s3 + $0xa8] ss:$12 sps:$4 sm:$0xff]  }
  0x14   :  { %325 = vmatprep.subr.bf16.mxu0 %v4284_v14  ;;  %3289 = vmatpush3.bf16.msra.mxu1 %v4328_v21  ;;  %6758 = vst [vmem:[#allocation12_spill] sm:$0xff] %v4509_v50  ;;  %v4537_v54 = vld [vmem:[%s6546_s3 + $0xac] ss:$12 sps:$4 sm:$0xff]   ;;  %6762 = vst [vmem:[#allocation16_spill] sm:$0xff] %v4542_v55  ;;  %v4548_v56 = vld [vmem:[%s6546_s3 + $0xb0] ss:$12 sps:$4 sm:$0xff]  }
  0x15   :  { %3290 = vmatprep.subr.bf16.mxu1 %v6553_v1  ;;  %6761 = vst [vmem:[#allocation15_spill] sm:$0xff] %v4537_v54  ;;  %6763 = vst [vmem:[#allocation17_spill] sm:$0xff] %v4548_v56  ;;  %v4555_v57 = vld [vmem:[%s6546_s3 + $0x94] ss:$12 sps:$4 sm:$0xff]   ;;  %v4561_v58 = vld [vmem:[%s6546_s3 + $0x90] ss:$12 sps:$4 sm:$0xff]  }
  0x16   :  { %6764 = vst [vmem:[#allocation18_spill] sm:$0xff] %v4555_v57  ;;  %6765 = vst [vmem:[#allocation19_spill] sm:$0xff] %v4561_v58  ;;  %v4566_v59 = vld [vmem:[%s6546_s3 + $0x98] ss:$12 sps:$4 sm:$0xff]   ;;  %v4574_v60 = vld [vmem:[%s6546_s3 + $0x7c] ss:$12 sps:$4 sm:$0xff]  }
  0x17   :  { %326 = vmatpush1.bf16.msra.mxu0 %v4297_v16  ;;  %6766 = vst [vmem:[#allocation20_spill] sm:$0xff] %v4566_v59  ;;  %6767 = vst [vmem:[#allocation21_spill] sm:$0xff] %v4574_v60  ;;  %v4580_v61 = vld [vmem:[%s6546_s3 + $0x78] ss:$12 sps:$4 sm:$0xff]   ;;  %v4585_v62 = vld [vmem:[%s6546_s3 + $0x80] ss:$12 sps:$4 sm:$0xff]  }
  0x18   :  { %327 = vmatprep.subr.bf16.mxu0 %v4303_v17  ;;  %3291 = vmatpush3.bf16.msra.mxu1 %v4352_v25  ;;  %6768 = vst [vmem:[#allocation22_spill] sm:$0xff] %v4580_v61  ;;  %6769 = vst [vmem:[#allocation23_spill] sm:$0xff] %v4585_v62  ;;  %v4593_v63 = vld [vmem:[%s6546_s3 + $0x64] ss:$12 sps:$4 sm:$0xff]  }
  0x19   :  { %3292 = vmatprep.subr.bf16.mxu1 %v6553_v1  ;;  %6770 = vst [vmem:[#allocation24_spill] sm:$0xff] %v4593_v63 }
  0x1b   :  { %328 = vmatpush1.bf16.msra.mxu0 %v4316_v19 }
  0x1c   :  { %329 = vmatprep.subr.bf16.mxu0 %v4322_v20  ;;  %3293 = vmatpush3.bf16.msra.mxu1 %v4373_v29 }
  0x1d   :  { %3294 = vmatprep.subr.bf16.mxu1 %v6553_v1 }
  0x1f   :  { %330 = vmatpush1.bf16.msra.mxu0 %v4333_v22 }
  0x20   :  { %525 = vmatprep.subr.bf16.mxu0 %v4346_v24  ;;  %3295 = vmatpush3.bf16.msra.mxu1 %v4393_v32 }
  0x21   :  { %3300 = vmatprep.subr.bf16.mxu1 %v6553_v1 }
  0x22   :  { %348 = vmatmul.mubr.bf16.vlgmr.msra.gmra.mxu0 %v186_v26 }
  0x23   :  { %526 = vmatpush1.bf16.msra.mxu0 %v4361_v27  ;;  %557 = vmatprep.mubr.bf16.mxu0 %v6551_v2 }
  0x24   :  { %527 = vmatprep.subr.bf16.mxu0 %v4367_v28  ;;  %3297 = vmatmul.mubr.bf16.vlgmr.msra.gmra.mxu1 %v186_v26  ;;  %v4599_v26 = vld [vmem:[%s6546_s3 + $0x60] ss:$12 sps:$4 sm:$0xff]  }
  0x25   :  { %3301 = vmatpush3.bf16.msra.mxu1 %v4412_v35  ;;  %3316 = vmatprep.mubr.msk.bf16.mxu1 %vm4165_vm0, %v6553_v1  ;;  %6771 = vst [vmem:[#allocation25_spill] sm:$0xff] %v4599_v26 }
  0x26   :  { %3302 = vmatprep.subr.bf16.mxu1 %v6553_v1 }
  0x27   :  { %528 = vmatpush1.bf16.msra.mxu0 %v4380_v30 }
  0x28   :  { %529 = vmatprep.subr.bf16.mxu0 %v4387_v31 }
  0x29   :  { %3303 = vmatpush3.bf16.msra.mxu1 %v4431_v38 }
  0x2a   :  { %3304 = vmatprep.subr.bf16.mxu1 %v6553_v1 }
  0x2b   :  { %530 = vmatpush1.bf16.msra.mxu0 %v4400_v33 }
  0x2c   :  { %531 = vmatprep.subr.bf16.mxu0 %v4406_v34 }
  0x2d   :  { %3305 = vmatpush3.bf16.msra.mxu1 %v4452_v41 }
  0x2e   :  { %3306 = vmatprep.subr.bf16.mxu1 %v6553_v1 }
  0x2f   :  { %532 = vmatpush1.bf16.msra.mxu0 %v4419_v36 }
  0x30   :  { %533 = vmatprep.subr.bf16.mxu0 %v4425_v37 }
  0x31   :  { %3307 = vmatpush3.bf16.msra.mxu1 %v4471_v44 }
  0x32   :  { %3308 = vmatprep.subr.bf16.mxu1 %v6553_v1 }
  0x33   :  { %534 = vmatpush1.bf16.msra.mxu0 %v4440_v39 }
  0x34   :  { %535 = vmatprep.subr.bf16.mxu0 %v4446_v40 }
  0x35   :  { %3309 = vmatpush3.bf16.msra.mxu1 %v4490_v47 }
  0x36   :  { %3310 = vmatprep.subr.bf16.mxu1 %v6553_v1 }
  0x37   :  { %536 = vmatpush1.bf16.msra.mxu0 %v4459_v42 }
  0x38   :  { %537 = vmatprep.subr.bf16.mxu0 %v4465_v43 }
  0x39   :  { %3311 = vmatpush3.bf16.msra.mxu1 %v4509_v50 }
  0x3a   :  { %3312 = vmatprep.subr.bf16.mxu1 %v6553_v1 }
  0x3b   :  { %538 = vmatpush1.bf16.msra.mxu0 %v4478_v45 }
  0x3c   :  { %539 = vmatprep.subr.bf16.mxu0 %v4484_v46 }
  0x3d   :  { %3313 = vmatpush3.bf16.msra.mxu1 %v4519_v52  ;;  %v607_v52 = vld [vmem:[%s6548_s0 + $0x8] sm:$0xff] }
  0x3e   :  { %3314 = vmatprep.subr.bf16.mxu1 %v6553_v1 }
  0x3f   :  { %540 = vmatpush1.bf16.msra.mxu0 %v4502_v49 }
  0x40   :  { %759 = vmatprep.subr.bf16.mxu0 %v4537_v54 }
  0x41   :  { %3315 = vmatpush3.bf16.msra.mxu1 %v4527_v53 }
  0x42   :  { %558 = vmatmul.mubr.bf16.vlgmr.msra.gmra.mxu0 %v396_v51  ;;  %3320 = vmatprep.subr.bf16.mxu1 %v6553_v1 }
  0x43   :  { %791 = vmatprep.mubr.bf16.mxu0 %v6551_v2  ;;  %760 = vmatpush1.bf16.msra.mxu0 %v4542_v55  ;;  %v4610_v2 = vld [vmem:[%s6546_s3 + $0x4c] ss:$12 sps:$4 sm:$0xff]  }
  0x44   :  { %3317 = vmatmul.mubr.bf16.vlgmr.msra.gmra.mxu1 %v396_v51  ;;  %761 = vmatprep.subr.bf16.mxu0 %v4555_v57  ;;  %v4604_v51 = vld [vmem:[%s6546_s3 + $0x68] ss:$12 sps:$4 sm:$0xff]   ;;  %6773 = vst [vmem:[#allocation27_spill] sm:$0xff] %v4610_v2 }
  0x45   :  { %3336 = vmatprep.mubr.msk.bf16.mxu1 %vm4165_vm0, %v6553_v1  ;;  %3321 = vmatpush3.bf16.msra.mxu1 %v4548_v56  ;;  %6772 = vst [vmem:[#allocation26_spill] sm:$0xff] %v4604_v51  ;;  %v132_v56 = vlaneseq }
  0x46   :  { %3322 = vmatprep.subr.bf16.mxu1 %v6553_v1 }
  0x47   :  { %762 = vmatpush1.bf16.msra.mxu0 %v4561_v58  ;;  %v133_v55 = vshrl.u32 %v132_v56, 7 }
  0x48   :  { %763 = vmatprep.subr.bf16.mxu0 %v4574_v60 }
  0x49   :  { %3323 = vmatpush3.bf16.msra.mxu1 %v4566_v59  ;;  %v4701_v54 = vsub.s32 1, %v133_v55 }
  0x4a   :  { %3324 = vmatprep.subr.bf16.mxu1 %v6553_v1 }
  0x4b   :  { %764 = vmatpush1.bf16.msra.mxu0 %v4580_v61  ;;  %v4647_v61 = vld [vmem:[%s6546_s3 + $0x1c] ss:$12 sps:$4 sm:$0xff]  }
  0x4c   :  { %765 = vmatprep.subr.bf16.mxu0 %v4593_v63  ;;  %v4623_v63 = vld [vmem:[%s6546_s3 + $0x50] ss:$12 sps:$4 sm:$0xff]   ;;  %6780 = vst [vmem:[#allocation33_spill] sm:$0xff] %v4647_v61 }
  0x4d   :  { %3325 = vmatpush3.bf16.msra.mxu1 %v4585_v62  ;;  %6775 = vst [vmem:[#allocation29_spill] sm:$0xff] %v4623_v63  ;;  %v4628_v62 = vld [vmem:[%s6546_s3 + $0x34] ss:$12 sps:$4 sm:$0xff]  }
  0x4e   :  { %3326 = vmatprep.subr.bf16.mxu1 %v6553_v1  ;;  %v4616_v1 = vld [vmem:[%s6546_s3 + $0x48] ss:$12 sps:$4 sm:$0xff]   ;;  %6776 = vst [vmem:[#allocation30_spill] sm:$0xff] %v4628_v62 }
  0x4f   :  { %766 = vmatpush1.bf16.msra.mxu0 %v4599_v26  ;;  %6774 = vst [vmem:[#allocation28_spill] sm:$0xff] %v4616_v1  ;;  %v6777_v26 = vmov 0.0  }
  0x50   :  { %767 = vmatprep.subr.bf16.mxu0 %v4610_v2  ;;  %v4642_v2 = vld [vmem:[%s6546_s3 + $0x38] ss:$12 sps:$4 sm:$0xff]  }
  0x51   :  { %3327 = vmatpush3.bf16.msra.mxu1 %v4604_v51  ;;  %v4635_v51 = vld [vmem:[%s6546_s3 + $0x30] ss:$12 sps:$4 sm:$0xff]   ;;  %6779 = vst [vmem:[#allocation32_spill] sm:$0xff] %v4642_v2 }
  0x52   :  { %3328 = vmatprep.subr.bf16.mxu1 %v6777_v26  ;;  %6778 = vst [vmem:[#allocation31_spill] sm:$0xff] %v4635_v51 }
  0x53   :  { %768 = vmatpush1.bf16.msra.mxu0 %v4616_v1  ;;  %v4666_v1 = vld [vmem:[%s6546_s3 + $0x4] ss:$12 sps:$4 sm:$0xff]  }
  0x54   :  { %769 = vmatprep.subr.bf16.mxu0 %v4628_v62  ;;  %v4661_v62 = vld [vmem:[%s6546_s3 + $0x20] ss:$12 sps:$4 sm:$0xff]   ;;  %6783 = vst [vmem:[#allocation36_spill] sm:$0xff] %v4666_v1 }
  0x55   :  { %3329 = vmatpush3.bf16.msra.mxu1 %v4623_v63  ;;  %v4654_v63 = vld [vmem:[%s6546_s3 + $0x18] ss:$12 sps:$4 sm:$0xff]   ;;  %6782 = vst [vmem:[#allocation35_spill] sm:$0xff] %v4661_v62 }
  0x56   :  { %3330 = vmatprep.subr.bf16.mxu1 %v6777_v26  ;;  %6781 = vst [vmem:[#allocation34_spill] sm:$0xff] %v4654_v63 }
  0x57   :  { %770 = vmatpush1.bf16.msra.mxu0 %v4635_v51 }
  0x58   :  { %771 = vmatprep.subr.bf16.mxu0 %v4647_v61  ;;  %v4680_v61 = vld [vmem:[%s6546_s3 + $0x8] ss:$12 sps:$4 sm:$0xff]  }
  0x59   :  { %3331 = vmatpush3.bf16.msra.mxu1 %v4642_v2  ;;  %v4673_v2 = vld [vmem:[%s6546_s3] ss:$12 sps:$4 sm:$0xff]   ;;  %6785 = vst [vmem:[#allocation38_spill] sm:$0xff] %v4680_v61 }
  0x5a   :  { %3332 = vmatprep.subr.bf16.mxu1 %v6777_v26  ;;  %6784 = vst [vmem:[#allocation37_spill] sm:$0xff] %v4673_v2 }
  0x5b   :  { %772 = vmatpush1.bf16.msra.mxu0 %v4654_v63 }
  0x5c   :  { %773 = vmatprep.subr.bf16.mxu0 %v4666_v1 }
  0x5d   :  { %3333 = vmatpush3.bf16.msra.mxu1 %v4661_v62 }
  0x5e   :  { %3334 = vmatprep.subr.bf16.mxu1 %v6777_v26 }
  0x5f   :  { %774 = vmatpush1.bf16.msra.mxu0 %v4673_v2 }
  0x60   :  { %863 = vmatprep.subr.bf16.mxu0 %v4209_v0  ;;  %v4696_v0 = vsub.s32 0, %v133_v55 }
  0x61   :  { %3335 = vmatpush3.bf16.msra.mxu1 %v4680_v61  ;;  %v130_v61 = vld [vmem:[%s6547_s5] sm:$0x7] }
  0x62   :  { %3340 = vmatprep.subr.bf16.mxu1 %v6777_v26  ;;  %v4699_v2 = vrot.slane %v130_v61, %v4696_v0  ;;  %v4708_v56 = vrot.slane %v130_v61, %v4701_v54 }
  0x64   :  { %6786 = vst [vmem:[#allocation39_spill] sm:$0xff] %v4699_v2 }
  0xe2   :  { %v4687_v63 = vpop.f32.mrf.mxu0 }
  0xe4   :  { %v4689_v62 = vpop.f32.mrf.mxu0  ;;  %v4691_v60 = vpop.f32.mrf.mxu1 }
  0xe6   :  { %v353_v1 = vpop.f32.mrf.mxu0  ;;  %v3298_v59 = vpop.f32.mrf.mxu1 }
  0xe7   :  { %v606_v59 = vld [vmem:[%s6548_s0] sm:$0xff] }
  0xe8   :  { %v354_v51 = vpop.f32.mrf.mxu0  ;;  %v393_v58 = vpop.f32.mrf.mxu1 }
  0xea   :  { %v3299_v57 = vpop.f32.mrf.mxu1 }
 0x102   :  { %v559_v1 = vpop.f32.mrf.mxu0 }
 0x103   :  { %v560_v57 = vadd.f32 %v559_v1, %v4699_v2 }
 0x104   :  { %v561_v58 = vpop.f32.mrf.mxu0  ;;  %v600_v50 = vpop.f32.mrf.mxu1 }
 0x105   :  { %v609_v51 = vadd.f32 %v606_v59, %v560_v57  ;;  %v562_v46 = vadd.f32 %v561_v58, %v4708_v56 }
 0x106   :  { %v563_v53 = vpop.f32.mrf.mxu0  ;;  %v3318_v42 = vpop.f32.mrf.mxu1 }
 0x107   :  { %v2980_v49 = vmul.f32 -1.442695, %v609_v51  ;;  %v616_v43 = vadd.f32 %v607_v52, %v562_v46  ;;  %v4714_v53 = vsub.s32 2, %v133_v55  ;;  %v608_v42 = vld [vmem:[%s6548_s0 + $0x10] sm:$0xff] }
 0x108   :  { %v564_v45 = vpop.f32.mrf.mxu0  ;;  %v603_v1 = vpop.f32.mrf.mxu1 }
 0x109   :  { %3859 = vpow2.f32 %v2980_v49  ;;  %v2981_v40 = vmul.f32 -1.442695, %v616_v43  ;;  %v4717_v59 = vrot.slane %v130_v61, %v4714_v53  ;;  %v6787_v61 = vmov 0  }
 0x10a   :  { %v3319_v2 = vpop.f32.mrf.mxu1 }
 0x10b   :  { %3861 = vpow2.f32 %v2981_v40  ;;  %v601_v45 = vadd.f32 %v600_v50, %v4717_v59 }
 0x116   :  { %v3860_v47 = vpop.eup %3859 }
 0x117   :  { %v613_v39 = vadd.f32 1.0, %v3860_v47 }
 0x118   :  { %v3862_v57 = vpop.eup %3861 }
 0x119   :  { %3863 = vrcp.f32 %v613_v39  ;;  %v620_v58 = vadd.f32 1.0, %v3862_v57 }
 0x11b   :  { %3865 = vrcp.f32 %v620_v58 }
 0x126   :  { %v3864_v49 = vpop.eup %3863 }
 0x127   :  { %v623_v2 = vmul.f32 %v3864_v49, %v601_v45 }
 0x128   :  { %v3866_v43 = vpop.eup %3865 }
 0x129   :  { %v624_v40 = vadd.f32 %v623_v2, %v608_v42  ;;  %v626_v39 = vsub.f32 1.0, %v3866_v43  ;;  %v628_v52 = vmul.f32 %v3866_v43, %v4496_v48 }
 0x12b   :  { %3867 = vtanh.f32 %v624_v40 }
 0x138   :  { %v3868_v46 = vpop.eup %3867 }
 0x139   :  { %v627_v47 = vmul.f32 %v3868_v46, %v626_v39 }
 0x13b   :  { %v4724_v55 = vadd.f32 %v628_v52, %v627_v47 }
 0x13d   :  { %v4728_v50 = vpack.c.bf16 %v4724_v55, %v4724_v55 }
 0x13f   :  { %792 = vmatmul.mubr.bf16.vlgmr.msra.gmra.mxu0 %v4728_v50  ;;  %3337 = vmatmul.mubr.bf16.vlgmr.msra.gmra.mxu1 %v4728_v50 }
 0x140   :  { %864 = vmatpush1.bf16.msra.mxu0 %v4216_v3  ;;  %3341 = vmatpush3.bf16.msra.mxu1 %v4259_v10  ;;  %v2930_v3 = vld [vmem:[%s6547_s5 + $0x3] sm:$0x7] }
 0x141   :  { %865 = vmatprep.subr.bf16.mxu0 %v4224_v4  ;;  %3342 = vmatprep.subr.bf16.mxu1 %v6777_v26  ;;  %v2931_v4 = vld [vmem:[%s6547_s5 + $0x6] sm:$0x7]  ;;  %v4786_v57 = vrot.slane %v2930_v3, %v4701_v54  ;;  %v4792_v52 = vrot.slane %v2930_v3, %v4714_v53 }
 0x142   :  { %895 = vmatprep.mubr.bf16.mxu0 %v6787_v61  ;;  %3356 = vmatprep.mubr.msk.bf16.mxu1 %vm4165_vm0, %v6777_v26  ;;  %v4783_v48 = vrot.slane %v2931_v4, %v4701_v54 }
 0x144   :  { %866 = vmatpush1.bf16.msra.mxu0 %v4230_v5  ;;  %3343 = vmatpush3.bf16.msra.mxu1 %v4272_v12  ;;  %v4774_v5 = vrot.slane %v2930_v3, %v4696_v0 }
 0x145   :  { %867 = vmatprep.subr.bf16.mxu0 %v4236_v6  ;;  %3344 = vmatprep.subr.bf16.mxu1 %v6777_v26  ;;  %v4777_v6 = vrot.slane %v2931_v4, %v4696_v0 }
 0x148   :  { %868 = vmatpush1.bf16.msra.mxu0 %v4242_v7  ;;  %3345 = vmatpush3.bf16.msra.mxu1 %v4290_v15 }
 0x149   :  { %869 = vmatprep.subr.bf16.mxu0 %v4248_v8  ;;  %3346 = vmatprep.subr.bf16.mxu1 %v6777_v26 }
 0x14c   :  { %870 = vmatpush1.bf16.msra.mxu0 %v4254_v9  ;;  %3347 = vmatpush3.bf16.msra.mxu1 %v4309_v18  ;;  %v350_v9 = vadd.f32 %v4687_v63, %v4774_v5  ;;  %v352_v63 = vadd.f32 %v4689_v62, %v4786_v57 }
 0x14d   :  { %871 = vmatprep.subr.bf16.mxu0 %v4265_v11  ;;  %3348 = vmatprep.subr.bf16.mxu1 %v6777_v26 }
 0x150   :  { %872 = vmatpush1.bf16.msra.mxu0 %v4278_v13  ;;  %3349 = vmatpush3.bf16.msra.mxu1 %v4328_v21 }
 0x151   :  { %873 = vmatprep.subr.bf16.mxu0 %v4284_v14  ;;  %3350 = vmatprep.subr.bf16.mxu1 %v6777_v26 }
 0x154   :  { %874 = vmatpush1.bf16.msra.mxu0 %v4297_v16  ;;  %3351 = vmatpush3.bf16.msra.mxu1 %v4352_v25 }
 0x155   :  { %875 = vmatprep.subr.bf16.mxu0 %v4303_v17  ;;  %3352 = vmatprep.subr.bf16.mxu1 %v6777_v26 }
 0x158   :  { %876 = vmatpush1.bf16.msra.mxu0 %v4316_v19  ;;  %3353 = vmatpush3.bf16.msra.mxu1 %v4373_v29 }
 0x159   :  { %877 = vmatprep.subr.bf16.mxu0 %v4322_v20  ;;  %3354 = vmatprep.subr.bf16.mxu1 %v6777_v26 }
 0x15c   :  { %878 = vmatpush1.bf16.msra.mxu0 %v4333_v22  ;;  %3355 = vmatpush3.bf16.msra.mxu1 %v4393_v32 }
 0x15d   :  { %944 = vmatprep.subr.bf16.mxu0 %v4346_v24  ;;  %3360 = vmatprep.subr.bf16.mxu1 %v6777_v26 }
 0x1ff   :  { %v793_v7 = vpop.f32.mrf.mxu0  ;;  %v834_v8 = vpop.f32.mrf.mxu1 }
 0x200   :  { %v794_v11 = vadd.f32 %v793_v7, %v4777_v6  ;;  %v4795_v7 = vrot.slane %v2931_v4, %v4714_v53  ;;  %v6789_v53 = vld [vmem:[#allocation10_spill] sm:$0xff]  ;;  %v6790_v4 = vld [vmem:[#allocation5_spill] sm:$0xff] }
 0x201   :  { %v795_v51 = vpop.f32.mrf.mxu0  ;;  %v3338_v1 = vpop.f32.mrf.mxu1 }
 0x202   :  { %v840_v58 = vadd.f32 %v794_v11, %v350_v9  ;;  %v796_v42 = vadd.f32 %v795_v51, %v4783_v48  ;;  %v391_v11 = vadd.f32 %v4691_v60, %v4792_v52  ;;  %v835_v62 = vadd.f32 %v834_v8, %v4795_v7  ;;  %v6791_v8 = vld [vmem:[#allocation6_spill] sm:$0xff] }
 0x203   :  { %v797_v45 = vpop.f32.mrf.mxu0  ;;  %v837_v49 = vpop.f32.mrf.mxu1 }
 0x204   :  { %v3006_v0 = vmul.f32 -1.442695, %v840_v58  ;;  %v847_v43 = vadd.f32 %v796_v42, %v352_v63  ;;  %v6793_v63 = vld [vmem:[#allocation7_spill] sm:$0xff] }
 0x205   :  { %v798_v2 = vpop.f32.mrf.mxu0  ;;  %v3339_v40 = vpop.f32.mrf.mxu1 }
 0x206   :  { %3869 = vpow2.f32 %v3006_v0  ;;  %v3007_v39 = vmul.f32 -1.442695, %v847_v43  ;;  %v6792_v40 = vld [vmem:[#allocation12_spill] sm:$0xff] }
 0x207   :  { %v6794_v43 = vld [vmem:[#allocation8_spill] sm:$0xff] }
 0x208   :  { %3871 = vpow2.f32 %v3007_v39  ;;  %v6795_v39 = vld [vmem:[#allocation13_spill] sm:$0xff] }
 0x213   :  { %v3870_v46 = vpop.eup %3869 }
 0x214   :  { %v844_v47 = vadd.f32 1.0, %v3870_v46  ;;  %v6796_v46 = vld [vmem:[#allocation9_spill] sm:$0xff] }
 0x215   :  { %v3872_v54 = vpop.eup %3871 }
 0x216   :  { %3873 = vrcp.f32 %v844_v47  ;;  %v851_v9 = vadd.f32 1.0, %v3872_v54  ;;  %v6797_v47 = vld [vmem:[#allocation11_spill] sm:$0xff]  ;;  %v6798_v54 = vld [vmem:[#allocation14_spill] sm:$0xff] }
 0x218   :  { %3875 = vrcp.f32 %v851_v9  ;;  %v6799_v9 = vld [vmem:[#allocation15_spill] sm:$0xff] }
 0x223   :  { %v3874_v51 = vpop.eup %3873 }
 0x224   :  { %v854_v1 = vmul.f32 %v3874_v51, %v391_v11  ;;  %v6800_v11 = vld [vmem:[#allocation16_spill] sm:$0xff]  ;;  %v6801_v51 = vld [vmem:[#allocation17_spill] sm:$0xff] }
 0x225   :  { %v3876_v45 = vpop.eup %3875 }
 0x226   :  { %v855_v58 = vadd.f32 %v854_v1, %v835_v62  ;;  %v857_v49 = vsub.f32 1.0, %v3876_v45  ;;  %v859_v3 = vmul.f32 %v3876_v45, %v4340_v23  ;;  %v6788_v23 = vld [vmem:[#allocation4_spill] sm:$0xff]  ;;  %v6802_v62 = vld [vmem:[#allocation18_spill] sm:$0xff]  ;;  %v6803_v1 = vld [vmem:[#allocation19_spill] sm:$0xff] }
 0x227   :  { %v6805_v45 = vld [vmem:[#allocation21_spill] sm:$0xff] }
 0x228   :  { %3877 = vtanh.f32 %v855_v58  ;;  %v6804_v58 = vld [vmem:[#allocation20_spill] sm:$0xff] }
 0x235   :  { %v3878_v0 = vpop.eup %3877 }
 0x236   :  { %v858_v42 = vmul.f32 %v3878_v0, %v857_v49  ;;  %v6807_v49 = vld [vmem:[#allocation23_spill] sm:$0xff]  ;;  %v6808_v0 = vld [vmem:[#allocation24_spill] sm:$0xff] }
 0x238   :  { %v4801_v2 = vadd.f32 %v859_v3, %v858_v42  ;;  %v6809_v42 = vld [vmem:[#allocation25_spill] sm:$0xff]  ;;  %v6810_v3 = vld [vmem:[#allocation26_spill] sm:$0xff] }
 0x23a   :  { %861 = vst [vmem:[%s6549_s6] sm:$0xff] %v4801_v2  ;;  %v862_v60 = vpack.c.bf16 %v4801_v2, %v4801_v2 }
 0x23c   :  { %896 = vmatmul.mubr.bf16.vlgmr.msra.gmra.mxu0 %v862_v60  ;;  %3357 = vmatmul.mubr.bf16.vlgmr.msra.gmra.mxu1 %v862_v60  ;;  %v6811_v60 = vld [vmem:[#allocation27_spill] sm:$0xff] }
 0x23d   :  { %945 = vmatpush1.bf16.msra.mxu0 %v4361_v27  ;;  %3361 = vmatpush3.bf16.msra.mxu1 %v4412_v35 }
 0x23e   :  { %946 = vmatprep.subr.bf16.mxu0 %v4367_v28  ;;  %3362 = vmatprep.subr.bf16.mxu1 %v6777_v26 }
 0x23f   :  { %976 = vmatprep.mubr.bf16.mxu0 %v6787_v61  ;;  %3376 = vmatprep.mubr.msk.bf16.mxu1 %vm4165_vm0, %v6777_v26 }
 0x241   :  { %947 = vmatpush1.bf16.msra.mxu0 %v4380_v30  ;;  %3363 = vmatpush3.bf16.msra.mxu1 %v4431_v38 }
 0x242   :  { %948 = vmatprep.subr.bf16.mxu0 %v4387_v31  ;;  %3364 = vmatprep.subr.bf16.mxu1 %v6777_v26 }
 0x245   :  { %949 = vmatpush1.bf16.msra.mxu0 %v4400_v33  ;;  %3365 = vmatpush3.bf16.msra.mxu1 %v4452_v41 }
 0x246   :  { %950 = vmatprep.subr.bf16.mxu0 %v4406_v34  ;;  %3366 = vmatprep.subr.bf16.mxu1 %v6777_v26 }
 0x249   :  { %951 = vmatpush1.bf16.msra.mxu0 %v4419_v36  ;;  %3367 = vmatpush3.bf16.msra.mxu1 %v4471_v44 }
 0x24a   :  { %952 = vmatprep.subr.bf16.mxu0 %v4425_v37  ;;  %3368 = vmatprep.subr.bf16.mxu1 %v6777_v26 }
 0x24d   :  { %953 = vmatpush1.bf16.msra.mxu0 %v6788_v23  ;;  %3369 = vmatpush3.bf16.msra.mxu1 %v6789_v53 }
 0x24e   :  { %954 = vmatprep.subr.bf16.mxu0 %v6790_v4  ;;  %3370 = vmatprep.subr.bf16.mxu1 %v6777_v26 }
 0x251   :  { %955 = vmatpush1.bf16.msra.mxu0 %v6791_v8  ;;  %3371 = vmatpush3.bf16.msra.mxu1 %v6792_v40 }
 0x252   :  { %956 = vmatprep.subr.bf16.mxu0 %v6793_v63  ;;  %3372 = vmatprep.subr.bf16.mxu1 %v6777_v26 }
 0x255   :  { %957 = vmatpush1.bf16.msra.mxu0 %v6794_v43  ;;  %3373 = vmatpush3.bf16.msra.mxu1 %v6795_v39 }
 0x256   :  { %958 = vmatprep.subr.bf16.mxu0 %v6796_v46  ;;  %3374 = vmatprep.subr.bf16.mxu1 %v6777_v26 }
 0x259   :  { %959 = vmatpush1.bf16.msra.mxu0 %v6797_v47  ;;  %3375 = vmatpush3.bf16.msra.mxu1 %v6798_v54 }
 0x25a   :  { %1051 = vmatprep.subr.bf16.mxu0 %v6799_v9  ;;  %3380 = vmatprep.subr.bf16.mxu1 %v6777_v26 }
 0x25c   :  { %977 = vmatmul.mubr.bf16.vlgmr.msra.gmra.mxu0 %v4728_v50  ;;  %3377 = vmatmul.mubr.bf16.vlgmr.msra.gmra.mxu1 %v4728_v50  ;;  %v6806_v50 = vld [vmem:[#allocation22_spill] sm:$0xff] }
 0x25d   :  { %1052 = vmatpush1.bf16.msra.mxu0 %v6800_v11  ;;  %3381 = vmatpush3.bf16.msra.mxu1 %v6801_v51 }
 0x25e   :  { %1053 = vmatprep.subr.bf16.mxu0 %v6802_v62  ;;  %3382 = vmatprep.subr.bf16.mxu1 %v6777_v26 }
 0x25f   :  { %1083 = vmatprep.mubr.bf16.mxu0 %v6787_v61  ;;  %3396 = vmatprep.mubr.msk.bf16.mxu1 %vm4165_vm0, %v6777_v26 }
 0x261   :  { %1054 = vmatpush1.bf16.msra.mxu0 %v6803_v1  ;;  %3383 = vmatpush3.bf16.msra.mxu1 %v6804_v58  ;;  %v6812_v58 = vld [vmem:[#allocation28_spill] sm:$0xff]  ;;  %v6814_v1 = vld [vmem:[#allocation30_spill] sm:$0xff] }
 0x262   :  { %1055 = vmatprep.subr.bf16.mxu0 %v6805_v45  ;;  %3384 = vmatprep.subr.bf16.mxu1 %v6777_v26  ;;  %v6813_v45 = vld [vmem:[#allocation29_spill] sm:$0xff] }
 0x265   :  { %1056 = vmatpush1.bf16.msra.mxu0 %v6806_v50  ;;  %3385 = vmatpush3.bf16.msra.mxu1 %v6807_v49  ;;  %v6815_v49 = vld [vmem:[#allocation31_spill] sm:$0xff]  ;;  %v6817_v50 = vld [vmem:[#allocation33_spill] sm:$0xff] }
 0x266   :  { %1057 = vmatprep.subr.bf16.mxu0 %v6808_v0  ;;  %3386 = vmatprep.subr.bf16.mxu1 %v6777_v26  ;;  %v6816_v0 = vld [vmem:[#allocation32_spill] sm:$0xff] }
 0x269   :  { %1058 = vmatpush1.bf16.msra.mxu0 %v6809_v42  ;;  %3387 = vmatpush3.bf16.msra.mxu1 %v6810_v3  ;;  %v6818_v3 = vld [vmem:[#allocation34_spill] sm:$0xff]  ;;  %v6820_v42 = vld [vmem:[#allocation36_spill] sm:$0xff] }
 0x26a   :  { %1059 = vmatprep.subr.bf16.mxu0 %v6811_v60  ;;  %3388 = vmatprep.subr.bf16.mxu1 %v6777_v26  ;;  %v6819_v60 = vld [vmem:[#allocation35_spill] sm:$0xff] }
 0x26d   :  { %1060 = vmatpush1.bf16.msra.mxu0 %v6812_v58  ;;  %3389 = vmatpush3.bf16.msra.mxu1 %v6813_v45  ;;  %v6821_v45 = vld [vmem:[#allocation37_spill] sm:$0xff]  ;;  %v6823_v58 = vld [vmem:[#allocation3_spill] sm:$0xff] }
 0x26e   :  { %1061 = vmatprep.subr.bf16.mxu0 %v6814_v1  ;;  %3390 = vmatprep.subr.bf16.mxu1 %v6777_v26  ;;  %v6822_v1 = vld [vmem:[#allocation38_spill] sm:$0xff] }
 0x271   :  { %1062 = vmatpush1.bf16.msra.mxu0 %v6815_v49  ;;  %3391 = vmatpush3.bf16.msra.mxu1 %v6816_v0 }
 0x272   :  { %1063 = vmatprep.subr.bf16.mxu0 %v6817_v50  ;;  %3392 = vmatprep.subr.bf16.mxu1 %v6777_v26 }
 0x275   :  { %1064 = vmatpush1.bf16.msra.mxu0 %v6818_v3  ;;  %3393 = vmatpush3.bf16.msra.mxu1 %v6819_v60 }
 0x276   :  { %1065 = vmatprep.subr.bf16.mxu0 %v6820_v42  ;;  %3394 = vmatprep.subr.bf16.mxu1 %v6777_v26 }
 0x279   :  { %1066 = vmatpush1.bf16.msra.mxu0 %v6821_v45  ;;  %3395 = vmatpush3.bf16.msra.mxu1 %v6822_v1  ;;  %v3008_v1 = vld [vmem:[%s6548_s0 + $0x18] sm:$0xff] }
 0x27a   :  { %1156 = vmatprep.subr.bf16.mxu0 %v6823_v58  ;;  %3400 = vmatprep.subr.bf16.mxu1 %v6777_v26  ;;  %v6824_v58 = vld [vmem:[#allocation39_spill] sm:$0xff] }
 0x2fc   :  { %v4881_v0 = vpop.f32.mrf.mxu0  ;;  %v4883_v50 = vpop.f32.mrf.mxu1 }
 0x2fe   :  { %v4885_v49 = vpop.f32.mrf.mxu0  ;;  %v3358_v3 = vpop.f32.mrf.mxu1 }
 0x300   :  { %v901_v60 = vpop.f32.mrf.mxu0  ;;  %v941_v62 = vpop.f32.mrf.mxu1 }
 0x302   :  { %v902_v42 = vpop.f32.mrf.mxu0  ;;  %v3359_v51 = vpop.f32.mrf.mxu1 }
 0x303   :  { %v3009_v51 = vld [vmem:[%s6548_s0 + $0x20] sm:$0xff] }
 0x31c   :  { %v978_v11 = vpop.f32.mrf.mxu0  ;;  %v1019_v45 = vpop.f32.mrf.mxu1 }
 0x31d   :  { %v979_v9 = vadd.f32 %v978_v11, %v6824_v58 }
 0x31e   :  { %v980_v54 = vpop.f32.mrf.mxu0  ;;  %v3378_v47 = vpop.f32.mrf.mxu1 }
 0x31f   :  { %v1029_v46 = vadd.f32 %v3008_v1, %v979_v9  ;;  %v981_v3 = vadd.f32 %v980_v54, %v4708_v56 }
 0x320   :  { %v982_v39 = vpop.f32.mrf.mxu0  ;;  %v1022_v43 = vpop.f32.mrf.mxu1 }
 0x321   :  { %v3011_v63 = vmul.f32 -1.442695, %v1029_v46  ;;  %v1036_v60 = vadd.f32 %v3009_v51, %v981_v3  ;;  %v1020_v43 = vadd.f32 %v1019_v45, %v4717_v59  ;;  %v3010_v46 = vld [vmem:[%s6548_s0 + $0x28] sm:$0xff] }
 0x322   :  { %v983_v62 = vpop.f32.mrf.mxu0  ;;  %v3379_v42 = vpop.f32.mrf.mxu1 }
 0x323   :  { %3879 = vpow2.f32 %v3011_v63  ;;  %v3012_v40 = vmul.f32 -1.442695, %v1036_v60  ;;  %v4911_v42 = vld [vmem:[%s6543_s4 + $0xa8] ss:$12 sps:$4 sm:$0xff]   ;;  %v4928_v60 = vld [vmem:[%s6543_s4 + $0x90] ss:$12 sps:$4 sm:$0xff]  }
 0x325   :  { %3881 = vpow2.f32 %v3012_v40 }
 0x330   :  { %v3880_v8 = vpop.eup %3879 }
 0x331   :  { %v1033_v11 = vadd.f32 1.0, %v3880_v8 }
 0x332   :  { %v3882_v47 = vpop.eup %3881 }
 0x333   :  { %3883 = vrcp.f32 %v1033_v11  ;;  %v1040_v9 = vadd.f32 1.0, %v3882_v47  ;;  %v4942_v11 = vld [vmem:[%s6543_s4 + $0x78] ss:$12 sps:$4 sm:$0xff]   ;;  %v4956_v47 = vld [vmem:[%s6543_s4 + $0x60] ss:$12 sps:$4 sm:$0xff]  }
 0x335   :  { %3885 = vrcp.f32 %v1040_v9 }
 0x340   :  { %v3884_v39 = vpop.eup %3883 }
 0x341   :  { %v1043_v54 = vmul.f32 %v3884_v39, %v1020_v43 }
 0x342   :  { %v3886_v63 = vpop.eup %3885 }
 0x343   :  { %v1044_v1 = vadd.f32 %v3010_v46, %v1043_v54  ;;  %v1046_v3 = vsub.f32 1.0, %v3886_v63  ;;  %v1048_v8 = vmul.f32 %v3886_v63, %v4724_v55  ;;  %v4918_v55 = vld [vmem:[%s6543_s4 + $0x94] ss:$12 sps:$4 sm:$0xff]   ;;  %v939_v63 = vadd.f32 %v4883_v50, %v4792_v52 }
 0x345   :  { %3887 = vtanh.f32 %v1044_v1 }
 0x352   :  { %v3888_v51 = vpop.eup %3887 }
 0x353   :  { %v1047_v40 = vmul.f32 %v3888_v51, %v1046_v3 }
 0x355   :  { %v4900_v62 = vadd.f32 %v1048_v8, %v1047_v40 }
 0x357   :  { %v4904_v45 = vpack.c.bf16 %v4900_v62, %v4900_v62 }
 0x359   :  { %1084 = vmatmul.mubr.bf16.vlgmr.msra.gmra.mxu0 %v4904_v45  ;;  %3397 = vmatmul.mubr.bf16.vlgmr.msra.gmra.mxu1 %v4904_v45 }
 0x35a   :  { %1157 = vmatpush1.bf16.msra.mxu0 %v4911_v42  ;;  %3401 = vmatpush3.bf16.msra.mxu1 %v4259_v10  ;;  %v4935_v10 = vld [vmem:[%s6543_s4 + $0x7c] ss:$12 sps:$4 sm:$0xff]  }
 0x35b   :  { %1158 = vmatprep.subr.bf16.mxu0 %v4918_v55  ;;  %3402 = vmatprep.subr.bf16.mxu1 %v6777_v26 }
 0x35c   :  { %1188 = vmatprep.mubr.bf16.mxu0 %v6787_v61  ;;  %3416 = vmatprep.mubr.msk.bf16.mxu1 %vm4165_vm0, %v6777_v26 }
 0x35e   :  { %1159 = vmatpush1.bf16.msra.mxu0 %v4928_v60  ;;  %3403 = vmatpush3.bf16.msra.mxu1 %v4272_v12  ;;  %v4949_v12 = vld [vmem:[%s6543_s4 + $0x64] ss:$12 sps:$4 sm:$0xff]  }
 0x35f   :  { %1160 = vmatprep.subr.bf16.mxu0 %v4935_v10  ;;  %3404 = vmatprep.subr.bf16.mxu1 %v6777_v26 }
 0x362   :  { %1161 = vmatpush1.bf16.msra.mxu0 %v4942_v11  ;;  %3405 = vmatpush3.bf16.msra.mxu1 %v4290_v15  ;;  %v4963_v15 = vld [vmem:[%s6543_s4 + $0x4c] ss:$12 sps:$4 sm:$0xff]  }
 0x363   :  { %1162 = vmatprep.subr.bf16.mxu0 %v4949_v12  ;;  %3406 = vmatprep.subr.bf16.mxu1 %v6777_v26 }
 0x366   :  { %1163 = vmatpush1.bf16.msra.mxu0 %v4956_v47  ;;  %3407 = vmatpush3.bf16.msra.mxu1 %v4309_v18 }
 0x367   :  { %1164 = vmatprep.subr.bf16.mxu0 %v4963_v15  ;;  %3408 = vmatprep.subr.bf16.mxu1 %v6777_v26 }
 0x36a   :  { %1165 = vmatpush1.bf16.msra.mxu0 %v4278_v13  ;;  %3409 = vmatpush3.bf16.msra.mxu1 %v4328_v21 }
 0x36b   :  { %1166 = vmatprep.subr.bf16.mxu0 %v4284_v14  ;;  %3410 = vmatprep.subr.bf16.mxu1 %v6777_v26 }
 0x36e   :  { %1167 = vmatpush1.bf16.msra.mxu0 %v4297_v16  ;;  %3411 = vmatpush3.bf16.msra.mxu1 %v4352_v25  ;;  %v898_v16 = vadd.f32 %v4881_v0, %v4774_v5 }
 0x36f   :  { %1168 = vmatprep.subr.bf16.mxu0 %v4303_v17  ;;  %3412 = vmatprep.subr.bf16.mxu1 %v6777_v26 }
 0x372   :  { %1169 = vmatpush1.bf16.msra.mxu0 %v4316_v19  ;;  %3413 = vmatpush3.bf16.msra.mxu1 %v4373_v29 }
 0x373   :  { %1170 = vmatprep.subr.bf16.mxu0 %v4322_v20  ;;  %3414 = vmatprep.subr.bf16.mxu1 %v6777_v26 }
 0x376   :  { %1171 = vmatpush1.bf16.msra.mxu0 %v4333_v22  ;;  %3415 = vmatpush3.bf16.msra.mxu1 %v4393_v32 }
 0x377   :  { %1237 = vmatprep.subr.bf16.mxu0 %v4346_v24  ;;  %3420 = vmatprep.subr.bf16.mxu1 %v6777_v26  ;;  %v900_v24 = vadd.f32 %v4885_v49, %v4786_v57 }
 0x419   :  { %v1085_v13 = vpop.f32.mrf.mxu0  ;;  %v1126_v14 = vpop.f32.mrf.mxu1 }
 0x41a   :  { %v1086_v17 = vadd.f32 %v1085_v13, %v4777_v6  ;;  %v1127_v51 = vadd.f32 %v1126_v14, %v4795_v7  ;;  %v6842_v14 = vld [vmem:[#allocation24_spill] sm:$0xff] }
 0x41b   :  { %v1087_v18 = vpop.f32.mrf.mxu0  ;;  %v3398_v19 = vpop.f32.mrf.mxu1 }
 0x41c   :  { %v1132_v20 = vadd.f32 %v1086_v17, %v898_v16  ;;  %v1088_v22 = vadd.f32 %v1087_v18, %v4783_v48 }
 0x41d   :  { %v1089_v21 = vpop.f32.mrf.mxu0  ;;  %v1129_v25 = vpop.f32.mrf.mxu1 }
 0x41e   :  { %v3013_v29 = vmul.f32 -1.442695, %v1132_v20  ;;  %v1139_v43 = vadd.f32 %v1088_v22, %v900_v24  ;;  %v6843_v20 = vld [vmem:[#allocation25_spill] sm:$0xff]  ;;  %v6844_v21 = vld [vmem:[#allocation26_spill] sm:$0xff]  ;;  %v6845_v25 = vld [vmem:[#allocation27_spill] sm:$0xff] }
 0x41f   :  { %v1090_v32 = vpop.f32.mrf.mxu0  ;;  %v3399_v9 = vpop.f32.mrf.mxu1  ;;  %v6847_v22 = vld [vmem:[#allocation29_spill] sm:$0xff]  ;;  %v6850_v24 = vld [vmem:[#allocation32_spill] sm:$0xff] }
 0x420   :  { %3889 = vpow2.f32 %v3013_v29  ;;  %v3014_v39 = vmul.f32 -1.442695, %v1139_v43  ;;  %v6846_v29 = vld [vmem:[#allocation28_spill] sm:$0xff]  ;;  %v6848_v32 = vld [vmem:[#allocation30_spill] sm:$0xff]  ;;  %v6849_v9 = vld [vmem:[#allocation31_spill] sm:$0xff] }
 0x421   :  { %v6851_v43 = vld [vmem:[#allocation33_spill] sm:$0xff] }
 0x422   :  { %3891 = vpow2.f32 %v3014_v39  ;;  %v6852_v39 = vld [vmem:[#allocation34_spill] sm:$0xff] }
 0x42d   :  { %v3890_v0 = vpop.eup %3889 }
 0x42e   :  { %v1136_v46 = vadd.f32 1.0, %v3890_v0  ;;  %v6853_v0 = vld [vmem:[#allocation35_spill] sm:$0xff] }
 0x42f   :  { %v3892_v54 = vpop.eup %3891 }
 0x430   :  { %3893 = vrcp.f32 %v1136_v46  ;;  %v1143_v1 = vadd.f32 1.0, %v3892_v54  ;;  %v6854_v46 = vld [vmem:[#allocation36_spill] sm:$0xff]  ;;  %v6855_v54 = vld [vmem:[#allocation37_spill] sm:$0xff] }
 0x432   :  { %3895 = vrcp.f32 %v1143_v1  ;;  %v6856_v1 = vld [vmem:[#allocation38_spill] sm:$0xff] }
 0x43d   :  { %v3894_v3 = vpop.eup %3893 }
 0x43e   :  { %v1146_v40 = vmul.f32 %v3894_v3, %v939_v63  ;;  %v5074_v63 = vld [vmem:[%s6543_s4 + $0xac] ss:$12 sps:$4 sm:$0xff]  }
 0x43f   :  { %v3896_v49 = vpop.eup %3895  ;;  %6857 = vst [vmem:[#allocation4_spill] sm:$0xff] %v5074_v63 }
 0x440   :  { %v1147_v8 = vadd.f32 %v1146_v40, %v1127_v51  ;;  %v1149_v13 = vsub.f32 1.0, %v3896_v49  ;;  %v1151_v18 = vmul.f32 %v3896_v49, %v4801_v2  ;;  %v6837_v2 = vld [vmem:[#allocation19_spill] sm:$0xff] }
 0x442   :  { %3897 = vtanh.f32 %v1147_v8 }
 0x44f   :  { %v3898_v16 = vpop.eup %3897 }
 0x450   :  { %v1150_v17 = vmul.f32 %v3898_v16, %v1149_v13 }
 0x452   :  { %v4993_v19 = vadd.f32 %v1151_v18, %v1150_v17 }
 0x454   :  { %3015 = vst [vmem:[%s6549_s6 + $0x8] sm:$0xff] %v4993_v19  ;;  %v1155_v50 = vpack.c.bf16 %v4993_v19, %v4993_v19 }
 0x456   :  { %1189 = vmatmul.mubr.bf16.vlgmr.msra.gmra.mxu0 %v1155_v50  ;;  %3417 = vmatmul.mubr.bf16.vlgmr.msra.gmra.mxu1 %v1155_v50  ;;  %v3016_v50 = vld [vmem:[%s6548_s0 + $0x30] sm:$0xff] }
 0x457   :  { %1238 = vmatpush1.bf16.msra.mxu0 %v4361_v27  ;;  %3421 = vmatpush3.bf16.msra.mxu1 %v4412_v35  ;;  %v6825_v27 = vld [vmem:[#allocation6_spill] sm:$0xff]  ;;  %v6831_v35 = vld [vmem:[#allocation11_spill] sm:$0xff] }
 0x458   :  { %1239 = vmatprep.subr.bf16.mxu0 %v4367_v28  ;;  %3422 = vmatprep.subr.bf16.mxu1 %v6777_v26  ;;  %v6826_v28 = vld [vmem:[#allocation12_spill] sm:$0xff] }
 0x459   :  { %1269 = vmatprep.mubr.bf16.mxu0 %v6787_v61  ;;  %3436 = vmatprep.mubr.msk.bf16.mxu1 %vm4165_vm0, %v6777_v26 }
 0x45b   :  { %1240 = vmatpush1.bf16.msra.mxu0 %v4380_v30  ;;  %3423 = vmatpush3.bf16.msra.mxu1 %v4431_v38  ;;  %v6827_v30 = vld [vmem:[#allocation7_spill] sm:$0xff]  ;;  %v6834_v38 = vld [vmem:[#allocation16_spill] sm:$0xff] }
 0x45c   :  { %1241 = vmatprep.subr.bf16.mxu0 %v4387_v31  ;;  %3424 = vmatprep.subr.bf16.mxu1 %v6777_v26  ;;  %v6828_v31 = vld [vmem:[#allocation8_spill] sm:$0xff] }
 0x45f   :  { %1242 = vmatpush1.bf16.msra.mxu0 %v4400_v33  ;;  %3425 = vmatpush3.bf16.msra.mxu1 %v4452_v41  ;;  %v6829_v33 = vld [vmem:[#allocation13_spill] sm:$0xff] }
 0x460   :  { %1243 = vmatprep.subr.bf16.mxu0 %v4406_v34  ;;  %3426 = vmatprep.subr.bf16.mxu1 %v6777_v26  ;;  %v6830_v34 = vld [vmem:[#allocation9_spill] sm:$0xff] }
 0x461   :  { %v6835_v41 = vld [vmem:[#allocation17_spill] sm:$0xff] }
 0x463   :  { %1244 = vmatpush1.bf16.msra.mxu0 %v4419_v36  ;;  %3427 = vmatpush3.bf16.msra.mxu1 %v4471_v44  ;;  %v6832_v36 = vld [vmem:[#allocation14_spill] sm:$0xff] }
 0x464   :  { %1245 = vmatprep.subr.bf16.mxu0 %v4425_v37  ;;  %3428 = vmatprep.subr.bf16.mxu1 %v6777_v26  ;;  %v6833_v37 = vld [vmem:[#allocation15_spill] sm:$0xff]  ;;  %v6836_v44 = vld [vmem:[#allocation18_spill] sm:$0xff] }
 0x467   :  { %1246 = vmatpush1.bf16.msra.mxu0 %v6788_v23  ;;  %3429 = vmatpush3.bf16.msra.mxu1 %v6789_v53  ;;  %v6838_v23 = vld [vmem:[#allocation20_spill] sm:$0xff]  ;;  %v6839_v53 = vld [vmem:[#allocation21_spill] sm:$0xff] }
 0x468   :  { %1247 = vmatprep.subr.bf16.mxu0 %v6790_v4  ;;  %3430 = vmatprep.subr.bf16.mxu1 %v6777_v26  ;;  %v6840_v4 = vld [vmem:[#allocation22_spill] sm:$0xff] }
 0x46b   :  { %1248 = vmatpush1.bf16.msra.mxu0 %v6825_v27  ;;  %3431 = vmatpush3.bf16.msra.mxu1 %v6826_v28 }
 0x46c   :  { %1249 = vmatprep.subr.bf16.mxu0 %v6827_v30  ;;  %3432 = vmatprep.subr.bf16.mxu1 %v6777_v26 }
 0x46f   :  { %1250 = vmatpush1.bf16.msra.mxu0 %v6828_v31  ;;  %3433 = vmatpush3.bf16.msra.mxu1 %v6829_v33 }
 0x470   :  { %1251 = vmatprep.subr.bf16.mxu0 %v6830_v34  ;;  %3434 = vmatprep.subr.bf16.mxu1 %v6777_v26 }
 0x473   :  { %1252 = vmatpush1.bf16.msra.mxu0 %v6831_v35  ;;  %3435 = vmatpush3.bf16.msra.mxu1 %v6832_v36 }
 0x474   :  { %1344 = vmatprep.subr.bf16.mxu0 %v6833_v37  ;;  %3440 = vmatprep.subr.bf16.mxu1 %v6777_v26 }
 0x476   :  { %1270 = vmatmul.mubr.bf16.vlgmr.msra.gmra.mxu0 %v4904_v45  ;;  %3437 = vmatmul.mubr.bf16.vlgmr.msra.gmra.mxu1 %v4904_v45  ;;  %v6841_v45 = vld [vmem:[#allocation23_spill] sm:$0xff] }
 0x477   :  { %1345 = vmatpush1.bf16.msra.mxu0 %v6834_v38  ;;  %3441 = vmatpush3.bf16.msra.mxu1 %v6835_v41  ;;  %v3017_v38 = vld [vmem:[%s6548_s0 + $0x38] sm:$0xff] }
 0x478   :  { %1346 = vmatprep.subr.bf16.mxu0 %v6836_v44  ;;  %3442 = vmatprep.subr.bf16.mxu1 %v6777_v26 }
 0x479   :  { %1376 = vmatprep.mubr.bf16.mxu0 %v6787_v61  ;;  %3456 = vmatprep.mubr.msk.bf16.mxu1 %vm4165_vm0, %v6777_v26 }
 0x47b   :  { %1347 = vmatpush1.bf16.msra.mxu0 %v6837_v2  ;;  %3443 = vmatpush3.bf16.msra.mxu1 %v6838_v23 }
 0x47c   :  { %1348 = vmatprep.subr.bf16.mxu0 %v6839_v53  ;;  %3444 = vmatprep.subr.bf16.mxu1 %v6777_v26 }
 0x47f   :  { %1349 = vmatpush1.bf16.msra.mxu0 %v6840_v4  ;;  %3445 = vmatpush3.bf16.msra.mxu1 %v6841_v45 }
 0x480   :  { %1350 = vmatprep.subr.bf16.mxu0 %v6842_v14  ;;  %3446 = vmatprep.subr.bf16.mxu1 %v6777_v26 }
 0x483   :  { %1351 = vmatpush1.bf16.msra.mxu0 %v6843_v20  ;;  %3447 = vmatpush3.bf16.msra.mxu1 %v6844_v21 }
 0x484   :  { %1352 = vmatprep.subr.bf16.mxu0 %v6845_v25  ;;  %3448 = vmatprep.subr.bf16.mxu1 %v6777_v26  ;;  %v3018_v25 = vld [vmem:[%s6548_s0 + $0x40] sm:$0xff] }
 0x487   :  { %1353 = vmatpush1.bf16.msra.mxu0 %v6846_v29  ;;  %3449 = vmatpush3.bf16.msra.mxu1 %v6847_v22 }
 0x488   :  { %1354 = vmatprep.subr.bf16.mxu0 %v6848_v32  ;;  %3450 = vmatprep.subr.bf16.mxu1 %v6777_v26 }
 0x48b   :  { %1355 = vmatpush1.bf16.msra.mxu0 %v6849_v9  ;;  %3451 = vmatpush3.bf16.msra.mxu1 %v6850_v24 }
 0x48c   :  { %1356 = vmatprep.subr.bf16.mxu0 %v6851_v43  ;;  %3452 = vmatprep.subr.bf16.mxu1 %v6777_v26 }
 0x48f   :  { %1357 = vmatpush1.bf16.msra.mxu0 %v6852_v39  ;;  %3453 = vmatpush3.bf16.msra.mxu1 %v6853_v0 }
 0x490   :  { %1358 = vmatprep.subr.bf16.mxu0 %v6854_v46  ;;  %3454 = vmatprep.subr.bf16.mxu1 %v6777_v26 }
 0x493   :  { %1359 = vmatpush1.bf16.msra.mxu0 %v6855_v54  ;;  %3455 = vmatpush3.bf16.msra.mxu1 %v6856_v1  ;;  %v5109_v54 = vld [vmem:[%s6543_s4 + $0xb0] ss:$12 sps:$4 sm:$0xff]   ;;  %v5130_v1 = vld [vmem:[%s6543_s4 + $0x80] ss:$12 sps:$4 sm:$0xff]  }
 0x494   :  { %1449 = vmatprep.subr.bf16.mxu0 %v5074_v63  ;;  %3460 = vmatprep.subr.bf16.mxu1 %v6777_v26 }
 0x516   :  { %v5078_v3 = vpop.f32.mrf.mxu0  ;;  %v5080_v51 = vpop.f32.mrf.mxu1 }
 0x518   :  { %v5082_v40 = vpop.f32.mrf.mxu0  ;;  %v3418_v8 = vpop.f32.mrf.mxu1 }
 0x519   :  { %v5139_v8 = vld [vmem:[%s6543_s4 + $0x68] ss:$12 sps:$4 sm:$0xff]  }
 0x51a   :  { %v1194_v49 = vpop.f32.mrf.mxu0  ;;  %v1234_v13 = vpop.f32.mrf.mxu1 }
 0x51b   :  { %v5147_v49 = vld [vmem:[%s6543_s4 + $0x48] ss:$12 sps:$4 sm:$0xff]   ;;  %v5153_v13 = vld [vmem:[%s6543_s4 + $0x50] ss:$12 sps:$4 sm:$0xff]  }
 0x51c   :  { %v1195_v16 = vpop.f32.mrf.mxu0  ;;  %v3419_v17 = vpop.f32.mrf.mxu1 }
 0x51d   :  { %v5159_v16 = vld [vmem:[%s6543_s4 + $0x34] ss:$12 sps:$4 sm:$0xff]   ;;  %v5166_v17 = vld [vmem:[%s6543_s4 + $0x30] ss:$12 sps:$4 sm:$0xff]  }
 0x536   :  { %v1271_v18 = vpop.f32.mrf.mxu0  ;;  %v1312_v27 = vpop.f32.mrf.mxu1 }
 0x537   :  { %v1272_v28 = vadd.f32 %v1271_v18, %v6824_v58  ;;  %v1313_v20 = vadd.f32 %v1312_v27, %v4717_v59  ;;  %v5172_v18 = vld [vmem:[%s6543_s4 + $0x38] ss:$12 sps:$4 sm:$0xff]  }
 0x538   :  { %v1273_v30 = vpop.f32.mrf.mxu0  ;;  %v3438_v31 = vpop.f32.mrf.mxu1  ;;  %v5185_v27 = vld [vmem:[%s6543_s4 + $0x18] ss:$12 sps:$4 sm:$0xff]  }
 0x539   :  { %v1322_v33 = vadd.f32 %v3016_v50, %v1272_v28  ;;  %v1274_v37 = vadd.f32 %v1273_v30, %v4708_v56  ;;  %v5178_v50 = vld [vmem:[%s6543_s4 + $0x1c] ss:$12 sps:$4 sm:$0xff]   ;;  %v5191_v28 = vld [vmem:[%s6543_s4 + $0x20] ss:$12 sps:$4 sm:$0xff]   ;;  %v5197_v30 = vld [vmem:[%s6543_s4 + $0x4] ss:$12 sps:$4 sm:$0xff]  }
 0x53a   :  { %v1275_v34 = vpop.f32.mrf.mxu0  ;;  %v1315_v35 = vpop.f32.mrf.mxu1  ;;  %v5204_v31 = vld [vmem:[%s6543_s4] ss:$12 sps:$4 sm:$0xff]  }
 0x53b   :  { %v3019_v36 = vmul.f32 -1.442695, %v1322_v33  ;;  %v1329_v2 = vadd.f32 %v3017_v38, %v1274_v37  ;;  %v5210_v33 = vld [vmem:[%s6543_s4 + $0x8] ss:$12 sps:$4 sm:$0xff]   ;;  %v5216_v34 = vld [vmem:[%s6544_s2 + $0xac] ss:$12 sps:$4 sm:$0xff]   ;;  %v1191_v37 = vadd.f32 %v5078_v3, %v4774_v5 }
 0x53c   :  { %v1276_v41 = vpop.f32.mrf.mxu0  ;;  %v3439_v44 = vpop.f32.mrf.mxu1 }
 0x53d   :  { %3899 = vpow2.f32 %v3019_v36  ;;  %v3020_v23 = vmul.f32 -1.442695, %v1329_v2 }
 0x53f   :  { %3901 = vpow2.f32 %v3020_v23 }
 0x54a   :  { %v3900_v53 = vpop.eup %3899 }
 0x54b   :  { %v1326_v4 = vadd.f32 1.0, %v3900_v53 }
 0x54c   :  { %v3902_v45 = vpop.eup %3901 }
 0x54d   :  { %3903 = vrcp.f32 %v1326_v4  ;;  %v1333_v14 = vadd.f32 1.0, %v3902_v45 }
 0x54f   :  { %3905 = vrcp.f32 %v1333_v14 }
 0x55a   :  { %v3904_v21 = vpop.eup %3903 }
 0x55b   :  { %v1336_v29 = vmul.f32 %v3904_v21, %v1313_v20  ;;  %v1193_v21 = vadd.f32 %v5082_v40, %v4786_v57 }
 0x55c   :  { %v3906_v32 = vpop.eup %3905 }
 0x55d   :  { %v1337_v22 = vadd.f32 %v3018_v25, %v1336_v29  ;;  %v1339_v9 = vsub.f32 1.0, %v3906_v32  ;;  %v1341_v39 = vmul.f32 %v3906_v32, %v4900_v62  ;;  %v5121_v62 = vld [vmem:[%s6543_s4 + $0x98] ss:$12 sps:$4 sm:$0xff]  }
 0x55f   :  { %3907 = vtanh.f32 %v1337_v22 }
 0x56c   :  { %v3908_v24 = vpop.eup %3907 }
 0x56d   :  { %v1340_v43 = vmul.f32 %v3908_v24, %v1339_v9  ;;  %v1232_v24 = vadd.f32 %v5080_v51, %v4792_v52 }
 0x56f   :  { %v5097_v0 = vadd.f32 %v1341_v39, %v1340_v43 }
 0x571   :  { %v5101_v46 = vpack.c.bf16 %v5097_v0, %v5097_v0 }
 0x573   :  { %1377 = vmatmul.mubr.bf16.vlgmr.msra.gmra.mxu0 %v5101_v46  ;;  %3457 = vmatmul.mubr.bf16.vlgmr.msra.gmra.mxu1 %v5101_v46 }
 0x574   :  { %1450 = vmatpush1.bf16.msra.mxu0 %v4911_v42  ;;  %3461 = vmatpush3.bf16.msra.mxu1 %v5109_v54 }
 0x575   :  { %1451 = vmatprep.subr.bf16.mxu0 %v4918_v55  ;;  %3462 = vmatprep.subr.bf16.mxu1 %v6777_v26 }
 0x576   :  { %1481 = vmatprep.mubr.bf16.mxu0 %v6787_v61  ;;  %3476 = vmatprep.mubr.msk.bf16.mxu1 %vm4165_vm0, %v6777_v26 }
 0x578   :  { %1452 = vmatpush1.bf16.msra.mxu0 %v4928_v60  ;;  %3463 = vmatpush3.bf16.msra.mxu1 %v5121_v62 }
 0x579   :  { %1453 = vmatprep.subr.bf16.mxu0 %v4935_v10  ;;  %3464 = vmatprep.subr.bf16.mxu1 %v6777_v26 }
 0x57c   :  { %1454 = vmatpush1.bf16.msra.mxu0 %v4942_v11  ;;  %3465 = vmatpush3.bf16.msra.mxu1 %v5130_v1 }
 0x57d   :  { %1455 = vmatprep.subr.bf16.mxu0 %v4949_v12  ;;  %3466 = vmatprep.subr.bf16.mxu1 %v6777_v26 }
 0x580   :  { %1456 = vmatpush1.bf16.msra.mxu0 %v4956_v47  ;;  %3467 = vmatpush3.bf16.msra.mxu1 %v5139_v8 }
 0x581   :  { %1457 = vmatprep.subr.bf16.mxu0 %v4963_v15  ;;  %3468 = vmatprep.subr.bf16.mxu1 %v6777_v26 }
 0x584   :  { %1458 = vmatpush1.bf16.msra.mxu0 %v5147_v49  ;;  %3469 = vmatpush3.bf16.msra.mxu1 %v5153_v13 }
 0x585   :  { %1459 = vmatprep.subr.bf16.mxu0 %v5159_v16  ;;  %3470 = vmatprep.subr.bf16.mxu1 %v6777_v26 }
 0x588   :  { %1460 = vmatpush1.bf16.msra.mxu0 %v5166_v17  ;;  %3471 = vmatpush3.bf16.msra.mxu1 %v5172_v18 }
 0x589   :  { %1461 = vmatprep.subr.bf16.mxu0 %v5178_v50  ;;  %3472 = vmatprep.subr.bf16.mxu1 %v6777_v26 }
 0x58c   :  { %1462 = vmatpush1.bf16.msra.mxu0 %v5185_v27  ;;  %3473 = vmatpush3.bf16.msra.mxu1 %v5191_v28 }
 0x58d   :  { %1463 = vmatprep.subr.bf16.mxu0 %v5197_v30  ;;  %3474 = vmatprep.subr.bf16.mxu1 %v6777_v26 }
 0x590   :  { %1464 = vmatpush1.bf16.msra.mxu0 %v5204_v31  ;;  %3475 = vmatpush3.bf16.msra.mxu1 %v5210_v33 }
 0x591   :  { %1530 = vmatprep.subr.bf16.mxu0 %v5216_v34  ;;  %3480 = vmatprep.subr.bf16.mxu1 %v6777_v26 }
 0x633   :  { %v1378_v35 = vpop.f32.mrf.mxu0  ;;  %v1419_v36 = vpop.f32.mrf.mxu1 }
 0x634   :  { %v1379_v38 = vadd.f32 %v1378_v35, %v4777_v6  ;;  %v1420_v39 = vadd.f32 %v1419_v36, %v4795_v7  ;;  %v5241_v36 = vld [vmem:[%s6544_s2 + $0xa8] ss:$12 sps:$4 sm:$0xff]  }
 0x635   :  { %v1380_v41 = vpop.f32.mrf.mxu0  ;;  %v3458_v44 = vpop.f32.mrf.mxu1 }
 0x636   :  { %v1425_v2 = vadd.f32 %v1379_v38, %v1191_v37  ;;  %v1381_v45 = vadd.f32 %v1380_v41, %v4783_v48 }
 0x637   :  { %v1382_v23 = vpop.f32.mrf.mxu0  ;;  %v1422_v53 = vpop.f32.mrf.mxu1 }
 0x638   :  { %v3021_v4 = vmul.f32 -1.442695, %v1425_v2  ;;  %v1432_v25 = vadd.f32 %v1381_v45, %v1193_v21  ;;  %v5253_v53 = vld [vmem:[%s6544_s2 + $0x94] ss:$12 sps:$4 sm:$0xff]   ;;  %v5269_v45 = vld [vmem:[%s6544_s2 + $0x98] ss:$12 sps:$4 sm:$0xff]  }
 0x639   :  { %v1383_v14 = vpop.f32.mrf.mxu0  ;;  %v3459_v20 = vpop.f32.mrf.mxu1  ;;  %v5288_v21 = vld [vmem:[%s6544_s2 + $0x80] ss:$12 sps:$4 sm:$0xff]  }
 0x63a   :  { %3909 = vpow2.f32 %v3021_v4  ;;  %v3022_v29 = vmul.f32 -1.442695, %v1432_v25  ;;  %v5263_v4 = vld [vmem:[%s6544_s2 + $0x90] ss:$12 sps:$4 sm:$0xff]   ;;  %v5282_v20 = vld [vmem:[%s6544_s2 + $0x78] ss:$12 sps:$4 sm:$0xff]  }
 0x63b   :  { %v5275_v14 = vld [vmem:[%s6544_s2 + $0x7c] ss:$12 sps:$4 sm:$0xff]   ;;  %6858 = vst [vmem:[#allocation10_spill] sm:$0xff] %v5288_v21  ;;  %v5294_v25 = vld [vmem:[%s6544_s2 + $0x64] ss:$12 sps:$4 sm:$0xff]  }
 0x63c   :  { %3911 = vpow2.f32 %v3022_v29  ;;  %6859 = vst [vmem:[#allocation5_spill] sm:$0xff] %v5294_v25  ;;  %v5301_v29 = vld [vmem:[%s6544_s2 + $0x60] ss:$12 sps:$4 sm:$0xff]  }
 0x63d   :  { %6860 = vst [vmem:[#allocation3_spill] sm:$0xff] %v5301_v29 }
 0x647   :  { %v3910_v3 = vpop.eup %3909 }
 0x648   :  { %v1429_v22 = vadd.f32 1.0, %v3910_v3  ;;  %v5307_v3 = vld [vmem:[%s6544_s2 + $0x68] ss:$12 sps:$4 sm:$0xff]  }
 0x649   :  { %v3912_v32 = vpop.eup %3911  ;;  %6861 = vst [vmem:[#allocation39_spill] sm:$0xff] %v5307_v3 }
 0x64a   :  { %3913 = vrcp.f32 %v1429_v22  ;;  %v1436_v9 = vadd.f32 1.0, %v3912_v32  ;;  %v5313_v22 = vld [vmem:[%s6544_s2 + $0x4c] ss:$12 sps:$4 sm:$0xff]   ;;  %v5320_v32 = vld [vmem:[%s6544_s2 + $0x48] ss:$12 sps:$4 sm:$0xff]  }
 0x64b   :  { %6862 = vst [vmem:[#allocation6_spill] sm:$0xff] %v5313_v22  ;;  %6863 = vst [vmem:[#allocation12_spill] sm:$0xff] %v5320_v32 }
 0x64c   :  { %3915 = vrcp.f32 %v1436_v9  ;;  %v5326_v9 = vld [vmem:[%s6544_s2 + $0x50] ss:$12 sps:$4 sm:$0xff]  }
 0x64d   :  { %6864 = vst [vmem:[#allocation7_spill] sm:$0xff] %v5326_v9 }
 0x657   :  { %v3914_v43 = vpop.eup %3913 }
 0x658   :  { %v1439_v35 = vmul.f32 %v3914_v43, %v1232_v24  ;;  %v5332_v24 = vld [vmem:[%s6544_s2 + $0x34] ss:$12 sps:$4 sm:$0xff]   ;;  %v5339_v43 = vld [vmem:[%s6544_s2 + $0x30] ss:$12 sps:$4 sm:$0xff]  }
 0x659   :  { %v3916_v40 = vpop.eup %3915  ;;  %6865 = vst [vmem:[#allocation8_spill] sm:$0xff] %v5332_v24  ;;  %6866 = vst [vmem:[#allocation13_spill] sm:$0xff] %v5339_v43 }
 0x65a   :  { %v1440_v37 = vadd.f32 %v1439_v35, %v1420_v39  ;;  %v1442_v38 = vsub.f32 1.0, %v3916_v40  ;;  %v1444_v2 = vmul.f32 %v3916_v40, %v4993_v19  ;;  %v5247_v19 = vld [vmem:[%s6544_s2 + $0xb0] ss:$12 sps:$4 sm:$0xff]   ;;  %v5345_v39 = vld [vmem:[%s6544_s2 + $0x38] ss:$12 sps:$4 sm:$0xff]  }
 0x65b   :  { %6867 = vst [vmem:[#allocation9_spill] sm:$0xff] %v5345_v39  ;;  %v5351_v35 = vld [vmem:[%s6544_s2 + $0x1c] ss:$12 sps:$4 sm:$0xff]   ;;  %v5364_v40 = vld [vmem:[%s6544_s2 + $0x20] ss:$12 sps:$4 sm:$0xff]  }
 0x65c   :  { %3917 = vtanh.f32 %v1440_v37  ;;  %6868 = vst [vmem:[#allocation11_spill] sm:$0xff] %v5351_v35  ;;  %v5358_v37 = vld [vmem:[%s6544_s2 + $0x18] ss:$12 sps:$4 sm:$0xff]   ;;  %6870 = vst [vmem:[#allocation15_spill] sm:$0xff] %v5364_v40 }
 0x65d   :  { %6869 = vst [vmem:[#allocation14_spill] sm:$0xff] %v5358_v37 }
 0x669   :  { %v3918_v41 = vpop.eup %3917 }
 0x66a   :  { %v1443_v44 = vmul.f32 %v3918_v41, %v1442_v38  ;;  %v5370_v38 = vld [vmem:[%s6544_s2 + $0x4] ss:$12 sps:$4 sm:$0xff]   ;;  %v5377_v41 = vld [vmem:[%s6544_s2] ss:$12 sps:$4 sm:$0xff]  }
 0x66b   :  { %6871 = vst [vmem:[#allocation16_spill] sm:$0xff] %v5370_v38  ;;  %6872 = vst [vmem:[#allocation17_spill] sm:$0xff] %v5377_v41 }
 0x66c   :  { %v5230_v23 = vadd.f32 %v1444_v2, %v1443_v44  ;;  %v5383_v44 = vld [vmem:[%s6544_s2 + $0x8] ss:$12 sps:$4 sm:$0xff]   ;;  %v5389_v2 = vld [vmem:[%s6546_s3 + $0xac] ss:$12 sps:$4 sm:$0xff]  }
 0x66d   :  { %6873 = vst [vmem:[#allocation18_spill] sm:$0xff] %v5383_v44  ;;  %6874 = vst [vmem:[#allocation19_spill] sm:$0xff] %v5389_v2 }
 0x66e   :  { %3023 = vst [vmem:[%s6549_s6 + $0x10] sm:$0xff] %v5230_v23  ;;  %v1448_v51 = vpack.c.bf16 %v5230_v23, %v5230_v23 }
 0x670   :  { %1482 = vmatmul.mubr.bf16.vlgmr.msra.gmra.mxu0 %v1448_v51  ;;  %3477 = vmatmul.mubr.bf16.vlgmr.msra.gmra.mxu1 %v1448_v51  ;;  %v5398_v51 = vld [vmem:[%s6546_s3 + $0xa8] ss:$12 sps:$4 sm:$0xff]  }
 0x671   :  { %1531 = vmatpush1.bf16.msra.mxu0 %v5241_v36  ;;  %3481 = vmatpush3.bf16.msra.mxu1 %v5247_v19  ;;  %6875 = vst [vmem:[#allocation20_spill] sm:$0xff] %v5398_v51 }
 0x672   :  { %1532 = vmatprep.subr.bf16.mxu0 %v5253_v53  ;;  %3482 = vmatprep.subr.bf16.mxu1 %v6777_v26 }
 0x673   :  { %1562 = vmatprep.mubr.bf16.mxu0 %v6787_v61  ;;  %3496 = vmatprep.mubr.msk.bf16.mxu1 %vm4165_vm0, %v6777_v26 }
 0x675   :  { %1533 = vmatpush1.bf16.msra.mxu0 %v5263_v4  ;;  %3483 = vmatpush3.bf16.msra.mxu1 %v5269_v45 }
 0x676   :  { %1534 = vmatprep.subr.bf16.mxu0 %v5275_v14  ;;  %3484 = vmatprep.subr.bf16.mxu1 %v6777_v26 }
 0x679   :  { %1535 = vmatpush1.bf16.msra.mxu0 %v5282_v20  ;;  %3485 = vmatpush3.bf16.msra.mxu1 %v5288_v21 }
 0x67a   :  { %1536 = vmatprep.subr.bf16.mxu0 %v5294_v25  ;;  %3486 = vmatprep.subr.bf16.mxu1 %v6777_v26 }
 0x67d   :  { %1537 = vmatpush1.bf16.msra.mxu0 %v5301_v29  ;;  %3487 = vmatpush3.bf16.msra.mxu1 %v5307_v3 }
 0x67e   :  { %1538 = vmatprep.subr.bf16.mxu0 %v5313_v22  ;;  %3488 = vmatprep.subr.bf16.mxu1 %v6777_v26 }
 0x681   :  { %1539 = vmatpush1.bf16.msra.mxu0 %v5320_v32  ;;  %3489 = vmatpush3.bf16.msra.mxu1 %v5326_v9 }
 0x682   :  { %1540 = vmatprep.subr.bf16.mxu0 %v5332_v24  ;;  %3490 = vmatprep.subr.bf16.mxu1 %v6777_v26 }
 0x685   :  { %1541 = vmatpush1.bf16.msra.mxu0 %v5339_v43  ;;  %3491 = vmatpush3.bf16.msra.mxu1 %v5345_v39 }
 0x686   :  { %1542 = vmatprep.subr.bf16.mxu0 %v5351_v35  ;;  %3492 = vmatprep.subr.bf16.mxu1 %v6777_v26 }
 0x689   :  { %1543 = vmatpush1.bf16.msra.mxu0 %v5358_v37  ;;  %3493 = vmatpush3.bf16.msra.mxu1 %v5364_v40 }
 0x68a   :  { %1544 = vmatprep.subr.bf16.mxu0 %v5370_v38  ;;  %3494 = vmatprep.subr.bf16.mxu1 %v6777_v26 }
 0x68d   :  { %1545 = vmatpush1.bf16.msra.mxu0 %v5377_v41  ;;  %3495 = vmatpush3.bf16.msra.mxu1 %v5383_v44  ;;  %v5404_v44 = vld [vmem:[%s6546_s3 + $0xb0] ss:$12 sps:$4 sm:$0xff]  }
 0x68e   :  { %1637 = vmatprep.subr.bf16.mxu0 %v5389_v2  ;;  %3500 = vmatprep.subr.bf16.mxu1 %v6777_v26  ;;  %6876 = vst [vmem:[#allocation21_spill] sm:$0xff] %v5404_v44  ;;  %v5410_v2 = vld [vmem:[%s6546_s3 + $0x94] ss:$12 sps:$4 sm:$0xff]  }
 0x68f   :  { %6877 = vst [vmem:[#allocation22_spill] sm:$0xff] %v5410_v2 }
 0x690   :  { %1563 = vmatmul.mubr.bf16.vlgmr.msra.gmra.mxu0 %v5101_v46  ;;  %3497 = vmatmul.mubr.bf16.vlgmr.msra.gmra.mxu1 %v5101_v46  ;;  %v5420_v46 = vld [vmem:[%s6546_s3 + $0x90] ss:$12 sps:$4 sm:$0xff]  }
 0x691   :  { %1638 = vmatpush1.bf16.msra.mxu0 %v5398_v51  ;;  %3501 = vmatpush3.bf16.msra.mxu1 %v5404_v44  ;;  %6878 = vst [vmem:[#allocation23_spill] sm:$0xff] %v5420_v46  ;;  %v5426_v44 = vld [vmem:[%s6546_s3 + $0x98] ss:$12 sps:$4 sm:$0xff]  }
 0x692   :  { %1639 = vmatprep.subr.bf16.mxu0 %v5410_v2  ;;  %3502 = vmatprep.subr.bf16.mxu1 %v6777_v26  ;;  %6879 = vst [vmem:[#allocation24_spill] sm:$0xff] %v5426_v44  ;;  %v5432_v2 = vld [vmem:[%s6546_s3 + $0x7c] ss:$12 sps:$4 sm:$0xff]  }
 0x693   :  { %1669 = vmatprep.mubr.bf16.mxu0 %v6787_v61  ;;  %3516 = vmatprep.mubr.msk.bf16.mxu1 %vm4165_vm0, %v6777_v26  ;;  %6880 = vst [vmem:[#allocation25_spill] sm:$0xff] %v5432_v2 }
 0x695   :  { %1640 = vmatpush1.bf16.msra.mxu0 %v5420_v46  ;;  %3503 = vmatpush3.bf16.msra.mxu1 %v5426_v44  ;;  %v5439_v46 = vld [vmem:[%s6546_s3 + $0x78] ss:$12 sps:$4 sm:$0xff]   ;;  %v5445_v44 = vld [vmem:[%s6546_s3 + $0x80] ss:$12 sps:$4 sm:$0xff]  }
 0x696   :  { %1641 = vmatprep.subr.bf16.mxu0 %v5432_v2  ;;  %3504 = vmatprep.subr.bf16.mxu1 %v6777_v26  ;;  %6881 = vst [vmem:[#allocation26_spill] sm:$0xff] %v5439_v46  ;;  %6882 = vst [vmem:[#allocation27_spill] sm:$0xff] %v5445_v44  ;;  %v5451_v2 = vld [vmem:[%s6546_s3 + $0x64] ss:$12 sps:$4 sm:$0xff]  }
 0x697   :  { %6883 = vst [vmem:[#allocation28_spill] sm:$0xff] %v5451_v2 }
 0x699   :  { %1642 = vmatpush1.bf16.msra.mxu0 %v5439_v46  ;;  %3505 = vmatpush3.bf16.msra.mxu1 %v5445_v44  ;;  %v5458_v46 = vld [vmem:[%s6546_s3 + $0x60] ss:$12 sps:$4 sm:$0xff]   ;;  %v5464_v44 = vld [vmem:[%s6546_s3 + $0x68] ss:$12 sps:$4 sm:$0xff]  }
 0x69a   :  { %1643 = vmatprep.subr.bf16.mxu0 %v5451_v2  ;;  %3506 = vmatprep.subr.bf16.mxu1 %v6777_v26  ;;  %6884 = vst [vmem:[#allocation29_spill] sm:$0xff] %v5458_v46  ;;  %6885 = vst [vmem:[#allocation30_spill] sm:$0xff] %v5464_v44  ;;  %v5470_v2 = vld [vmem:[%s6546_s3 + $0x4c] ss:$12 sps:$4 sm:$0xff]  }
 0x69b   :  { %6886 = vst [vmem:[#allocation31_spill] sm:$0xff] %v5470_v2 }
 0x69d   :  { %1644 = vmatpush1.bf16.msra.mxu0 %v5458_v46  ;;  %3507 = vmatpush3.bf16.msra.mxu1 %v5464_v44  ;;  %v5477_v46 = vld [vmem:[%s6546_s3 + $0x48] ss:$12 sps:$4 sm:$0xff]   ;;  %v5483_v44 = vld [vmem:[%s6546_s3 + $0x50] ss:$12 sps:$4 sm:$0xff]  }
 0x69e   :  { %1645 = vmatprep.subr.bf16.mxu0 %v5470_v2  ;;  %3508 = vmatprep.subr.bf16.mxu1 %v6777_v26  ;;  %6887 = vst [vmem:[#allocation32_spill] sm:$0xff] %v5477_v46  ;;  %6888 = vst [vmem:[#allocation33_spill] sm:$0xff] %v5483_v44  ;;  %v5489_v2 = vld [vmem:[%s6546_s3 + $0x34] ss:$12 sps:$4 sm:$0xff]  }
 0x69f   :  { %6889 = vst [vmem:[#allocation34_spill] sm:$0xff] %v5489_v2 }
 0x6a1   :  { %1646 = vmatpush1.bf16.msra.mxu0 %v5477_v46  ;;  %3509 = vmatpush3.bf16.msra.mxu1 %v5483_v44  ;;  %v5496_v46 = vld [vmem:[%s6546_s3 + $0x30] ss:$12 sps:$4 sm:$0xff]   ;;  %v5502_v44 = vld [vmem:[%s6546_s3 + $0x38] ss:$12 sps:$4 sm:$0xff]  }
 0x6a2   :  { %1647 = vmatprep.subr.bf16.mxu0 %v5489_v2  ;;  %3510 = vmatprep.subr.bf16.mxu1 %v6777_v26  ;;  %6890 = vst [vmem:[#allocation35_spill] sm:$0xff] %v5496_v46  ;;  %6891 = vst [vmem:[#allocation36_spill] sm:$0xff] %v5502_v44  ;;  %v5508_v2 = vld [vmem:[%s6546_s3 + $0x1c] ss:$12 sps:$4 sm:$0xff]  }
 0x6a3   :  { %6892 = vst [vmem:[#allocation37_spill] sm:$0xff] %v5508_v2 }
 0x6a5   :  { %1648 = vmatpush1.bf16.msra.mxu0 %v5496_v46  ;;  %3511 = vmatpush3.bf16.msra.mxu1 %v5502_v44  ;;  %v5515_v46 = vld [vmem:[%s6546_s3 + $0x18] ss:$12 sps:$4 sm:$0xff]   ;;  %v5521_v44 = vld [vmem:[%s6546_s3 + $0x20] ss:$12 sps:$4 sm:$0xff]  }
 0x6a6   :  { %1649 = vmatprep.subr.bf16.mxu0 %v5508_v2  ;;  %3512 = vmatprep.subr.bf16.mxu1 %v6777_v26  ;;  %6893 = vst [vmem:[#allocation38_spill] sm:$0xff] %v5515_v46  ;;  %6894 = vst [vmem:[#allocation40_spill] sm:$0xff] %v5521_v44  ;;  %v5527_v2 = vld [vmem:[%s6546_s3 + $0x4] ss:$12 sps:$4 sm:$0xff]  }
 0x6a7   :  { %6895 = vst [vmem:[#allocation41_spill] sm:$0xff] %v5527_v2 }
 0x6a9   :  { %1650 = vmatpush1.bf16.msra.mxu0 %v5515_v46  ;;  %3513 = vmatpush3.bf16.msra.mxu1 %v5521_v44  ;;  %v5534_v46 = vld [vmem:[%s6546_s3] ss:$12 sps:$4 sm:$0xff]   ;;  %v5540_v44 = vld [vmem:[%s6546_s3 + $0x8] ss:$12 sps:$4 sm:$0xff]  }
 0x6aa   :  { %1651 = vmatprep.subr.bf16.mxu0 %v5527_v2  ;;  %3514 = vmatprep.subr.bf16.mxu1 %v6777_v26  ;;  %6896 = vst [vmem:[#allocation42_spill] sm:$0xff] %v5534_v46  ;;  %6897 = vst [vmem:[#allocation43_spill] sm:$0xff] %v5540_v44 }
 0x6ad   :  { %1652 = vmatpush1.bf16.msra.mxu0 %v5534_v46  ;;  %3515 = vmatpush3.bf16.msra.mxu1 %v5540_v44  ;;  %v3024_v44 = vld [vmem:[%s6548_s0 + $0x48] sm:$0xff] }
 0x6ae   :  { %1742 = vmatprep.subr.bf16.mxu0 %v5074_v63  ;;  %3520 = vmatprep.subr.bf16.mxu1 %v6777_v26 }
 0x730   :  { %v5545_v2 = vpop.f32.mrf.mxu0  ;;  %v5547_v51 = vpop.f32.mrf.mxu1 }
 0x732   :  { %v5549_v41 = vpop.f32.mrf.mxu0  ;;  %v3478_v38 = vpop.f32.mrf.mxu1 }
 0x734   :  { %v1487_v40 = vpop.f32.mrf.mxu0  ;;  %v1527_v46 = vpop.f32.mrf.mxu1 }
 0x736   :  { %v1488_v37 = vpop.f32.mrf.mxu0  ;;  %v3479_v35 = vpop.f32.mrf.mxu1 }
 0x737   :  { %v3025_v35 = vld [vmem:[%s6548_s0 + $0x50] sm:$0xff] }
 0x750   :  { %v1564_v39 = vpop.f32.mrf.mxu0  ;;  %v1605_v43 = vpop.f32.mrf.mxu1 }
 0x751   :  { %v1565_v63 = vadd.f32 %v1564_v39, %v6824_v58 }
 0x752   :  { %v1566_v24 = vpop.f32.mrf.mxu0  ;;  %v3498_v9 = vpop.f32.mrf.mxu1 }
 0x753   :  { %v1615_v32 = vadd.f32 %v3024_v44, %v1565_v63  ;;  %v1567_v38 = vadd.f32 %v1566_v24, %v4708_v56 }
 0x754   :  { %v1568_v22 = vpop.f32.mrf.mxu0  ;;  %v1608_v3 = vpop.f32.mrf.mxu1 }
 0x755   :  { %v3027_v29 = vmul.f32 -1.442695, %v1615_v32  ;;  %v1622_v46 = vadd.f32 %v3025_v35, %v1567_v38  ;;  %v1606_v3 = vadd.f32 %v1605_v43, %v4717_v59  ;;  %v3026_v32 = vld [vmem:[%s6548_s0 + $0x58] sm:$0xff] }
 0x756   :  { %v1569_v37 = vpop.f32.mrf.mxu0  ;;  %v3499_v40 = vpop.f32.mrf.mxu1 }
 0x757   :  { %3919 = vpow2.f32 %v3027_v29  ;;  %v3028_v25 = vmul.f32 -1.442695, %v1622_v46 }
 0x759   :  { %3921 = vpow2.f32 %v3028_v25 }
 0x764   :  { %v3920_v21 = vpop.eup %3919 }
 0x765   :  { %v1619_v39 = vadd.f32 1.0, %v3920_v21 }
 0x766   :  { %v3922_v9 = vpop.eup %3921 }
 0x767   :  { %3923 = vrcp.f32 %v1619_v39  ;;  %v1626_v63 = vadd.f32 1.0, %v3922_v9 }
 0x769   :  { %3925 = vrcp.f32 %v1626_v63  ;;  %v1486_v63 = vadd.f32 %v5549_v41, %v4786_v57 }
 0x774   :  { %v3924_v22 = vpop.eup %3923 }
 0x775   :  { %v1629_v24 = vmul.f32 %v3924_v22, %v1606_v3 }
 0x776   :  { %v3926_v29 = vpop.eup %3925 }
 0x777   :  { %v1630_v44 = vadd.f32 %v3026_v32, %v1629_v24  ;;  %v1632_v38 = vsub.f32 1.0, %v3926_v29  ;;  %v1634_v21 = vmul.f32 %v3926_v29, %v5097_v0  ;;  %v1525_v29 = vadd.f32 %v5547_v51, %v4792_v52 }
 0x779   :  { %3927 = vtanh.f32 %v1630_v44 }
 0x786   :  { %v3928_v35 = vpop.eup %3927 }
 0x787   :  { %v1633_v25 = vmul.f32 %v3928_v35, %v1632_v38 }
 0x789   :  { %v5564_v37 = vadd.f32 %v1634_v21, %v1633_v25 }
 0x78b   :  { %v5568_v43 = vpack.c.bf16 %v5564_v37, %v5564_v37 }
 0x78d   :  { %1670 = vmatmul.mubr.bf16.vlgmr.msra.gmra.mxu0 %v5568_v43  ;;  %3517 = vmatmul.mubr.bf16.vlgmr.msra.gmra.mxu1 %v5568_v43 }
 0x78e   :  { %1743 = vmatpush1.bf16.msra.mxu0 %v4911_v42  ;;  %3521 = vmatpush3.bf16.msra.mxu1 %v5109_v54 }
 0x78f   :  { %1744 = vmatprep.subr.bf16.mxu0 %v4918_v55  ;;  %3522 = vmatprep.subr.bf16.mxu1 %v6777_v26 }
 0x790   :  { %1774 = vmatprep.mubr.bf16.mxu0 %v6787_v61  ;;  %3536 = vmatprep.mubr.msk.bf16.mxu1 %vm4165_vm0, %v6777_v26 }
 0x792   :  { %1745 = vmatpush1.bf16.msra.mxu0 %v4928_v60  ;;  %3523 = vmatpush3.bf16.msra.mxu1 %v5121_v62  ;;  %v1484_v60 = vadd.f32 %v5545_v2, %v4774_v5 }
 0x793   :  { %1746 = vmatprep.subr.bf16.mxu0 %v4935_v10  ;;  %3524 = vmatprep.subr.bf16.mxu1 %v6777_v26 }
 0x796   :  { %1747 = vmatpush1.bf16.msra.mxu0 %v4942_v11  ;;  %3525 = vmatpush3.bf16.msra.mxu1 %v5130_v1 }
 0x797   :  { %1748 = vmatprep.subr.bf16.mxu0 %v4949_v12  ;;  %3526 = vmatprep.subr.bf16.mxu1 %v6777_v26 }
 0x79a   :  { %1749 = vmatpush1.bf16.msra.mxu0 %v4956_v47  ;;  %3527 = vmatpush3.bf16.msra.mxu1 %v5139_v8 }
 0x79b   :  { %1750 = vmatprep.subr.bf16.mxu0 %v4963_v15  ;;  %3528 = vmatprep.subr.bf16.mxu1 %v6777_v26 }
 0x79e   :  { %1751 = vmatpush1.bf16.msra.mxu0 %v5147_v49  ;;  %3529 = vmatpush3.bf16.msra.mxu1 %v5153_v13 }
 0x79f   :  { %1752 = vmatprep.subr.bf16.mxu0 %v5159_v16  ;;  %3530 = vmatprep.subr.bf16.mxu1 %v6777_v26 }
 0x7a2   :  { %1753 = vmatpush1.bf16.msra.mxu0 %v5166_v17  ;;  %3531 = vmatpush3.bf16.msra.mxu1 %v5172_v18 }
 0x7a3   :  { %1754 = vmatprep.subr.bf16.mxu0 %v5178_v50  ;;  %3532 = vmatprep.subr.bf16.mxu1 %v6777_v26 }
 0x7a6   :  { %1755 = vmatpush1.bf16.msra.mxu0 %v5185_v27  ;;  %3533 = vmatpush3.bf16.msra.mxu1 %v5191_v28 }
 0x7a7   :  { %1756 = vmatprep.subr.bf16.mxu0 %v5197_v30  ;;  %3534 = vmatprep.subr.bf16.mxu1 %v6777_v26 }
 0x7aa   :  { %1757 = vmatpush1.bf16.msra.mxu0 %v5204_v31  ;;  %3535 = vmatpush3.bf16.msra.mxu1 %v5210_v33 }
 0x7ab   :  { %1823 = vmatprep.subr.bf16.mxu0 %v5216_v34  ;;  %3540 = vmatprep.subr.bf16.mxu1 %v6777_v26 }
 0x84d   :  { %v1671_v42 = vpop.f32.mrf.mxu0  ;;  %v1712_v55 = vpop.f32.mrf.mxu1 }
 0x84e   :  { %v1672_v10 = vadd.f32 %v1671_v42, %v4777_v6  ;;  %v1713_v35 = vadd.f32 %v1712_v55, %v4795_v7  ;;  %v6899_v55 = vld [vmem:[#allocation5_spill] sm:$0xff] }
 0x84f   :  { %v1673_v11 = vpop.f32.mrf.mxu0  ;;  %v3518_v12 = vpop.f32.mrf.mxu1 }
 0x850   :  { %v1718_v47 = vadd.f32 %v1672_v10, %v1484_v60  ;;  %v1674_v46 = vadd.f32 %v1673_v11, %v4783_v48 }
 0x851   :  { %v1675_v15 = vpop.f32.mrf.mxu0  ;;  %v1715_v0 = vpop.f32.mrf.mxu1 }
 0x852   :  { %v3029_v40 = vmul.f32 -1.442695, %v1718_v47  ;;  %v1725_v3 = vadd.f32 %v1674_v46, %v1486_v63  ;;  %v6900_v47 = vld [vmem:[#allocation3_spill] sm:$0xff]  ;;  %v6902_v0 = vld [vmem:[#allocation6_spill] sm:$0xff]  ;;  %v6907_v63 = vld [vmem:[#allocation9_spill] sm:$0xff] }
 0x853   :  { %v1676_v39 = vpop.f32.mrf.mxu0  ;;  %v3519_v9 = vpop.f32.mrf.mxu1  ;;  %v6901_v15 = vld [vmem:[#allocation39_spill] sm:$0xff] }
 0x854   :  { %3929 = vpow2.f32 %v3029_v40  ;;  %v3030_v22 = vmul.f32 -1.442695, %v1725_v3  ;;  %v6903_v40 = vld [vmem:[#allocation12_spill] sm:$0xff]  ;;  %v6904_v46 = vld [vmem:[#allocation7_spill] sm:$0xff]  ;;  %v6906_v9 = vld [vmem:[#allocation13_spill] sm:$0xff] }
 0x855   :  { %v6905_v39 = vld [vmem:[#allocation8_spill] sm:$0xff]  ;;  %v6908_v3 = vld [vmem:[#allocation11_spill] sm:$0xff] }
 0x856   :  { %3931 = vpow2.f32 %v3030_v22  ;;  %v6909_v22 = vld [vmem:[#allocation14_spill] sm:$0xff] }
 0x861   :  { %v3930_v2 = vpop.eup %3929 }
 0x862   :  { %v1722_v32 = vadd.f32 1.0, %v3930_v2  ;;  %v6910_v2 = vld [vmem:[#allocation15_spill] sm:$0xff] }
 0x863   :  { %v3932_v24 = vpop.eup %3931 }
 0x864   :  { %3933 = vrcp.f32 %v1722_v32  ;;  %v1729_v44 = vadd.f32 1.0, %v3932_v24  ;;  %v6911_v32 = vld [vmem:[#allocation16_spill] sm:$0xff]  ;;  %v6912_v24 = vld [vmem:[#allocation17_spill] sm:$0xff] }
 0x866   :  { %3935 = vrcp.f32 %v1729_v44  ;;  %v6913_v44 = vld [vmem:[#allocation18_spill] sm:$0xff] }
 0x871   :  { %v3934_v38 = vpop.eup %3933 }
 0x872   :  { %v1732_v25 = vmul.f32 %v3934_v38, %v1525_v29  ;;  %v6914_v29 = vld [vmem:[#allocation19_spill] sm:$0xff]  ;;  %v6915_v38 = vld [vmem:[#allocation20_spill] sm:$0xff] }
 0x873   :  { %v3936_v41 = vpop.eup %3935 }
 0x874   :  { %v1733_v21 = vadd.f32 %v1732_v25, %v1713_v35  ;;  %v1735_v42 = vsub.f32 1.0, %v3936_v41  ;;  %v1737_v11 = vmul.f32 %v3936_v41, %v5230_v23  ;;  %v6898_v23 = vld [vmem:[#allocation10_spill] sm:$0xff]  ;;  %v6916_v35 = vld [vmem:[#allocation21_spill] sm:$0xff]  ;;  %v6919_v41 = vld [vmem:[#allocation24_spill] sm:$0xff] }
 0x875   :  { %v6917_v25 = vld [vmem:[#allocation22_spill] sm:$0xff] }
 0x876   :  { %3937 = vtanh.f32 %v1733_v21  ;;  %v6918_v21 = vld [vmem:[#allocation23_spill] sm:$0xff] }
 0x883   :  { %v3938_v60 = vpop.eup %3937 }
 0x884   :  { %v1736_v10 = vmul.f32 %v3938_v60, %v1735_v42  ;;  %v6920_v42 = vld [vmem:[#allocation25_spill] sm:$0xff]  ;;  %v6922_v60 = vld [vmem:[#allocation27_spill] sm:$0xff] }
 0x886   :  { %v5617_v12 = vadd.f32 %v1737_v11, %v1736_v10  ;;  %v6923_v10 = vld [vmem:[#allocation28_spill] sm:$0xff]  ;;  %v6924_v11 = vld [vmem:[#allocation29_spill] sm:$0xff] }
 0x888   :  { %3031 = vst [vmem:[%s6549_s6 + $0x18] sm:$0xff] %v5617_v12  ;;  %v1741_v51 = vpack.c.bf16 %v5617_v12, %v5617_v12 }
 0x88a   :  { %1775 = vmatmul.mubr.bf16.vlgmr.msra.gmra.mxu0 %v1741_v51  ;;  %3537 = vmatmul.mubr.bf16.vlgmr.msra.gmra.mxu1 %v1741_v51  ;;  %v6925_v51 = vld [vmem:[#allocation30_spill] sm:$0xff] }
 0x88b   :  { %1824 = vmatpush1.bf16.msra.mxu0 %v5241_v36  ;;  %3541 = vmatpush3.bf16.msra.mxu1 %v5247_v19 }
 0x88c   :  { %1825 = vmatprep.subr.bf16.mxu0 %v5253_v53  ;;  %3542 = vmatprep.subr.bf16.mxu1 %v6777_v26 }
 0x88d   :  { %1855 = vmatprep.mubr.bf16.mxu0 %v6787_v61  ;;  %3556 = vmatprep.mubr.msk.bf16.mxu1 %vm4165_vm0, %v6777_v26 }
 0x88f   :  { %1826 = vmatpush1.bf16.msra.mxu0 %v5263_v4  ;;  %3543 = vmatpush3.bf16.msra.mxu1 %v5269_v45 }
 0x890   :  { %1827 = vmatprep.subr.bf16.mxu0 %v5275_v14  ;;  %3544 = vmatprep.subr.bf16.mxu1 %v6777_v26 }
 0x893   :  { %1828 = vmatpush1.bf16.msra.mxu0 %v5282_v20  ;;  %3545 = vmatpush3.bf16.msra.mxu1 %v6898_v23 }
 0x894   :  { %1829 = vmatprep.subr.bf16.mxu0 %v6899_v55  ;;  %3546 = vmatprep.subr.bf16.mxu1 %v6777_v26 }
 0x897   :  { %1830 = vmatpush1.bf16.msra.mxu0 %v6900_v47  ;;  %3547 = vmatpush3.bf16.msra.mxu1 %v6901_v15 }
 0x898   :  { %1831 = vmatprep.subr.bf16.mxu0 %v6902_v0  ;;  %3548 = vmatprep.subr.bf16.mxu1 %v6777_v26 }
 0x89b   :  { %1832 = vmatpush1.bf16.msra.mxu0 %v6903_v40  ;;  %3549 = vmatpush3.bf16.msra.mxu1 %v6904_v46 }
 0x89c   :  { %1833 = vmatprep.subr.bf16.mxu0 %v6905_v39  ;;  %3550 = vmatprep.subr.bf16.mxu1 %v6777_v26 }
 0x89f   :  { %1834 = vmatpush1.bf16.msra.mxu0 %v6906_v9  ;;  %3551 = vmatpush3.bf16.msra.mxu1 %v6907_v63 }
 0x8a0   :  { %1835 = vmatprep.subr.bf16.mxu0 %v6908_v3  ;;  %3552 = vmatprep.subr.bf16.mxu1 %v6777_v26 }
 0x8a3   :  { %1836 = vmatpush1.bf16.msra.mxu0 %v6909_v22  ;;  %3553 = vmatpush3.bf16.msra.mxu1 %v6910_v2 }
 0x8a4   :  { %1837 = vmatprep.subr.bf16.mxu0 %v6911_v32  ;;  %3554 = vmatprep.subr.bf16.mxu1 %v6777_v26 }
 0x8a7   :  { %1838 = vmatpush1.bf16.msra.mxu0 %v6912_v24  ;;  %3555 = vmatpush3.bf16.msra.mxu1 %v6913_v44 }
 0x8a8   :  { %1930 = vmatprep.subr.bf16.mxu0 %v6914_v29  ;;  %3560 = vmatprep.subr.bf16.mxu1 %v6777_v26 }
 0x8aa   :  { %1856 = vmatmul.mubr.bf16.vlgmr.msra.gmra.mxu0 %v5568_v43  ;;  %3557 = vmatmul.mubr.bf16.vlgmr.msra.gmra.mxu1 %v5568_v43  ;;  %v6921_v43 = vld [vmem:[#allocation26_spill] sm:$0xff] }
 0x8ab   :  { %1931 = vmatpush1.bf16.msra.mxu0 %v6915_v38  ;;  %3561 = vmatpush3.bf16.msra.mxu1 %v6916_v35 }
 0x8ac   :  { %1932 = vmatprep.subr.bf16.mxu0 %v6917_v25  ;;  %3562 = vmatprep.subr.bf16.mxu1 %v6777_v26  ;;  %v6926_v25 = vld [vmem:[#allocation31_spill] sm:$0xff] }
 0x8ad   :  { %1962 = vmatprep.mubr.bf16.mxu0 %v6787_v61  ;;  %3576 = vmatprep.mubr.msk.bf16.mxu1 %vm4165_vm0, %v6777_v26 }
 0x8af   :  { %1933 = vmatpush1.bf16.msra.mxu0 %v6918_v21  ;;  %3563 = vmatpush3.bf16.msra.mxu1 %v6919_v41  ;;  %v6927_v41 = vld [vmem:[#allocation32_spill] sm:$0xff]  ;;  %v6929_v21 = vld [vmem:[#allocation34_spill] sm:$0xff] }
 0x8b0   :  { %1934 = vmatprep.subr.bf16.mxu0 %v6920_v42  ;;  %3564 = vmatprep.subr.bf16.mxu1 %v6777_v26  ;;  %v6928_v42 = vld [vmem:[#allocation33_spill] sm:$0xff] }
 0x8b3   :  { %1935 = vmatpush1.bf16.msra.mxu0 %v6921_v43  ;;  %3565 = vmatpush3.bf16.msra.mxu1 %v6922_v60  ;;  %v6930_v60 = vld [vmem:[#allocation35_spill] sm:$0xff]  ;;  %v6932_v43 = vld [vmem:[#allocation37_spill] sm:$0xff] }
 0x8b4   :  { %1936 = vmatprep.subr.bf16.mxu0 %v6923_v10  ;;  %3566 = vmatprep.subr.bf16.mxu1 %v6777_v26  ;;  %v6931_v10 = vld [vmem:[#allocation36_spill] sm:$0xff] }
 0x8b7   :  { %1937 = vmatpush1.bf16.msra.mxu0 %v6924_v11  ;;  %3567 = vmatpush3.bf16.msra.mxu1 %v6925_v51  ;;  %v6933_v51 = vld [vmem:[#allocation38_spill] sm:$0xff]  ;;  %v6935_v11 = vld [vmem:[#allocation41_spill] sm:$0xff] }
 0x8b8   :  { %1938 = vmatprep.subr.bf16.mxu0 %v6926_v25  ;;  %3568 = vmatprep.subr.bf16.mxu1 %v6777_v26  ;;  %v6934_v25 = vld [vmem:[#allocation40_spill] sm:$0xff] }
 0x8bb   :  { %1939 = vmatpush1.bf16.msra.mxu0 %v6927_v41  ;;  %3569 = vmatpush3.bf16.msra.mxu1 %v6928_v42  ;;  %v6936_v42 = vld [vmem:[#allocation42_spill] sm:$0xff]  ;;  %v6938_v41 = vld [vmem:[#allocation4_spill] sm:$0xff] }
 0x8bc   :  { %1940 = vmatprep.subr.bf16.mxu0 %v6929_v21  ;;  %3570 = vmatprep.subr.bf16.mxu1 %v6777_v26  ;;  %v6937_v21 = vld [vmem:[#allocation43_spill] sm:$0xff] }
 0x8bf   :  { %1941 = vmatpush1.bf16.msra.mxu0 %v6930_v60  ;;  %3571 = vmatpush3.bf16.msra.mxu1 %v6931_v10 }
 0x8c0   :  { %1942 = vmatprep.subr.bf16.mxu0 %v6932_v43  ;;  %3572 = vmatprep.subr.bf16.mxu1 %v6777_v26 }
 0x8c3   :  { %1943 = vmatpush1.bf16.msra.mxu0 %v6933_v51  ;;  %3573 = vmatpush3.bf16.msra.mxu1 %v6934_v25 }
 0x8c4   :  { %1944 = vmatprep.subr.bf16.mxu0 %v6935_v11  ;;  %3574 = vmatprep.subr.bf16.mxu1 %v6777_v26 }
 0x8c7   :  { %1945 = vmatpush1.bf16.msra.mxu0 %v6936_v42  ;;  %3575 = vmatpush3.bf16.msra.mxu1 %v6937_v21  ;;  %v3032_v21 = vld [vmem:[%s6548_s0 + $0x60] sm:$0xff] }
 0x8c8   :  { %2035 = vmatprep.subr.bf16.mxu0 %v6938_v41  ;;  %3580 = vmatprep.subr.bf16.mxu1 %v6777_v26 }
 0x94a   :  { %v5697_v10 = vpop.f32.mrf.mxu0  ;;  %v5699_v43 = vpop.f32.mrf.mxu1 }
 0x94c   :  { %v5701_v60 = vpop.f32.mrf.mxu0  ;;  %v3538_v51 = vpop.f32.mrf.mxu1 }
 0x94e   :  { %v1780_v25 = vpop.f32.mrf.mxu0  ;;  %v1820_v35 = vpop.f32.mrf.mxu1 }
 0x950   :  { %v1781_v11 = vpop.f32.mrf.mxu0  ;;  %v3539_v38 = vpop.f32.mrf.mxu1 }
 0x951   :  { %v3033_v38 = vld [vmem:[%s6548_s0 + $0x68] sm:$0xff] }
 0x96a   :  { %v1857_v29 = vpop.f32.mrf.mxu0  ;;  %v1898_v42 = vpop.f32.mrf.mxu1 }
 0x96b   :  { %v1858_v41 = vadd.f32 %v1857_v29, %v6824_v58 }
 0x96c   :  { %v1859_v44 = vpop.f32.mrf.mxu0  ;;  %v3558_v24 = vpop.f32.mrf.mxu1 }
 0x96d   :  { %v1908_v32 = vadd.f32 %v3032_v21, %v1858_v41  ;;  %v1860_v51 = vadd.f32 %v1859_v44, %v4708_v56 }
 0x96e   :  { %v1861_v2 = vpop.f32.mrf.mxu0  ;;  %v1901_v22 = vpop.f32.mrf.mxu1 }
 0x96f   :  { %v3035_v3 = vmul.f32 -1.442695, %v1908_v32  ;;  %v1915_v11 = vadd.f32 %v3033_v38, %v1860_v51  ;;  %v1899_v22 = vadd.f32 %v1898_v42, %v4717_v59  ;;  %v3034_v32 = vld [vmem:[%s6548_s0 + $0x70] sm:$0xff] }
 0x970   :  { %v1862_v35 = vpop.f32.mrf.mxu0  ;;  %v3559_v25 = vpop.f32.mrf.mxu1 }
 0x971   :  { %3939 = vpow2.f32 %v3035_v3  ;;  %v3036_v63 = vmul.f32 -1.442695, %v1915_v11  ;;  %v5727_v25 = vld [vmem:[%s6543_s4 + $0xa8] ss:$12 sps:$4 sm:$0xff]   ;;  %v5744_v11 = vld [vmem:[%s6543_s4 + $0x90] ss:$12 sps:$4 sm:$0xff]  }
 0x973   :  { %3941 = vpow2.f32 %v3036_v63 }
 0x97e   :  { %v3940_v9 = vpop.eup %3939 }
 0x97f   :  { %v1912_v29 = vadd.f32 1.0, %v3940_v9 }
 0x980   :  { %v3942_v24 = vpop.eup %3941 }
 0x981   :  { %3943 = vrcp.f32 %v1912_v29  ;;  %v1919_v21 = vadd.f32 1.0, %v3942_v24  ;;  %v5758_v29 = vld [vmem:[%s6543_s4 + $0x78] ss:$12 sps:$4 sm:$0xff]   ;;  %v5772_v24 = vld [vmem:[%s6543_s4 + $0x60] ss:$12 sps:$4 sm:$0xff]  }
 0x983   :  { %3945 = vrcp.f32 %v1919_v21 }
 0x98e   :  { %v3944_v2 = vpop.eup %3943 }
 0x98f   :  { %v1922_v44 = vmul.f32 %v3944_v2, %v1899_v22 }
 0x990   :  { %v3946_v3 = vpop.eup %3945 }
 0x991   :  { %v1923_v41 = vadd.f32 %v3034_v32, %v1922_v44  ;;  %v1925_v51 = vsub.f32 1.0, %v3946_v3  ;;  %v1927_v9 = vmul.f32 %v3946_v3, %v5564_v37  ;;  %v5734_v37 = vld [vmem:[%s6543_s4 + $0x94] ss:$12 sps:$4 sm:$0xff]   ;;  %v1818_v3 = vadd.f32 %v5699_v43, %v4792_v52 }
 0x993   :  { %3947 = vtanh.f32 %v1923_v41 }
 0x9a0   :  { %v3948_v38 = vpop.eup %3947 }
 0x9a1   :  { %v1926_v63 = vmul.f32 %v3948_v38, %v1925_v51 }
 0x9a3   :  { %v5716_v35 = vadd.f32 %v1927_v9, %v1926_v63 }
 0x9a5   :  { %v5720_v42 = vpack.c.bf16 %v5716_v35, %v5716_v35 }
 0x9a7   :  { %1963 = vmatmul.mubr.bf16.vlgmr.msra.gmra.mxu0 %v5720_v42  ;;  %3577 = vmatmul.mubr.bf16.vlgmr.msra.gmra.mxu1 %v5720_v42 }
 0x9a8   :  { %2036 = vmatpush1.bf16.msra.mxu0 %v5727_v25  ;;  %3581 = vmatpush3.bf16.msra.mxu1 %v5109_v54  ;;  %v5751_v54 = vld [vmem:[%s6543_s4 + $0x7c] ss:$12 sps:$4 sm:$0xff]  }
 0x9a9   :  { %2037 = vmatprep.subr.bf16.mxu0 %v5734_v37  ;;  %3582 = vmatprep.subr.bf16.mxu1 %v6777_v26 }
 0x9aa   :  { %2067 = vmatprep.mubr.bf16.mxu0 %v6787_v61  ;;  %3596 = vmatprep.mubr.msk.bf16.mxu1 %vm4165_vm0, %v6777_v26 }
 0x9ac   :  { %2038 = vmatpush1.bf16.msra.mxu0 %v5744_v11  ;;  %3583 = vmatpush3.bf16.msra.mxu1 %v5121_v62  ;;  %v5765_v62 = vld [vmem:[%s6543_s4 + $0x64] ss:$12 sps:$4 sm:$0xff]  }
 0x9ad   :  { %2039 = vmatprep.subr.bf16.mxu0 %v5751_v54  ;;  %3584 = vmatprep.subr.bf16.mxu1 %v6777_v26 }
 0x9b0   :  { %2040 = vmatpush1.bf16.msra.mxu0 %v5758_v29  ;;  %3585 = vmatpush3.bf16.msra.mxu1 %v5130_v1  ;;  %v5779_v1 = vld [vmem:[%s6543_s4 + $0x4c] ss:$12 sps:$4 sm:$0xff]  }
 0x9b1   :  { %2041 = vmatprep.subr.bf16.mxu0 %v5765_v62  ;;  %3586 = vmatprep.subr.bf16.mxu1 %v6777_v26 }
 0x9b4   :  { %2042 = vmatpush1.bf16.msra.mxu0 %v5772_v24  ;;  %3587 = vmatpush3.bf16.msra.mxu1 %v5139_v8 }
 0x9b5   :  { %2043 = vmatprep.subr.bf16.mxu0 %v5779_v1  ;;  %3588 = vmatprep.subr.bf16.mxu1 %v6777_v26 }
 0x9b8   :  { %2044 = vmatpush1.bf16.msra.mxu0 %v5147_v49  ;;  %3589 = vmatpush3.bf16.msra.mxu1 %v5153_v13  ;;  %v1777_v13 = vadd.f32 %v5697_v10, %v4774_v5 }
 0x9b9   :  { %2045 = vmatprep.subr.bf16.mxu0 %v5159_v16  ;;  %3590 = vmatprep.subr.bf16.mxu1 %v6777_v26 }
 0x9bc   :  { %2046 = vmatpush1.bf16.msra.mxu0 %v5166_v17  ;;  %3591 = vmatpush3.bf16.msra.mxu1 %v5172_v18 }
 0x9bd   :  { %2047 = vmatprep.subr.bf16.mxu0 %v5178_v50  ;;  %3592 = vmatprep.subr.bf16.mxu1 %v6777_v26 }
 0x9c0   :  { %2048 = vmatpush1.bf16.msra.mxu0 %v5185_v27  ;;  %3593 = vmatpush3.bf16.msra.mxu1 %v5191_v28 }
 0x9c1   :  { %2049 = vmatprep.subr.bf16.mxu0 %v5197_v30  ;;  %3594 = vmatprep.subr.bf16.mxu1 %v6777_v26 }
 0x9c4   :  { %2050 = vmatpush1.bf16.msra.mxu0 %v5204_v31  ;;  %3595 = vmatpush3.bf16.msra.mxu1 %v5210_v33 }
 0x9c5   :  { %2116 = vmatprep.subr.bf16.mxu0 %v5216_v34  ;;  %3600 = vmatprep.subr.bf16.mxu1 %v6777_v26  ;;  %v1779_v34 = vadd.f32 %v5701_v60, %v4786_v57 }
 0xa67   :  { %v1964_v8 = vpop.f32.mrf.mxu0  ;;  %v2005_v49 = vpop.f32.mrf.mxu1 }
 0xa68   :  { %v1965_v16 = vadd.f32 %v1964_v8, %v4777_v6  ;;  %v2006_v38 = vadd.f32 %v2005_v49, %v4795_v7  ;;  %v6956_v49 = vld [vmem:[#allocation28_spill] sm:$0xff] }
 0xa69   :  { %v1966_v17 = vpop.f32.mrf.mxu0  ;;  %v3578_v18 = vpop.f32.mrf.mxu1 }
 0xa6a   :  { %v2011_v50 = vadd.f32 %v1965_v16, %v1777_v13  ;;  %v1967_v31 = vadd.f32 %v1966_v17, %v4783_v48 }
 0xa6b   :  { %v1968_v27 = vpop.f32.mrf.mxu0  ;;  %v2008_v28 = vpop.f32.mrf.mxu1 }
 0xa6c   :  { %v3037_v30 = vmul.f32 -1.442695, %v2011_v50  ;;  %v2018_v22 = vadd.f32 %v1967_v31, %v1779_v34  ;;  %v6957_v50 = vld [vmem:[#allocation29_spill] sm:$0xff]  ;;  %v6958_v27 = vld [vmem:[#allocation30_spill] sm:$0xff]  ;;  %v6959_v28 = vld [vmem:[#allocation31_spill] sm:$0xff] }
 0xa6d   :  { %v1969_v33 = vpop.f32.mrf.mxu0  ;;  %v3579_v21 = vpop.f32.mrf.mxu1  ;;  %v6961_v31 = vld [vmem:[#allocation33_spill] sm:$0xff]  ;;  %v6964_v34 = vld [vmem:[#allocation36_spill] sm:$0xff] }
 0xa6e   :  { %3949 = vpow2.f32 %v3037_v30  ;;  %v3038_v2 = vmul.f32 -1.442695, %v2018_v22  ;;  %v6960_v30 = vld [vmem:[#allocation32_spill] sm:$0xff]  ;;  %v6962_v33 = vld [vmem:[#allocation34_spill] sm:$0xff]  ;;  %v6963_v21 = vld [vmem:[#allocation35_spill] sm:$0xff] }
 0xa6f   :  { %v6965_v22 = vld [vmem:[#allocation37_spill] sm:$0xff] }
 0xa70   :  { %3951 = vpow2.f32 %v3038_v2  ;;  %v6966_v2 = vld [vmem:[#allocation38_spill] sm:$0xff] }
 0xa7b   :  { %v3950_v10 = vpop.eup %3949 }
 0xa7c   :  { %v2015_v32 = vadd.f32 1.0, %v3950_v10  ;;  %v6967_v10 = vld [vmem:[#allocation40_spill] sm:$0xff] }
 0xa7d   :  { %v3952_v44 = vpop.eup %3951 }
 0xa7e   :  { %3953 = vrcp.f32 %v2015_v32  ;;  %v2022_v41 = vadd.f32 1.0, %v3952_v44  ;;  %v6968_v32 = vld [vmem:[#allocation41_spill] sm:$0xff]  ;;  %v6969_v44 = vld [vmem:[#allocation42_spill] sm:$0xff] }
 0xa80   :  { %3955 = vrcp.f32 %v2022_v41  ;;  %v6970_v41 = vld [vmem:[#allocation43_spill] sm:$0xff] }
 0xa8b   :  { %v3954_v51 = vpop.eup %3953 }
 0xa8c   :  { %v2025_v63 = vmul.f32 %v3954_v51, %v1818_v3  ;;  %v5890_v3 = vld [vmem:[%s6543_s4 + $0xac] ss:$12 sps:$4 sm:$0xff]  }
 0xa8d   :  { %v3956_v60 = vpop.eup %3955 }
 0xa8e   :  { %v2026_v9 = vadd.f32 %v2025_v63, %v2006_v38  ;;  %v2028_v8 = vsub.f32 1.0, %v3956_v60  ;;  %v2030_v17 = vmul.f32 %v3956_v60, %v5617_v12  ;;  %v6946_v12 = vld [vmem:[#allocation18_spill] sm:$0xff] }
 0xa90   :  { %3957 = vtanh.f32 %v2026_v9 }
 0xa9d   :  { %v3958_v13 = vpop.eup %3957 }
 0xa9e   :  { %v2029_v16 = vmul.f32 %v3958_v13, %v2028_v8 }
 0xaa0   :  { %v5809_v18 = vadd.f32 %v2030_v17, %v2029_v16 }
 0xaa2   :  { %3039 = vst [vmem:[%s6549_s6 + $0x20] sm:$0xff] %v5809_v18  ;;  %v2034_v43 = vpack.c.bf16 %v5809_v18, %v5809_v18 }
 0xaa4   :  { %2068 = vmatmul.mubr.bf16.vlgmr.msra.gmra.mxu0 %v2034_v43  ;;  %3597 = vmatmul.mubr.bf16.vlgmr.msra.gmra.mxu1 %v2034_v43  ;;  %v3040_v43 = vld [vmem:[%s6548_s0 + $0x78] sm:$0xff] }
 0xaa5   :  { %2117 = vmatpush1.bf16.msra.mxu0 %v5241_v36  ;;  %3601 = vmatpush3.bf16.msra.mxu1 %v5247_v19  ;;  %v6939_v36 = vld [vmem:[#allocation13_spill] sm:$0xff] }
 0xaa6   :  { %2118 = vmatprep.subr.bf16.mxu0 %v5253_v53  ;;  %3602 = vmatprep.subr.bf16.mxu1 %v6777_v26  ;;  %v6940_v19 = vld [vmem:[#allocation9_spill] sm:$0xff]  ;;  %v6941_v53 = vld [vmem:[#allocation11_spill] sm:$0xff] }
 0xaa7   :  { %2148 = vmatprep.mubr.bf16.mxu0 %v6787_v61  ;;  %3616 = vmatprep.mubr.msk.bf16.mxu1 %vm4165_vm0, %v6777_v26 }
 0xaa9   :  { %2119 = vmatpush1.bf16.msra.mxu0 %v5263_v4  ;;  %3603 = vmatpush3.bf16.msra.mxu1 %v5269_v45  ;;  %v6942_v4 = vld [vmem:[#allocation14_spill] sm:$0xff]  ;;  %v6943_v45 = vld [vmem:[#allocation15_spill] sm:$0xff] }
 0xaaa   :  { %2120 = vmatprep.subr.bf16.mxu0 %v5275_v14  ;;  %3604 = vmatprep.subr.bf16.mxu1 %v6777_v26  ;;  %v6944_v14 = vld [vmem:[#allocation16_spill] sm:$0xff] }
 0xaad   :  { %2121 = vmatpush1.bf16.msra.mxu0 %v5282_v20  ;;  %3605 = vmatpush3.bf16.msra.mxu1 %v6898_v23  ;;  %v6945_v20 = vld [vmem:[#allocation17_spill] sm:$0xff]  ;;  %v6947_v23 = vld [vmem:[#allocation19_spill] sm:$0xff] }
 0xaae   :  { %2122 = vmatprep.subr.bf16.mxu0 %v6899_v55  ;;  %3606 = vmatprep.subr.bf16.mxu1 %v6777_v26  ;;  %v6948_v55 = vld [vmem:[#allocation20_spill] sm:$0xff] }
 0xab1   :  { %2123 = vmatpush1.bf16.msra.mxu0 %v6900_v47  ;;  %3607 = vmatpush3.bf16.msra.mxu1 %v6901_v15  ;;  %v6949_v47 = vld [vmem:[#allocation21_spill] sm:$0xff]  ;;  %v6950_v15 = vld [vmem:[#allocation22_spill] sm:$0xff] }
 0xab2   :  { %2124 = vmatprep.subr.bf16.mxu0 %v6902_v0  ;;  %3608 = vmatprep.subr.bf16.mxu1 %v6777_v26  ;;  %v6951_v0 = vld [vmem:[#allocation23_spill] sm:$0xff] }
 0xab5   :  { %2125 = vmatpush1.bf16.msra.mxu0 %v6903_v40  ;;  %3609 = vmatpush3.bf16.msra.mxu1 %v6904_v46  ;;  %v6952_v40 = vld [vmem:[#allocation24_spill] sm:$0xff]  ;;  %v6953_v46 = vld [vmem:[#allocation25_spill] sm:$0xff] }
 0xab6   :  { %2126 = vmatprep.subr.bf16.mxu0 %v6905_v39  ;;  %3610 = vmatprep.subr.bf16.mxu1 %v6777_v26  ;;  %v6954_v39 = vld [vmem:[#allocation26_spill] sm:$0xff] }
 0xab9   :  { %2127 = vmatpush1.bf16.msra.mxu0 %v6939_v36  ;;  %3611 = vmatpush3.bf16.msra.mxu1 %v6940_v19 }
 0xaba   :  { %2128 = vmatprep.subr.bf16.mxu0 %v6941_v53  ;;  %3612 = vmatprep.subr.bf16.mxu1 %v6777_v26 }
 0xabd   :  { %2129 = vmatpush1.bf16.msra.mxu0 %v6942_v4  ;;  %3613 = vmatpush3.bf16.msra.mxu1 %v6943_v45 }
 0xabe   :  { %2130 = vmatprep.subr.bf16.mxu0 %v6944_v14  ;;  %3614 = vmatprep.subr.bf16.mxu1 %v6777_v26 }
 0xac1   :  { %2131 = vmatpush1.bf16.msra.mxu0 %v6945_v20  ;;  %3615 = vmatpush3.bf16.msra.mxu1 %v6946_v12 }
 0xac2   :  { %2223 = vmatprep.subr.bf16.mxu0 %v6947_v23  ;;  %3620 = vmatprep.subr.bf16.mxu1 %v6777_v26 }
 0xac4   :  { %2149 = vmatmul.mubr.bf16.vlgmr.msra.gmra.mxu0 %v5720_v42  ;;  %3617 = vmatmul.mubr.bf16.vlgmr.msra.gmra.mxu1 %v5720_v42  ;;  %v6955_v42 = vld [vmem:[#allocation27_spill] sm:$0xff] }
 0xac5   :  { %2224 = vmatpush1.bf16.msra.mxu0 %v6948_v55  ;;  %3621 = vmatpush3.bf16.msra.mxu1 %v6949_v47  ;;  %v3041_v55 = vld [vmem:[%s6548_s0 + $0x80] sm:$0xff] }
 0xac6   :  { %2225 = vmatprep.subr.bf16.mxu0 %v6950_v15  ;;  %3622 = vmatprep.subr.bf16.mxu1 %v6777_v26 }
 0xac7   :  { %2255 = vmatprep.mubr.bf16.mxu0 %v6787_v61  ;;  %3636 = vmatprep.mubr.msk.bf16.mxu1 %vm4165_vm0, %v6777_v26 }
 0xac9   :  { %2226 = vmatpush1.bf16.msra.mxu0 %v6951_v0  ;;  %3623 = vmatpush3.bf16.msra.mxu1 %v6952_v40 }
 0xaca   :  { %2227 = vmatprep.subr.bf16.mxu0 %v6953_v46  ;;  %3624 = vmatprep.subr.bf16.mxu1 %v6777_v26 }
 0xacd   :  { %2228 = vmatpush1.bf16.msra.mxu0 %v6954_v39  ;;  %3625 = vmatpush3.bf16.msra.mxu1 %v6955_v42 }
 0xace   :  { %2229 = vmatprep.subr.bf16.mxu0 %v6956_v49  ;;  %3626 = vmatprep.subr.bf16.mxu1 %v6777_v26 }
 0xad1   :  { %2230 = vmatpush1.bf16.msra.mxu0 %v6957_v50  ;;  %3627 = vmatpush3.bf16.msra.mxu1 %v6958_v27 }
 0xad2   :  { %2231 = vmatprep.subr.bf16.mxu0 %v6959_v28  ;;  %3628 = vmatprep.subr.bf16.mxu1 %v6777_v26  ;;  %v3042_v28 = vld [vmem:[%s6548_s0 + $0x88] sm:$0xff] }
 0xad5   :  { %2232 = vmatpush1.bf16.msra.mxu0 %v6960_v30  ;;  %3629 = vmatpush3.bf16.msra.mxu1 %v6961_v31 }
 0xad6   :  { %2233 = vmatprep.subr.bf16.mxu0 %v6962_v33  ;;  %3630 = vmatprep.subr.bf16.mxu1 %v6777_v26 }
 0xad9   :  { %2234 = vmatpush1.bf16.msra.mxu0 %v6963_v21  ;;  %3631 = vmatpush3.bf16.msra.mxu1 %v6964_v34 }
 0xada   :  { %2235 = vmatprep.subr.bf16.mxu0 %v6965_v22  ;;  %3632 = vmatprep.subr.bf16.mxu1 %v6777_v26 }
 0xadd   :  { %2236 = vmatpush1.bf16.msra.mxu0 %v6966_v2  ;;  %3633 = vmatpush3.bf16.msra.mxu1 %v6967_v10 }
 0xade   :  { %2237 = vmatprep.subr.bf16.mxu0 %v6968_v32  ;;  %3634 = vmatprep.subr.bf16.mxu1 %v6777_v26 }
 0xae1   :  { %2238 = vmatpush1.bf16.msra.mxu0 %v6969_v44  ;;  %3635 = vmatpush3.bf16.msra.mxu1 %v6970_v41  ;;  %v5925_v44 = vld [vmem:[%s6543_s4 + $0xb0] ss:$12 sps:$4 sm:$0xff]   ;;  %v5946_v41 = vld [vmem:[%s6543_s4 + $0x80] ss:$12 sps:$4 sm:$0xff]  }
 0xae2   :  { %2328 = vmatprep.subr.bf16.mxu0 %v5890_v3  ;;  %3640 = vmatprep.subr.bf16.mxu1 %v6777_v26 }
 0xb64   :  { %v5894_v51 = vpop.f32.mrf.mxu0  ;;  %v5896_v38 = vpop.f32.mrf.mxu1 }
 0xb66   :  { %v5898_v63 = vpop.f32.mrf.mxu0  ;;  %v3598_v9 = vpop.f32.mrf.mxu1 }
 0xb67   :  { %v5955_v9 = vld [vmem:[%s6543_s4 + $0x68] ss:$12 sps:$4 sm:$0xff]  }
 0xb68   :  { %v2073_v60 = vpop.f32.mrf.mxu0  ;;  %v2113_v8 = vpop.f32.mrf.mxu1 }
 0xb69   :  { %v5963_v60 = vld [vmem:[%s6543_s4 + $0x48] ss:$12 sps:$4 sm:$0xff]   ;;  %v5969_v8 = vld [vmem:[%s6543_s4 + $0x50] ss:$12 sps:$4 sm:$0xff]  }
 0xb6a   :  { %v2074_v13 = vpop.f32.mrf.mxu0  ;;  %v3599_v16 = vpop.f32.mrf.mxu1 }
 0xb6b   :  { %v5975_v13 = vld [vmem:[%s6543_s4 + $0x34] ss:$12 sps:$4 sm:$0xff]   ;;  %v5982_v16 = vld [vmem:[%s6543_s4 + $0x30] ss:$12 sps:$4 sm:$0xff]  }
 0xb84   :  { %v2150_v17 = vpop.f32.mrf.mxu0  ;;  %v2191_v36 = vpop.f32.mrf.mxu1 }
 0xb85   :  { %v2151_v19 = vadd.f32 %v2150_v17, %v6824_v58  ;;  %v2192_v50 = vadd.f32 %v2191_v36, %v4717_v59  ;;  %v5988_v17 = vld [vmem:[%s6543_s4 + $0x38] ss:$12 sps:$4 sm:$0xff]  }
 0xb86   :  { %v2152_v53 = vpop.f32.mrf.mxu0  ;;  %v3618_v4 = vpop.f32.mrf.mxu1  ;;  %v6001_v36 = vld [vmem:[%s6543_s4 + $0x18] ss:$12 sps:$4 sm:$0xff]  }
 0xb87   :  { %v2201_v45 = vadd.f32 %v3040_v43, %v2151_v19  ;;  %v2153_v23 = vadd.f32 %v2152_v53, %v4708_v56  ;;  %v5994_v43 = vld [vmem:[%s6543_s4 + $0x1c] ss:$12 sps:$4 sm:$0xff]   ;;  %v6007_v19 = vld [vmem:[%s6543_s4 + $0x20] ss:$12 sps:$4 sm:$0xff]   ;;  %v6013_v53 = vld [vmem:[%s6543_s4 + $0x4] ss:$12 sps:$4 sm:$0xff]  }
 0xb88   :  { %v2154_v14 = vpop.f32.mrf.mxu0  ;;  %v2194_v20 = vpop.f32.mrf.mxu1  ;;  %v6020_v4 = vld [vmem:[%s6543_s4] ss:$12 sps:$4 sm:$0xff]  }
 0xb89   :  { %v3043_v12 = vmul.f32 -1.442695, %v2201_v45  ;;  %v2208_v0 = vadd.f32 %v3041_v55, %v2153_v23  ;;  %v6026_v45 = vld [vmem:[%s6543_s4 + $0x8] ss:$12 sps:$4 sm:$0xff]   ;;  %v6032_v14 = vld [vmem:[%s6544_s2 + $0xac] ss:$12 sps:$4 sm:$0xff]   ;;  %v2070_v23 = vadd.f32 %v5894_v51, %v4774_v5 }
 0xb8a   :  { %v2155_v47 = vpop.f32.mrf.mxu0  ;;  %v3619_v15 = vpop.f32.mrf.mxu1 }
 0xb8b   :  { %3959 = vpow2.f32 %v3043_v12  ;;  %v3044_v40 = vmul.f32 -1.442695, %v2208_v0 }
 0xb8d   :  { %3961 = vpow2.f32 %v3044_v40 }
 0xb98   :  { %v3960_v46 = vpop.eup %3959 }
 0xb99   :  { %v2205_v39 = vadd.f32 1.0, %v3960_v46 }
 0xb9a   :  { %v3962_v42 = vpop.eup %3961 }
 0xb9b   :  { %3963 = vrcp.f32 %v2205_v39  ;;  %v2212_v49 = vadd.f32 1.0, %v3962_v42 }
 0xb9d   :  { %3965 = vrcp.f32 %v2212_v49 }
 0xba8   :  { %v3964_v27 = vpop.eup %3963 }
 0xba9   :  { %v2215_v30 = vmul.f32 %v3964_v27, %v2192_v50  ;;  %v2072_v27 = vadd.f32 %v5898_v63, %v4786_v57 }
 0xbaa   :  { %v3966_v33 = vpop.eup %3965 }
 0xbab   :  { %v2216_v31 = vadd.f32 %v3042_v28, %v2215_v30  ;;  %v2218_v21 = vsub.f32 1.0, %v3966_v33  ;;  %v2220_v2 = vmul.f32 %v3966_v33, %v5716_v35  ;;  %v5937_v35 = vld [vmem:[%s6543_s4 + $0x98] ss:$12 sps:$4 sm:$0xff]  }
 0xbad   :  { %3967 = vtanh.f32 %v2216_v31 }
 0xbba   :  { %v3968_v34 = vpop.eup %3967 }
 0xbbb   :  { %v2219_v22 = vmul.f32 %v3968_v34, %v2218_v21  ;;  %v2111_v34 = vadd.f32 %v5896_v38, %v4792_v52 }
 0xbbd   :  { %v5913_v10 = vadd.f32 %v2220_v2, %v2219_v22 }
 0xbbf   :  { %v5917_v32 = vpack.c.bf16 %v5913_v10, %v5913_v10 }
 0xbc1   :  { %2256 = vmatmul.mubr.bf16.vlgmr.msra.gmra.mxu0 %v5917_v32  ;;  %3637 = vmatmul.mubr.bf16.vlgmr.msra.gmra.mxu1 %v5917_v32 }
 0xbc2   :  { %2329 = vmatpush1.bf16.msra.mxu0 %v5727_v25  ;;  %3641 = vmatpush3.bf16.msra.mxu1 %v5925_v44 }
 0xbc3   :  { %2330 = vmatprep.subr.bf16.mxu0 %v5734_v37  ;;  %3642 = vmatprep.subr.bf16.mxu1 %v6777_v26 }
 0xbc4   :  { %2360 = vmatprep.mubr.bf16.mxu0 %v6787_v61  ;;  %3656 = vmatprep.mubr.msk.bf16.mxu1 %vm4165_vm0, %v6777_v26 }
 0xbc6   :  { %2331 = vmatpush1.bf16.msra.mxu0 %v5744_v11  ;;  %3643 = vmatpush3.bf16.msra.mxu1 %v5937_v35 }
 0xbc7   :  { %2332 = vmatprep.subr.bf16.mxu0 %v5751_v54  ;;  %3644 = vmatprep.subr.bf16.mxu1 %v6777_v26 }
 0xbca   :  { %2333 = vmatpush1.bf16.msra.mxu0 %v5758_v29  ;;  %3645 = vmatpush3.bf16.msra.mxu1 %v5946_v41 }
 0xbcb   :  { %2334 = vmatprep.subr.bf16.mxu0 %v5765_v62  ;;  %3646 = vmatprep.subr.bf16.mxu1 %v6777_v26 }
 0xbce   :  { %2335 = vmatpush1.bf16.msra.mxu0 %v5772_v24  ;;  %3647 = vmatpush3.bf16.msra.mxu1 %v5955_v9 }
 0xbcf   :  { %2336 = vmatprep.subr.bf16.mxu0 %v5779_v1  ;;  %3648 = vmatprep.subr.bf16.mxu1 %v6777_v26 }
 0xbd2   :  { %2337 = vmatpush1.bf16.msra.mxu0 %v5963_v60  ;;  %3649 = vmatpush3.bf16.msra.mxu1 %v5969_v8 }
 0xbd3   :  { %2338 = vmatprep.subr.bf16.mxu0 %v5975_v13  ;;  %3650 = vmatprep.subr.bf16.mxu1 %v6777_v26 }
 0xbd6   :  { %2339 = vmatpush1.bf16.msra.mxu0 %v5982_v16  ;;  %3651 = vmatpush3.bf16.msra.mxu1 %v5988_v17 }
 0xbd7   :  { %2340 = vmatprep.subr.bf16.mxu0 %v5994_v43  ;;  %3652 = vmatprep.subr.bf16.mxu1 %v6777_v26 }
 0xbda   :  { %2341 = vmatpush1.bf16.msra.mxu0 %v6001_v36  ;;  %3653 = vmatpush3.bf16.msra.mxu1 %v6007_v19 }
 0xbdb   :  { %2342 = vmatprep.subr.bf16.mxu0 %v6013_v53  ;;  %3654 = vmatprep.subr.bf16.mxu1 %v6777_v26 }
 0xbde   :  { %2343 = vmatpush1.bf16.msra.mxu0 %v6020_v4  ;;  %3655 = vmatpush3.bf16.msra.mxu1 %v6026_v45 }
 0xbdf   :  { %2409 = vmatprep.subr.bf16.mxu0 %v6032_v14  ;;  %3660 = vmatprep.subr.bf16.mxu1 %v6777_v26 }
 0xc81   :  { %v2257_v20 = vpop.f32.mrf.mxu0  ;;  %v2298_v12 = vpop.f32.mrf.mxu1 }
 0xc82   :  { %v2258_v55 = vadd.f32 %v2257_v20, %v4777_v6  ;;  %v2299_v2 = vadd.f32 %v2298_v12, %v4795_v7  ;;  %v6057_v12 = vld [vmem:[%s6544_s2 + $0xa8] ss:$12 sps:$4 sm:$0xff]  }
 0xc83   :  { %v2259_v47 = vpop.f32.mrf.mxu0  ;;  %v3638_v15 = vpop.f32.mrf.mxu1 }
 0xc84   :  { %v2304_v0 = vadd.f32 %v2258_v55, %v2070_v23  ;;  %v2260_v42 = vadd.f32 %v2259_v47, %v4783_v48 }
 0xc85   :  { %v2261_v40 = vpop.f32.mrf.mxu0  ;;  %v2301_v46 = vpop.f32.mrf.mxu1 }
 0xc86   :  { %v3045_v39 = vmul.f32 -1.442695, %v2304_v0  ;;  %v2311_v28 = vadd.f32 %v2260_v42, %v2072_v27  ;;  %v6069_v46 = vld [vmem:[%s6544_s2 + $0x94] ss:$12 sps:$4 sm:$0xff]   ;;  %v6085_v42 = vld [vmem:[%s6544_s2 + $0x98] ss:$12 sps:$4 sm:$0xff]  }
 0xc87   :  { %v2262_v49 = vpop.f32.mrf.mxu0  ;;  %v3639_v50 = vpop.f32.mrf.mxu1  ;;  %v6104_v27 = vld [vmem:[%s6544_s2 + $0x80] ss:$12 sps:$4 sm:$0xff]  }
 0xc88   :  { %3969 = vpow2.f32 %v3045_v39  ;;  %v3046_v30 = vmul.f32 -1.442695, %v2311_v28  ;;  %v6079_v39 = vld [vmem:[%s6544_s2 + $0x90] ss:$12 sps:$4 sm:$0xff]   ;;  %v6098_v50 = vld [vmem:[%s6544_s2 + $0x78] ss:$12 sps:$4 sm:$0xff]  }
 0xc89   :  { %v6091_v49 = vld [vmem:[%s6544_s2 + $0x7c] ss:$12 sps:$4 sm:$0xff]   ;;  %6971 = vst [vmem:[#allocation10_spill] sm:$0xff] %v6104_v27  ;;  %v6110_v28 = vld [vmem:[%s6544_s2 + $0x64] ss:$12 sps:$4 sm:$0xff]  }
 0xc8a   :  { %3971 = vpow2.f32 %v3046_v30  ;;  %6972 = vst [vmem:[#allocation5_spill] sm:$0xff] %v6110_v28  ;;  %v6117_v30 = vld [vmem:[%s6544_s2 + $0x60] ss:$12 sps:$4 sm:$0xff]  }
 0xc8b   :  { %6973 = vst [vmem:[#allocation3_spill] sm:$0xff] %v6117_v30 }
 0xc95   :  { %v3970_v51 = vpop.eup %3969 }
 0xc96   :  { %v2308_v31 = vadd.f32 1.0, %v3970_v51  ;;  %v6123_v51 = vld [vmem:[%s6544_s2 + $0x68] ss:$12 sps:$4 sm:$0xff]  }
 0xc97   :  { %v3972_v33 = vpop.eup %3971  ;;  %6974 = vst [vmem:[#allocation39_spill] sm:$0xff] %v6123_v51 }
 0xc98   :  { %3973 = vrcp.f32 %v2308_v31  ;;  %v2315_v21 = vadd.f32 1.0, %v3972_v33  ;;  %v6129_v31 = vld [vmem:[%s6544_s2 + $0x4c] ss:$12 sps:$4 sm:$0xff]   ;;  %v6136_v33 = vld [vmem:[%s6544_s2 + $0x48] ss:$12 sps:$4 sm:$0xff]  }
 0xc99   :  { %6975 = vst [vmem:[#allocation6_spill] sm:$0xff] %v6129_v31  ;;  %6976 = vst [vmem:[#allocation12_spill] sm:$0xff] %v6136_v33 }
 0xc9a   :  { %3975 = vrcp.f32 %v2315_v21  ;;  %v6142_v21 = vld [vmem:[%s6544_s2 + $0x50] ss:$12 sps:$4 sm:$0xff]  }
 0xc9b   :  { %6977 = vst [vmem:[#allocation7_spill] sm:$0xff] %v6142_v21 }
 0xca5   :  { %v3974_v22 = vpop.eup %3973 }
 0xca6   :  { %v2318_v20 = vmul.f32 %v3974_v22, %v2111_v34  ;;  %v6148_v34 = vld [vmem:[%s6544_s2 + $0x34] ss:$12 sps:$4 sm:$0xff]   ;;  %v6155_v22 = vld [vmem:[%s6544_s2 + $0x30] ss:$12 sps:$4 sm:$0xff]  }
 0xca7   :  { %v3976_v63 = vpop.eup %3975  ;;  %6978 = vst [vmem:[#allocation8_spill] sm:$0xff] %v6148_v34  ;;  %6979 = vst [vmem:[#allocation4_spill] sm:$0xff] %v6155_v22 }
 0xca8   :  { %v2319_v23 = vadd.f32 %v2318_v20, %v2299_v2  ;;  %v2321_v55 = vsub.f32 1.0, %v3976_v63  ;;  %v2323_v0 = vmul.f32 %v3976_v63, %v5809_v18  ;;  %v6063_v18 = vld [vmem:[%s6544_s2 + $0xb0] ss:$12 sps:$4 sm:$0xff]   ;;  %v6161_v2 = vld [vmem:[%s6544_s2 + $0x38] ss:$12 sps:$4 sm:$0xff]  }
 0xca9   :  { %6980 = vst [vmem:[#allocation13_spill] sm:$0xff] %v6161_v2  ;;  %v6167_v20 = vld [vmem:[%s6544_s2 + $0x1c] ss:$12 sps:$4 sm:$0xff]   ;;  %v6180_v63 = vld [vmem:[%s6544_s2 + $0x20] ss:$12 sps:$4 sm:$0xff]  }
 0xcaa   :  { %3977 = vtanh.f32 %v2319_v23  ;;  %6981 = vst [vmem:[#allocation9_spill] sm:$0xff] %v6167_v20  ;;  %v6174_v23 = vld [vmem:[%s6544_s2 + $0x18] ss:$12 sps:$4 sm:$0xff]   ;;  %6983 = vst [vmem:[#allocation14_spill] sm:$0xff] %v6180_v63 }
 0xcab   :  { %6982 = vst [vmem:[#allocation11_spill] sm:$0xff] %v6174_v23 }
 0xcb7   :  { %v3978_v47 = vpop.eup %3977 }
 0xcb8   :  { %v2322_v15 = vmul.f32 %v3978_v47, %v2321_v55  ;;  %v6186_v55 = vld [vmem:[%s6544_s2 + $0x4] ss:$12 sps:$4 sm:$0xff]   ;;  %v6193_v47 = vld [vmem:[%s6544_s2] ss:$12 sps:$4 sm:$0xff]  }
 0xcb9   :  { %6984 = vst [vmem:[#allocation15_spill] sm:$0xff] %v6186_v55  ;;  %6985 = vst [vmem:[#allocation16_spill] sm:$0xff] %v6193_v47 }
 0xcba   :  { %v6046_v40 = vadd.f32 %v2323_v0, %v2322_v15  ;;  %v6199_v15 = vld [vmem:[%s6544_s2 + $0x8] ss:$12 sps:$4 sm:$0xff]   ;;  %v6205_v0 = vld [vmem:[%s6546_s3 + $0xac] ss:$12 sps:$4 sm:$0xff]  }
 0xcbb   :  { %6986 = vst [vmem:[#allocation17_spill] sm:$0xff] %v6199_v15  ;;  %6987 = vst [vmem:[#allocation18_spill] sm:$0xff] %v6205_v0 }
 0xcbc   :  { %3047 = vst [vmem:[%s6549_s6 + $0x28] sm:$0xff] %v6046_v40  ;;  %v2327_v38 = vpack.c.bf16 %v6046_v40, %v6046_v40 }
 0xcbe   :  { %2361 = vmatmul.mubr.bf16.vlgmr.msra.gmra.mxu0 %v2327_v38  ;;  %3657 = vmatmul.mubr.bf16.vlgmr.msra.gmra.mxu1 %v2327_v38  ;;  %v6214_v38 = vld [vmem:[%s6546_s3 + $0xa8] ss:$12 sps:$4 sm:$0xff]  }
 0xcbf   :  { %2410 = vmatpush1.bf16.msra.mxu0 %v6057_v12  ;;  %3661 = vmatpush3.bf16.msra.mxu1 %v6063_v18  ;;  %6988 = vst [vmem:[#allocation19_spill] sm:$0xff] %v6214_v38 }
 0xcc0   :  { %2411 = vmatprep.subr.bf16.mxu0 %v6069_v46  ;;  %3662 = vmatprep.subr.bf16.mxu1 %v6777_v26 }
 0xcc1   :  { %2441 = vmatprep.mubr.bf16.mxu0 %v6787_v61  ;;  %3676 = vmatprep.mubr.msk.bf16.mxu1 %vm4165_vm0, %v6777_v26 }
 0xcc3   :  { %2412 = vmatpush1.bf16.msra.mxu0 %v6079_v39  ;;  %3663 = vmatpush3.bf16.msra.mxu1 %v6085_v42 }
 0xcc4   :  { %2413 = vmatprep.subr.bf16.mxu0 %v6091_v49  ;;  %3664 = vmatprep.subr.bf16.mxu1 %v6777_v26 }
 0xcc7   :  { %2414 = vmatpush1.bf16.msra.mxu0 %v6098_v50  ;;  %3665 = vmatpush3.bf16.msra.mxu1 %v6104_v27 }
 0xcc8   :  { %2415 = vmatprep.subr.bf16.mxu0 %v6110_v28  ;;  %3666 = vmatprep.subr.bf16.mxu1 %v6777_v26 }
 0xccb   :  { %2416 = vmatpush1.bf16.msra.mxu0 %v6117_v30  ;;  %3667 = vmatpush3.bf16.msra.mxu1 %v6123_v51 }
 0xccc   :  { %2417 = vmatprep.subr.bf16.mxu0 %v6129_v31  ;;  %3668 = vmatprep.subr.bf16.mxu1 %v6777_v26 }
 0xccf   :  { %2418 = vmatpush1.bf16.msra.mxu0 %v6136_v33  ;;  %3669 = vmatpush3.bf16.msra.mxu1 %v6142_v21 }
 0xcd0   :  { %2419 = vmatprep.subr.bf16.mxu0 %v6148_v34  ;;  %3670 = vmatprep.subr.bf16.mxu1 %v6777_v26 }
 0xcd3   :  { %2420 = vmatpush1.bf16.msra.mxu0 %v6155_v22  ;;  %3671 = vmatpush3.bf16.msra.mxu1 %v6161_v2 }
 0xcd4   :  { %2421 = vmatprep.subr.bf16.mxu0 %v6167_v20  ;;  %3672 = vmatprep.subr.bf16.mxu1 %v6777_v26 }
 0xcd7   :  { %2422 = vmatpush1.bf16.msra.mxu0 %v6174_v23  ;;  %3673 = vmatpush3.bf16.msra.mxu1 %v6180_v63 }
 0xcd8   :  { %2423 = vmatprep.subr.bf16.mxu0 %v6186_v55  ;;  %3674 = vmatprep.subr.bf16.mxu1 %v6777_v26 }
 0xcdb   :  { %2424 = vmatpush1.bf16.msra.mxu0 %v6193_v47  ;;  %3675 = vmatpush3.bf16.msra.mxu1 %v6199_v15  ;;  %v6220_v15 = vld [vmem:[%s6546_s3 + $0xb0] ss:$12 sps:$4 sm:$0xff]  }
 0xcdc   :  { %2516 = vmatprep.subr.bf16.mxu0 %v6205_v0  ;;  %3680 = vmatprep.subr.bf16.mxu1 %v6777_v26  ;;  %6989 = vst [vmem:[#allocation20_spill] sm:$0xff] %v6220_v15  ;;  %v6226_v0 = vld [vmem:[%s6546_s3 + $0x94] ss:$12 sps:$4 sm:$0xff]  }
 0xcdd   :  { %6990 = vst [vmem:[#allocation21_spill] sm:$0xff] %v6226_v0 }
 0xcde   :  { %2442 = vmatmul.mubr.bf16.vlgmr.msra.gmra.mxu0 %v5917_v32  ;;  %3677 = vmatmul.mubr.bf16.vlgmr.msra.gmra.mxu1 %v5917_v32  ;;  %v6236_v32 = vld [vmem:[%s6546_s3 + $0x90] ss:$12 sps:$4 sm:$0xff]  }
 0xcdf   :  { %2517 = vmatpush1.bf16.msra.mxu0 %v6214_v38  ;;  %3681 = vmatpush3.bf16.msra.mxu1 %v6220_v15  ;;  %6991 = vst [vmem:[#allocation22_spill] sm:$0xff] %v6236_v32  ;;  %v6242_v15 = vld [vmem:[%s6546_s3 + $0x98] ss:$12 sps:$4 sm:$0xff]  }
 0xce0   :  { %2518 = vmatprep.subr.bf16.mxu0 %v6226_v0  ;;  %3682 = vmatprep.subr.bf16.mxu1 %v6777_v26  ;;  %6992 = vst [vmem:[#allocation23_spill] sm:$0xff] %v6242_v15  ;;  %v6248_v0 = vld [vmem:[%s6546_s3 + $0x7c] ss:$12 sps:$4 sm:$0xff]  }
 0xce1   :  { %2548 = vmatprep.mubr.bf16.mxu0 %v6787_v61  ;;  %3696 = vmatprep.mubr.msk.bf16.mxu1 %vm4165_vm0, %v6777_v26  ;;  %6993 = vst [vmem:[#allocation24_spill] sm:$0xff] %v6248_v0 }
 0xce3   :  { %2519 = vmatpush1.bf16.msra.mxu0 %v6236_v32  ;;  %3683 = vmatpush3.bf16.msra.mxu1 %v6242_v15  ;;  %v6255_v32 = vld [vmem:[%s6546_s3 + $0x78] ss:$12 sps:$4 sm:$0xff]   ;;  %v6261_v15 = vld [vmem:[%s6546_s3 + $0x80] ss:$12 sps:$4 sm:$0xff]  }
 0xce4   :  { %2520 = vmatprep.subr.bf16.mxu0 %v6248_v0  ;;  %3684 = vmatprep.subr.bf16.mxu1 %v6777_v26  ;;  %6994 = vst [vmem:[#allocation25_spill] sm:$0xff] %v6255_v32  ;;  %6995 = vst [vmem:[#allocation26_spill] sm:$0xff] %v6261_v15  ;;  %v6267_v0 = vld [vmem:[%s6546_s3 + $0x64] ss:$12 sps:$4 sm:$0xff]  }
 0xce5   :  { %6996 = vst [vmem:[#allocation27_spill] sm:$0xff] %v6267_v0 }
 0xce7   :  { %2521 = vmatpush1.bf16.msra.mxu0 %v6255_v32  ;;  %3685 = vmatpush3.bf16.msra.mxu1 %v6261_v15  ;;  %v6274_v32 = vld [vmem:[%s6546_s3 + $0x60] ss:$12 sps:$4 sm:$0xff]   ;;  %v6280_v15 = vld [vmem:[%s6546_s3 + $0x68] ss:$12 sps:$4 sm:$0xff]  }
 0xce8   :  { %2522 = vmatprep.subr.bf16.mxu0 %v6267_v0  ;;  %3686 = vmatprep.subr.bf16.mxu1 %v6777_v26  ;;  %6997 = vst [vmem:[#allocation28_spill] sm:$0xff] %v6274_v32  ;;  %6998 = vst [vmem:[#allocation29_spill] sm:$0xff] %v6280_v15  ;;  %v6286_v0 = vld [vmem:[%s6546_s3 + $0x4c] ss:$12 sps:$4 sm:$0xff]  }
 0xce9   :  { %6999 = vst [vmem:[#allocation30_spill] sm:$0xff] %v6286_v0 }
 0xceb   :  { %2523 = vmatpush1.bf16.msra.mxu0 %v6274_v32  ;;  %3687 = vmatpush3.bf16.msra.mxu1 %v6280_v15  ;;  %v6293_v32 = vld [vmem:[%s6546_s3 + $0x48] ss:$12 sps:$4 sm:$0xff]   ;;  %v6299_v15 = vld [vmem:[%s6546_s3 + $0x50] ss:$12 sps:$4 sm:$0xff]  }
 0xcec   :  { %2524 = vmatprep.subr.bf16.mxu0 %v6286_v0  ;;  %3688 = vmatprep.subr.bf16.mxu1 %v6777_v26  ;;  %7000 = vst [vmem:[#allocation31_spill] sm:$0xff] %v6293_v32  ;;  %7001 = vst [vmem:[#allocation32_spill] sm:$0xff] %v6299_v15  ;;  %v6305_v0 = vld [vmem:[%s6546_s3 + $0x34] ss:$12 sps:$4 sm:$0xff]  }
 0xced   :  { %7002 = vst [vmem:[#allocation33_spill] sm:$0xff] %v6305_v0 }
 0xcef   :  { %2525 = vmatpush1.bf16.msra.mxu0 %v6293_v32  ;;  %3689 = vmatpush3.bf16.msra.mxu1 %v6299_v15  ;;  %v6312_v32 = vld [vmem:[%s6546_s3 + $0x30] ss:$12 sps:$4 sm:$0xff]   ;;  %v6318_v15 = vld [vmem:[%s6546_s3 + $0x38] ss:$12 sps:$4 sm:$0xff]  }
 0xcf0   :  { %2526 = vmatprep.subr.bf16.mxu0 %v6305_v0  ;;  %3690 = vmatprep.subr.bf16.mxu1 %v6777_v26  ;;  %7003 = vst [vmem:[#allocation34_spill] sm:$0xff] %v6312_v32  ;;  %7004 = vst [vmem:[#allocation35_spill] sm:$0xff] %v6318_v15  ;;  %v6324_v0 = vld [vmem:[%s6546_s3 + $0x1c] ss:$12 sps:$4 sm:$0xff]  }
 0xcf1   :  { %7005 = vst [vmem:[#allocation36_spill] sm:$0xff] %v6324_v0 }
 0xcf3   :  { %2527 = vmatpush1.bf16.msra.mxu0 %v6312_v32  ;;  %3691 = vmatpush3.bf16.msra.mxu1 %v6318_v15  ;;  %v6331_v32 = vld [vmem:[%s6546_s3 + $0x18] ss:$12 sps:$4 sm:$0xff]   ;;  %v6337_v15 = vld [vmem:[%s6546_s3 + $0x20] ss:$12 sps:$4 sm:$0xff]  }
 0xcf4   :  { %2528 = vmatprep.subr.bf16.mxu0 %v6324_v0  ;;  %3692 = vmatprep.subr.bf16.mxu1 %v6777_v26  ;;  %7006 = vst [vmem:[#allocation37_spill] sm:$0xff] %v6331_v32  ;;  %7007 = vst [vmem:[#allocation38_spill] sm:$0xff] %v6337_v15  ;;  %v6343_v0 = vld [vmem:[%s6546_s3 + $0x4] ss:$12 sps:$4 sm:$0xff]  }
 0xcf5   :  { %7008 = vst [vmem:[#allocation40_spill] sm:$0xff] %v6343_v0 }
 0xcf7   :  { %2529 = vmatpush1.bf16.msra.mxu0 %v6331_v32  ;;  %3693 = vmatpush3.bf16.msra.mxu1 %v6337_v15  ;;  %v6350_v32 = vld [vmem:[%s6546_s3] ss:$12 sps:$4 sm:$0xff]   ;;  %v6356_v15 = vld [vmem:[%s6546_s3 + $0x8] ss:$12 sps:$4 sm:$0xff]  }
 0xcf8   :  { %2530 = vmatprep.subr.bf16.mxu0 %v6343_v0  ;;  %3694 = vmatprep.subr.bf16.mxu1 %v6777_v26  ;;  %7009 = vst [vmem:[#allocation41_spill] sm:$0xff] %v6350_v32  ;;  %7010 = vst [vmem:[#allocation42_spill] sm:$0xff] %v6356_v15 }
 0xcfb   :  { %2531 = vmatpush1.bf16.msra.mxu0 %v6350_v32  ;;  %3695 = vmatpush3.bf16.msra.mxu1 %v6356_v15  ;;  %v3048_v15 = vld [vmem:[%s6548_s0 + $0x90] sm:$0xff] }
 0xcfc   :  { %2621 = vmatprep.subr.bf16.mxu0 %v5890_v3  ;;  %3700 = vmatprep.subr.bf16.mxu1 %v6777_v26 }
 0xd7e   :  { %v6361_v0 = vpop.f32.mrf.mxu0  ;;  %v6363_v38 = vpop.f32.mrf.mxu1 }
 0xd80   :  { %v6365_v47 = vpop.f32.mrf.mxu0  ;;  %v3658_v55 = vpop.f32.mrf.mxu1 }
 0xd82   :  { %v2366_v63 = vpop.f32.mrf.mxu0  ;;  %v2406_v32 = vpop.f32.mrf.mxu1 }
 0xd84   :  { %v2367_v23 = vpop.f32.mrf.mxu0  ;;  %v3659_v20 = vpop.f32.mrf.mxu1 }
 0xd85   :  { %v3049_v20 = vld [vmem:[%s6548_s0 + $0x98] sm:$0xff] }
 0xd9e   :  { %v2443_v2 = vpop.f32.mrf.mxu0  ;;  %v2484_v22 = vpop.f32.mrf.mxu1 }
 0xd9f   :  { %v2444_v3 = vadd.f32 %v2443_v2, %v6824_v58 }
 0xda0   :  { %v2445_v34 = vpop.f32.mrf.mxu0  ;;  %v3678_v21 = vpop.f32.mrf.mxu1 }
 0xda1   :  { %v2494_v33 = vadd.f32 %v3048_v15, %v2444_v3  ;;  %v2446_v55 = vadd.f32 %v2445_v34, %v4708_v56 }
 0xda2   :  { %v2447_v31 = vpop.f32.mrf.mxu0  ;;  %v2487_v51 = vpop.f32.mrf.mxu1 }
 0xda3   :  { %v3051_v30 = vmul.f32 -1.442695, %v2494_v33  ;;  %v2501_v32 = vadd.f32 %v3049_v20, %v2446_v55  ;;  %v2485_v51 = vadd.f32 %v2484_v22, %v4717_v59  ;;  %v3050_v33 = vld [vmem:[%s6548_s0 + $0xa0] sm:$0xff] }
 0xda4   :  { %v2448_v23 = vpop.f32.mrf.mxu0  ;;  %v3679_v63 = vpop.f32.mrf.mxu1 }
 0xda5   :  { %3979 = vpow2.f32 %v3051_v30  ;;  %v3052_v28 = vmul.f32 -1.442695, %v2501_v32 }
 0xda7   :  { %3981 = vpow2.f32 %v3052_v28 }
 0xdb2   :  { %v3980_v27 = vpop.eup %3979 }
 0xdb3   :  { %v2498_v2 = vadd.f32 1.0, %v3980_v27 }
 0xdb4   :  { %v3982_v21 = vpop.eup %3981 }
 0xdb5   :  { %3983 = vrcp.f32 %v2498_v2  ;;  %v2505_v15 = vadd.f32 1.0, %v3982_v21 }
 0xdb7   :  { %3985 = vrcp.f32 %v2505_v15  ;;  %v7015_v15 = vld [vmem:[#allocation6_spill] sm:$0xff] }
 0xdc2   :  { %v3984_v31 = vpop.eup %3983 }
 0xdc3   :  { %v2508_v34 = vmul.f32 %v3984_v31, %v2485_v51  ;;  %v7020_v51 = vld [vmem:[#allocation13_spill] sm:$0xff] }
 0xdc4   :  { %v3986_v30 = vpop.eup %3985  ;;  %v7021_v31 = vld [vmem:[#allocation9_spill] sm:$0xff] }
 0xdc5   :  { %v2509_v3 = vadd.f32 %v3050_v33, %v2508_v34  ;;  %v2511_v55 = vsub.f32 1.0, %v3986_v30  ;;  %v2513_v27 = vmul.f32 %v3986_v30, %v5913_v10  ;;  %v7022_v33 = vld [vmem:[#allocation11_spill] sm:$0xff]  ;;  %v7023_v34 = vld [vmem:[#allocation14_spill] sm:$0xff]  ;;  %v7025_v30 = vld [vmem:[#allocation16_spill] sm:$0xff] }
 0xdc7   :  { %3987 = vtanh.f32 %v2509_v3  ;;  %v7024_v3 = vld [vmem:[#allocation15_spill] sm:$0xff] }
 0xdd4   :  { %v3988_v20 = vpop.eup %3987 }
 0xdd5   :  { %v2512_v28 = vmul.f32 %v3988_v20, %v2511_v55  ;;  %v7026_v55 = vld [vmem:[#allocation17_spill] sm:$0xff]  ;;  %v7027_v20 = vld [vmem:[#allocation18_spill] sm:$0xff] }
 0xdd7   :  { %v6380_v23 = vadd.f32 %v2513_v27, %v2512_v28  ;;  %v7028_v28 = vld [vmem:[#allocation19_spill] sm:$0xff]  ;;  %v7029_v27 = vld [vmem:[#allocation20_spill] sm:$0xff] }
 0xdd9   :  { %v6384_v22 = vpack.c.bf16 %v6380_v23, %v6380_v23 }
 0xddb   :  { %2549 = vmatmul.mubr.bf16.vlgmr.msra.gmra.mxu0 %v6384_v22  ;;  %3697 = vmatmul.mubr.bf16.vlgmr.msra.gmra.mxu1 %v6384_v22 }
 0xddc   :  { %2622 = vmatpush1.bf16.msra.mxu0 %v5727_v25  ;;  %3701 = vmatpush3.bf16.msra.mxu1 %v5925_v44 }
 0xddd   :  { %2623 = vmatprep.subr.bf16.mxu0 %v5734_v37  ;;  %3702 = vmatprep.subr.bf16.mxu1 %v6777_v26 }
 0xdde   :  { %2653 = vmatprep.mubr.bf16.mxu0 %v6787_v61  ;;  %3716 = vmatprep.mubr.msk.bf16.mxu1 %vm4165_vm0, %v6777_v26 }
 0xde0   :  { %2624 = vmatpush1.bf16.msra.mxu0 %v5744_v11  ;;  %3703 = vmatpush3.bf16.msra.mxu1 %v5937_v35  ;;  %v2363_v11 = vadd.f32 %v6361_v0, %v4774_v5 }
 0xde1   :  { %2625 = vmatprep.subr.bf16.mxu0 %v5751_v54  ;;  %3704 = vmatprep.subr.bf16.mxu1 %v6777_v26 }
 0xde4   :  { %2626 = vmatpush1.bf16.msra.mxu0 %v5758_v29  ;;  %3705 = vmatpush3.bf16.msra.mxu1 %v5946_v41 }
 0xde5   :  { %2627 = vmatprep.subr.bf16.mxu0 %v5765_v62  ;;  %3706 = vmatprep.subr.bf16.mxu1 %v6777_v26 }
 0xde8   :  { %2628 = vmatpush1.bf16.msra.mxu0 %v5772_v24  ;;  %3707 = vmatpush3.bf16.msra.mxu1 %v5955_v9 }
 0xde9   :  { %2629 = vmatprep.subr.bf16.mxu0 %v5779_v1  ;;  %3708 = vmatprep.subr.bf16.mxu1 %v6777_v26 }
 0xdec   :  { %2630 = vmatpush1.bf16.msra.mxu0 %v5963_v60  ;;  %3709 = vmatpush3.bf16.msra.mxu1 %v5969_v8  ;;  %v2365_v60 = vadd.f32 %v6365_v47, %v4786_v57 }
 0xded   :  { %2631 = vmatprep.subr.bf16.mxu0 %v5975_v13  ;;  %3710 = vmatprep.subr.bf16.mxu1 %v6777_v26 }
 0xdf0   :  { %2632 = vmatpush1.bf16.msra.mxu0 %v5982_v16  ;;  %3711 = vmatpush3.bf16.msra.mxu1 %v5988_v17 }
 0xdf1   :  { %2633 = vmatprep.subr.bf16.mxu0 %v5994_v43  ;;  %3712 = vmatprep.subr.bf16.mxu1 %v6777_v26 }
 0xdf4   :  { %2634 = vmatpush1.bf16.msra.mxu0 %v6001_v36  ;;  %3713 = vmatpush3.bf16.msra.mxu1 %v6007_v19  ;;  %v2404_v19 = vadd.f32 %v6363_v38, %v4792_v52 }
 0xdf5   :  { %2635 = vmatprep.subr.bf16.mxu0 %v6013_v53  ;;  %3714 = vmatprep.subr.bf16.mxu1 %v6777_v26 }
 0xdf8   :  { %2636 = vmatpush1.bf16.msra.mxu0 %v6020_v4  ;;  %3715 = vmatpush3.bf16.msra.mxu1 %v6026_v45 }
 0xdf9   :  { %2702 = vmatprep.subr.bf16.mxu0 %v6032_v14  ;;  %3720 = vmatprep.subr.bf16.mxu1 %v6777_v26 }
 0xe9b   :  { %v2550_v25 = vpop.f32.mrf.mxu0  ;;  %v2591_v37 = vpop.f32.mrf.mxu1 }
 0xe9c   :  { %v2551_v54 = vadd.f32 %v2550_v25, %v4777_v6  ;;  %v2592_v4 = vadd.f32 %v2591_v37, %v4795_v7  ;;  %v7030_v25 = vld [vmem:[#allocation21_spill] sm:$0xff]  ;;  %v7031_v37 = vld [vmem:[#allocation22_spill] sm:$0xff] }
 0xe9d   :  { %v2552_v29 = vpop.f32.mrf.mxu0  ;;  %v3698_v62 = vpop.f32.mrf.mxu1 }
 0xe9e   :  { %v2597_v24 = vadd.f32 %v2551_v54, %v2363_v11  ;;  %v2553_v35 = vadd.f32 %v2552_v29, %v4783_v48  ;;  %v7032_v11 = vld [vmem:[#allocation23_spill] sm:$0xff]  ;;  %v7033_v54 = vld [vmem:[#allocation24_spill] sm:$0xff]  ;;  %v7035_v29 = vld [vmem:[#allocation26_spill] sm:$0xff] }
 0xe9f   :  { %v2554_v1 = vpop.f32.mrf.mxu0  ;;  %v2594_v10 = vpop.f32.mrf.mxu1  ;;  %v7036_v62 = vld [vmem:[#allocation27_spill] sm:$0xff] }
 0xea0   :  { %v3053_v44 = vmul.f32 -1.442695, %v2597_v24  ;;  %v2604_v8 = vadd.f32 %v2553_v35, %v2365_v60  ;;  %v7038_v24 = vld [vmem:[#allocation29_spill] sm:$0xff]  ;;  %v7039_v1 = vld [vmem:[#allocation30_spill] sm:$0xff]  ;;  %v7040_v10 = vld [vmem:[#allocation31_spill] sm:$0xff] }
 0xea1   :  { %v2555_v41 = vpop.f32.mrf.mxu0  ;;  %v3699_v9 = vpop.f32.mrf.mxu1  ;;  %v7042_v35 = vld [vmem:[#allocation33_spill] sm:$0xff]  ;;  %v7045_v60 = vld [vmem:[#allocation36_spill] sm:$0xff] }
 0xea2   :  { %3989 = vpow2.f32 %v3053_v44  ;;  %v3054_v13 = vmul.f32 -1.442695, %v2604_v8  ;;  %v7041_v44 = vld [vmem:[#allocation32_spill] sm:$0xff]  ;;  %v7043_v41 = vld [vmem:[#allocation34_spill] sm:$0xff]  ;;  %v7044_v9 = vld [vmem:[#allocation35_spill] sm:$0xff] }
 0xea3   :  { %v7046_v8 = vld [vmem:[#allocation37_spill] sm:$0xff] }
 0xea4   :  { %3991 = vpow2.f32 %v3054_v13  ;;  %v7047_v13 = vld [vmem:[#allocation38_spill] sm:$0xff] }
 0xeaf   :  { %v3990_v16 = vpop.eup %3989 }
 0xeb0   :  { %v2601_v17 = vadd.f32 1.0, %v3990_v16  ;;  %v7048_v16 = vld [vmem:[#allocation40_spill] sm:$0xff] }
 0xeb1   :  { %v3992_v43 = vpop.eup %3991 }
 0xeb2   :  { %3993 = vrcp.f32 %v2601_v17  ;;  %v2608_v36 = vadd.f32 1.0, %v3992_v43  ;;  %v7049_v17 = vld [vmem:[#allocation41_spill] sm:$0xff]  ;;  %v7050_v43 = vld [vmem:[#allocation42_spill] sm:$0xff] }
 0xeb4   :  { %3995 = vrcp.f32 %v2608_v36 }
 0xebf   :  { %v3994_v53 = vpop.eup %3993 }
 0xec0   :  { %v2611_v45 = vmul.f32 %v3994_v53, %v2404_v19 }
 0xec1   :  { %v3996_v47 = vpop.eup %3995 }
 0xec2   :  { %v2612_v14 = vadd.f32 %v2611_v45, %v2592_v4  ;;  %v2614_v0 = vsub.f32 1.0, %v3996_v47  ;;  %v2616_v2 = vmul.f32 %v3996_v47, %v6046_v40  ;;  %v7011_v40 = vld [vmem:[#allocation10_spill] sm:$0xff] }
 0xec4   :  { %3997 = vtanh.f32 %v2612_v14 }
 0xed1   :  { %v3998_v63 = vpop.eup %3997 }
 0xed2   :  { %v2615_v32 = vmul.f32 %v3998_v63, %v2614_v0 }
 0xed4   :  { %v6433_v21 = vadd.f32 %v2616_v2, %v2615_v32  ;;  %v3056_v32 = vld [vmem:[%s6548_s0 + $0xa8] sm:$0xff] }
 0xed6   :  { %3055 = vst [vmem:[%s6549_s6 + $0x30] sm:$0xff] %v6433_v21  ;;  %v2620_v38 = vpack.c.bf16 %v6433_v21, %v6433_v21 }
 0xed8   :  { %2654 = vmatmul.mubr.bf16.vlgmr.msra.gmra.mxu0 %v2620_v38  ;;  %3717 = vmatmul.mubr.bf16.vlgmr.msra.gmra.mxu1 %v2620_v38 }
 0xed9   :  { %2703 = vmatpush1.bf16.msra.mxu0 %v6057_v12  ;;  %3721 = vmatpush3.bf16.msra.mxu1 %v6063_v18  ;;  %v7012_v12 = vld [vmem:[#allocation5_spill] sm:$0xff]  ;;  %v7013_v18 = vld [vmem:[#allocation3_spill] sm:$0xff] }
 0xeda   :  { %2704 = vmatprep.subr.bf16.mxu0 %v6069_v46  ;;  %3722 = vmatprep.subr.bf16.mxu1 %v6777_v26  ;;  %v7014_v46 = vld [vmem:[#allocation39_spill] sm:$0xff] }
 0xedb   :  { %2734 = vmatprep.mubr.bf16.mxu0 %v6787_v61  ;;  %3736 = vmatprep.mubr.msk.bf16.mxu1 %vm4165_vm0, %v6777_v26 }
 0xedd   :  { %2705 = vmatpush1.bf16.msra.mxu0 %v6079_v39  ;;  %3723 = vmatpush3.bf16.msra.mxu1 %v6085_v42  ;;  %v7016_v39 = vld [vmem:[#allocation12_spill] sm:$0xff]  ;;  %v7017_v42 = vld [vmem:[#allocation7_spill] sm:$0xff] }
 0xede   :  { %2706 = vmatprep.subr.bf16.mxu0 %v6091_v49  ;;  %3724 = vmatprep.subr.bf16.mxu1 %v6777_v26  ;;  %v7018_v49 = vld [vmem:[#allocation8_spill] sm:$0xff] }
 0xee1   :  { %2707 = vmatpush1.bf16.msra.mxu0 %v6098_v50  ;;  %3725 = vmatpush3.bf16.msra.mxu1 %v7011_v40  ;;  %v7019_v50 = vld [vmem:[#allocation4_spill] sm:$0xff] }
 0xee2   :  { %2708 = vmatprep.subr.bf16.mxu0 %v7012_v12  ;;  %3726 = vmatprep.subr.bf16.mxu1 %v6777_v26 }
 0xee5   :  { %2709 = vmatpush1.bf16.msra.mxu0 %v7013_v18  ;;  %3727 = vmatpush3.bf16.msra.mxu1 %v7014_v46 }
 0xee6   :  { %2710 = vmatprep.subr.bf16.mxu0 %v7015_v15  ;;  %3728 = vmatprep.subr.bf16.mxu1 %v6777_v26 }
 0xee9   :  { %2711 = vmatpush1.bf16.msra.mxu0 %v7016_v39  ;;  %3729 = vmatpush3.bf16.msra.mxu1 %v7017_v42  ;;  %v3057_v42 = vld [vmem:[%s6548_s0 + $0xb0] sm:$0xff] }
 0xeea   :  { %2712 = vmatprep.subr.bf16.mxu0 %v7018_v49  ;;  %3730 = vmatprep.subr.bf16.mxu1 %v6777_v26 }
 0xeed   :  { %2713 = vmatpush1.bf16.msra.mxu0 %v7019_v50  ;;  %3731 = vmatpush3.bf16.msra.mxu1 %v7020_v51 }
 0xeee   :  { %2714 = vmatprep.subr.bf16.mxu0 %v7021_v31  ;;  %3732 = vmatprep.subr.bf16.mxu1 %v6777_v26 }
 0xef1   :  { %2715 = vmatpush1.bf16.msra.mxu0 %v7022_v33  ;;  %3733 = vmatpush3.bf16.msra.mxu1 %v7023_v34 }
 0xef2   :  { %2716 = vmatprep.subr.bf16.mxu0 %v7024_v3  ;;  %3734 = vmatprep.subr.bf16.mxu1 %v6777_v26 }
 0xef5   :  { %2717 = vmatpush1.bf16.msra.mxu0 %v7025_v30  ;;  %3735 = vmatpush3.bf16.msra.mxu1 %v7026_v55 }
 0xef6   :  { %2809 = vmatprep.subr.bf16.mxu0 %v7027_v20  ;;  %3740 = vmatprep.subr.bf16.mxu1 %v6777_v26 }
 0xef8   :  { %2735 = vmatmul.mubr.bf16.vlgmr.msra.gmra.mxu0 %v6384_v22  ;;  %3737 = vmatmul.mubr.bf16.vlgmr.msra.gmra.mxu1 %v6384_v22  ;;  %v7034_v22 = vld [vmem:[#allocation25_spill] sm:$0xff] }
 0xef9   :  { %2810 = vmatpush1.bf16.msra.mxu0 %v7028_v28  ;;  %3741 = vmatpush3.bf16.msra.mxu1 %v7029_v27 }
 0xefa   :  { %2811 = vmatprep.subr.bf16.mxu0 %v7030_v25  ;;  %3742 = vmatprep.subr.bf16.mxu1 %v6777_v26 }
 0xefb   :  { %2841 = vmatprep.mubr.bf16.mxu0 %v6787_v61  ;;  %3756 = vmatprep.mubr.msk.bf16.mxu1 %vm4165_vm0, %v6777_v26  ;;  %v7037_v61 = vld [vmem:[#allocation28_spill] sm:$0xff] }
 0xefd   :  { %2812 = vmatpush1.bf16.msra.mxu0 %v7031_v37  ;;  %3743 = vmatpush3.bf16.msra.mxu1 %v7032_v11 }
 0xefe   :  { %2813 = vmatprep.subr.bf16.mxu0 %v7033_v54  ;;  %3744 = vmatprep.subr.bf16.mxu1 %v6777_v26 }
 0xf01   :  { %2814 = vmatpush1.bf16.msra.mxu0 %v7034_v22  ;;  %3745 = vmatpush3.bf16.msra.mxu1 %v7035_v29 }
 0xf02   :  { %2815 = vmatprep.subr.bf16.mxu0 %v7036_v62  ;;  %3746 = vmatprep.subr.bf16.mxu1 %v6777_v26 }
 0xf05   :  { %2816 = vmatpush1.bf16.msra.mxu0 %v7037_v61  ;;  %3747 = vmatpush3.bf16.msra.mxu1 %v7038_v24 }
 0xf06   :  { %2817 = vmatprep.subr.bf16.mxu0 %v7039_v1  ;;  %3748 = vmatprep.subr.bf16.mxu1 %v6777_v26 }
 0xf09   :  { %2818 = vmatpush1.bf16.msra.mxu0 %v7040_v10  ;;  %3749 = vmatpush3.bf16.msra.mxu1 %v7041_v44 }
 0xf0a   :  { %2819 = vmatprep.subr.bf16.mxu0 %v7042_v35  ;;  %3750 = vmatprep.subr.bf16.mxu1 %v6777_v26 }
 0xf0d   :  { %2820 = vmatpush1.bf16.msra.mxu0 %v7043_v41  ;;  %3751 = vmatpush3.bf16.msra.mxu1 %v7044_v9 }
 0xf0e   :  { %2821 = vmatprep.subr.bf16.mxu0 %v7045_v60  ;;  %3752 = vmatprep.subr.bf16.mxu1 %v6777_v26 }
 0xf11   :  { %2822 = vmatpush1.bf16.msra.mxu0 %v7046_v8  ;;  %3753 = vmatpush3.bf16.msra.mxu1 %v7047_v13 }
 0xf12   :  { %2823 = vmatprep.subr.bf16.mxu0 %v7048_v16  ;;  %3754 = vmatprep.subr.bf16.mxu1 %v6777_v26 }
 0xf15   :  { %2824 = vmatpush1.bf16.msra.mxu0 %v7049_v17  ;;  %3755 = vmatpush3.bf16.msra.mxu1 %v7050_v43 }
 0xf98   :  { %v2655_v36 = vpop.f32.mrf.mxu0  ;;  %v6511_v19 = vpop.f32.mrf.mxu1 }
 0xf99   :  { %v2656_v61 = vadd.f32 %v2655_v36, %v4774_v5 }
 0xf9a   :  { %v2657_v53 = vpop.f32.mrf.mxu0  ;;  %v3718_v4 = vpop.f32.mrf.mxu1 }
 0xf9b   :  { %v2658_v13 = vadd.f32 %v2657_v53, %v4786_v57  ;;  %v2697_v4 = vadd.f32 %v6511_v19, %v4792_v52 }
 0xf9c   :  { %v2659_v45 = vpop.f32.mrf.mxu0  ;;  %v2699_v14 = vpop.f32.mrf.mxu1 }
 0xf9e   :  { %v2660_v47 = vpop.f32.mrf.mxu0  ;;  %v3719_v0 = vpop.f32.mrf.mxu1 }
 0xfb8   :  { %v2736_v63 = vpop.f32.mrf.mxu0  ;;  %v2777_v2 = vpop.f32.mrf.mxu1 }
 0xfb9   :  { %v2737_v26 = vadd.f32 %v2736_v63, %v6824_v58  ;;  %v2778_v30 = vadd.f32 %v2777_v2, %v4717_v59 }
 0xfba   :  { %v2738_v38 = vpop.f32.mrf.mxu0  ;;  %v3738_v40 = vpop.f32.mrf.mxu1 }
 0xfbb   :  { %v2787_v12 = vadd.f32 %v3056_v32, %v2737_v26  ;;  %v2739_v39 = vadd.f32 %v2738_v38, %v4708_v56  ;;  %v3058_v56 = vld [vmem:[%s6548_s0 + $0xb8] sm:$0xff] }
 0xfbc   :  { %v2740_v18 = vpop.f32.mrf.mxu0  ;;  %v2780_v46 = vpop.f32.mrf.mxu1 }
 0xfbd   :  { %v3059_v15 = vmul.f32 -1.442695, %v2787_v12  ;;  %v2794_v51 = vadd.f32 %v3057_v42, %v2739_v39 }
 0xfbe   :  { %v2741_v49 = vpop.f32.mrf.mxu0  ;;  %v3739_v50 = vpop.f32.mrf.mxu1 }
 0xfbf   :  { %3999 = vpow2.f32 %v3059_v15  ;;  %v3060_v31 = vmul.f32 -1.442695, %v2794_v51 }
 0xfc1   :  { %4001 = vpow2.f32 %v3060_v31 }
 0xfcc   :  { %v4000_v33 = vpop.eup %3999 }
 0xfcd   :  { %v2791_v58 = vadd.f32 1.0, %v4000_v33 }
 0xfce   :  { %v4002_v34 = vpop.eup %4001 }
 0xfcf   :  { %4003 = vrcp.f32 %v2791_v58  ;;  %v2798_v3 = vadd.f32 1.0, %v4002_v34 }
 0xfd1   :  { %4005 = vrcp.f32 %v2798_v3 }
 0xfdc   :  { %v4004_v55 = vpop.eup %4003 }
 0xfdd   :  { %v2801_v20 = vmul.f32 %v4004_v55, %v2778_v30 }
 0xfde   :  { %v4006_v27 = vpop.eup %4005 }
 0xfdf   :  { %v2802_v28 = vadd.f32 %v3058_v56, %v2801_v20  ;;  %v2804_v25 = vsub.f32 1.0, %v4006_v27  ;;  %v2806_v54 = vmul.f32 %v4006_v27, %v6380_v23 }
 0xfe1   :  { %4007 = vtanh.f32 %v2802_v28 }
 0xfee   :  { %v4008_v37 = vpop.eup %4007 }
 0xfef   :  { %v2805_v11 = vmul.f32 %v4008_v37, %v2804_v25 }
 0xff1   :  { %v2807_v22 = vadd.f32 %v2806_v54, %v2805_v11 }
 0xff3   :  { %v2808_v29 = vpack.c.bf16 %v2807_v22, %v2807_v22  ;;  %2920 = vst [vmem:[%s6550_s7] sm:$0xff] %v2807_v22 }
 0xff5   :  { %2842 = vmatmul.mubr.bf16.vlgmr.msra.gmra.mxu0 %v2808_v29  ;;  %3757 = vmatmul.mubr.bf16.vlgmr.msra.gmra.mxu1 %v2808_v29 }
0x10b5   :  { %v2843_v59 = vpop.f32.mrf.mxu0  ;;  %v2884_v62 = vpop.f32.mrf.mxu1 }
0x10b6   :  { %v2844_v24 = vadd.f32 %v2843_v59, %v4777_v6  ;;  %v2885_v14 = vadd.f32 %v2884_v62, %v4795_v7 }
0x10b7   :  { %v2845_v1 = vpop.f32.mrf.mxu0  ;;  %v3758_v10 = vpop.f32.mrf.mxu1 }
0x10b8   :  { %v2890_v44 = vadd.f32 %v2844_v24, %v2656_v61  ;;  %v2846_v9 = vadd.f32 %v2845_v1, %v4783_v48 }
0x10b9   :  { %v2847_v35 = vpop.f32.mrf.mxu0  ;;  %v2887_v41 = vpop.f32.mrf.mxu1 }
0x10ba   :  { %v3061_v23 = vmul.f32 -1.442695, %v2890_v44  ;;  %v2897_v16 = vadd.f32 %v2846_v9, %v2658_v13 }
0x10bb   :  { %v2848_v60 = vpop.f32.mrf.mxu0  ;;  %v3759_v8 = vpop.f32.mrf.mxu1 }
0x10bc   :  { %4009 = vpow2.f32 %v3061_v23  ;;  %v3062_v17 = vmul.f32 -1.442695, %v2897_v16 }
0x10be   :  { %4011 = vpow2.f32 %v3062_v17 }
0x10c9   :  { %v4010_v43 = vpop.eup %4009 }
0x10ca   :  { %v2894_v5 = vadd.f32 1.0, %v4010_v43 }
0x10cb   :  { %v4012_v6 = vpop.eup %4011 }
0x10cc   :  { %4013 = vrcp.f32 %v2894_v5  ;;  %v2901_v36 = vadd.f32 1.0, %v4012_v6 }
0x10ce   :  { %4015 = vrcp.f32 %v2901_v36 }
0x10d9   :  { %v4014_v45 = vpop.eup %4013 }
0x10da   :  { %v2904_v48 = vmul.f32 %v4014_v45, %v2697_v4 }
0x10db   :  { %v4016_v57 = vpop.eup %4015 }
0x10dc   :  { %v2905_v47 = vadd.f32 %v2904_v48, %v2885_v14  ;;  %v2907_v53 = vsub.f32 1.0, %v4016_v57  ;;  %v2909_v32 = vmul.f32 %v4016_v57, %v6433_v21 }
0x10de   :  { %4017 = vtanh.f32 %v2905_v47 }
0x10eb   :  { %v4018_v0 = vpop.eup %4017 }
0x10ec   :  { %v2908_v63 = vmul.f32 %v4018_v0, %v2907_v53 }
0x10ee   :  { %v2910_v2 = vadd.f32 %v2909_v32, %v2908_v63 }
0x10f0   :  { %3063 = vst [vmem:[%s6549_s6 + $0x38] sm:$0xff] %v2910_v2  ;;  %2921 = vst [vmem:[%s6550_s7 + $0x8] sm:$0xff] %v2910_v2 }

</bundles_post_ra>
